<compile_context>
chip_gen: v6e
topology: v6e:2x2x1
jax: 0.10.0
libtpu: 0.0.40
codegen_flags: <defaults>
</compile_context>

<pallas_src>
import math
import functools

import jax
import jax.numpy as jnp
from jax import lax
from jax.experimental import pallas as pl
from jax.experimental.pallas import tpu as pltpu

# Same (highest) matmul precision for the in-kernel dots and the pure-JAX reference.
jax.config.update("jax_default_matmul_precision", "highest")

# --------------------------- model hyper-params ---------------------------
EMB_DIM = 32
NUM_HEADS = 4
KEY_DIM = EMB_DIM // NUM_HEADS     # 8
VALUE_DIM = EMB_DIM // NUM_HEADS   # 8
HIDDEN_DIM = 2048                  # FeedForward hidden (as in the module)
EPS = 1e-6

_HK = NUM_HEADS * KEY_DIM          # 32
_HV = NUM_HEADS * VALUE_DIM        # 32


# ------------------------------ in-kernel math ------------------------------
def _recip(x):
    # EUP approx reciprocal + one Newton-Raphson step (~1e-7 rel error):
    # keeps the divide off the VPU critical path while passing the 1e-4 check.
    r = pl.reciprocal(x, approx=True)
    return r * (2.0 - x * r)


def _layer_norm(y, alpha, bias):
    # torch: alpha * (x - mean) / (std + eps) + bias, std unbiased (N-1), eps on std.
    n = y.shape[-1]
    mean = jnp.mean(y, axis=-1, keepdims=True)
    var = jnp.sum((y - mean) ** 2, axis=-1, keepdims=True) * (1.0 / (n - 1))
    inv = _recip(jnp.sqrt(var) + EPS)
    return (y - mean) * (alpha * inv) + bias


def _softmax_last(s):
    s = s - jnp.max(s, axis=-1, keepdims=True)
    e = jnp.exp(s)
    return e * _recip(jnp.sum(e, axis=-1, keepdims=True))


# ------------------------------ Pallas kernel ------------------------------
def encoder_block_kernel(
    x_ref,
    wqkv_ref, bqkv_ref, wo_ref, bo_ref,
    a1_ref, g1_ref,                       # LayerNorm 1 (alpha, bias)
    w1_ref, b1_ref, w2t_ref, b2_ref,      # FeedForward (w2 stored transposed: (E, HIDDEN))
    a2_ref, g2_ref,                       # LayerNorm 2 (alpha, bias)
    o_ref,
    y_scr, acc_scr,                       # VMEM scratch: LN1 output, FFN accumulator
    *, n_batch, seq_len,
):
    kidx = pl.program_id(0)

    # ----- step 0: attention + residual + LayerNorm1 into scratch; zero FFN accumulator -----
    @pl.when(kidx == 0)
    def _():
        x = x_ref[...]                                            # (R, E), R = B*S

        # Fused Q/K/V projection: one (R, E) @ (E, 3*HK) MXU pass.
        qkv = jnp.dot(x, wqkv_ref[...],
                      preferred_element_type=jnp.float32) + bqkv_ref[...]
        q = qkv[:, :_HK].reshape(n_batch, seq_len, _HK)
        k = qkv[:, _HK:2 * _HK].reshape(n_batch, seq_len, _HK)
        v = qkv[:, 2 * _HK:2 * _HK + _HV].reshape(n_batch, seq_len, _HV)

        wo = wo_ref[...]
        inv_sqrt_dk = 1.0 / math.sqrt(KEY_DIM)

        # Per-head loop, batched over the batch dim (leading-dim batched dots lower natively);
        # per-head output projection over sublane-aligned Wo row slices == concat(heads) @ Wo.
        att = None
        for h in range(NUM_HEADS):
            qh = q[:, :, h * KEY_DIM:(h + 1) * KEY_DIM]
            kh = k[:, :, h * KEY_DIM:(h + 1) * KEY_DIM]
            vh = v[:, :, h * VALUE_DIM:(h + 1) * VALUE_DIM]
            scores = jnp.einsum("bsk,btk->bst", qh, kh,
                                preferred_element_type=jnp.float32) * inv_sqrt_dk
            probs = _softmax_last(scores)
            ctx = jnp.einsum("bst,btv->bsv", probs, vh,
                             preferred_element_type=jnp.float32)
            ctx2 = ctx.reshape(n_batch * seq_len, VALUE_DIM)
            contrib = jnp.dot(ctx2, wo[h * VALUE_DIM:(h + 1) * VALUE_DIM, :],
                              preferred_element_type=jnp.float32)
            att = contrib if att is None else att + contrib
        att = att + bo_ref[...]

        y_scr[...] = _layer_norm(x + att, a1_ref[...], g1_ref[...])
        acc_scr[...] = jnp.zeros_like(acc_scr)

    # ----- every step: one streamed FFN hidden tile -----
    y = y_scr[...]
    h1 = jnp.maximum(
        jnp.dot(y, w1_ref[...], preferred_element_type=jnp.float32) + b1_ref[...], 0.0)
    # w2 is stored transposed (E, HIDDEN) so each streamed block is lane-dense; contract
    # the hidden dims directly (no in-kernel transpose).
    acc_scr[...] += lax.dot_general(h1, w2t_ref[...], (((1,), (1,)), ((), ())),
                                    preferred_element_type=jnp.float32)

    # ----- last step: bias + ReLU (as written in the module), residual + LayerNorm2 -----
    @pl.when(kidx == pl.num_programs(0) - 1)
    def _():
        h2 = jnp.maximum(acc_scr[...] + b2_ref[...], 0.0)
        o_ref[...] = _layer_norm(y_scr[...] + h2, a2_ref[...], g2_ref[...])


# ------------------------------ host wrapper -------------------------------
@functools.partial(jax.jit, static_argnames=("hidden_tile",))
def encoder_block(x, params, *, hidden_tile=512):
    """Single row slab (B*S, E); FFN weights streamed over a hidden-dim grid axis."""
    B, S, E = x.shape
    assert E == EMB_DIM
    rows = B * S
    th = min(hidden_tile, HIDDEN_DIM)
    assert HIDDEN_DIM % th == 0 and th % 128 == 0
    kt = HIDDEN_DIM // th

    # Fuse QKV weights/biases; store w2 lane-dense (transposed) for streaming.
    wqkv = jnp.concatenate([params["wq"], params["wk"], params["wv"]], axis=1)   # (E, 3*HK)
    bqkv = jnp.concatenate([params["bq"], params["bk"], params["bv"]], axis=1)   # (1, 3*HK)
    w2t = params["w2"].T                                                          # (E, HIDDEN)

    x2 = x.reshape(rows, E)

    resident = lambda k: (0, 0)   # same block every step -> stays resident, no re-DMA
    stream = lambda k: (0, k)     # hidden-dim tile k

    in_specs = [
        pl.BlockSpec((rows, E), resident),            # x
        pl.BlockSpec(wqkv.shape, resident),           # wqkv
        pl.BlockSpec(bqkv.shape, resident),           # bqkv
        pl.BlockSpec(params["wo"].shape, resident),   # wo
        pl.BlockSpec(params["bo"].shape, resident),   # bo
        pl.BlockSpec(params["a1"].shape, resident),   # a1
        pl.BlockSpec(params["g1"].shape, resident),   # g1
        pl.BlockSpec((EMB_DIM, th), stream),          # w1 tile (E, TH)
        pl.BlockSpec((1, th), stream),                # b1 tile (1, TH)
        pl.BlockSpec((EMB_DIM, th), stream),          # w2^T tile (E, TH)
        pl.BlockSpec(params["b2"].shape, resident),   # b2
        pl.BlockSpec(params["a2"].shape, resident),   # a2
        pl.BlockSpec(params["g2"].shape, resident),   # g2
    ]
    out_spec = pl.BlockSpec((rows, E), resident)

    kernel = functools.partial(encoder_block_kernel, n_batch=B, seq_len=S)

    out = pl.pallas_call(
        kernel,
        out_shape=jax.ShapeDtypeStruct((rows, E), jnp.float32),
        grid_spec=pltpu.PrefetchScalarGridSpec(
            num_scalar_prefetch=0,
            grid=(kt,),
            in_specs=in_specs,
            out_specs=out_spec,
            scratch_shapes=[pltpu.VMEM((rows, E), jnp.float32),   # y (post-LN1)
                            pltpu.VMEM((rows, E), jnp.float32)],  # h2 accumulator
        ),
        compiler_params=pltpu.CompilerParams(
            dimension_semantics=("arbitrary",),
        ),
    )(x2, wqkv, bqkv, params["wo"], params["bo"],
      params["a1"], params["g1"],
      params["w1"], params["b1"], w2t, params["b2"],
      params["a2"], params["g2"])
    return out.reshape(B, S, E)


# ------------------------- pure-JAX reference (check) ------------------------
def encoder_block_ref(x, p):
    def ln(y, a, g):
        n = y.shape[-1]
        mean = jnp.mean(y, axis=-1, keepdims=True)
        std = jnp.sqrt(jnp.sum((y - mean) ** 2, axis=-1, keepdims=True) / (n - 1))
        return a * (y - mean) / (std + EPS) + g

    B, S, E = x.shape
    q = x @ p["wq"] + p["bq"]
    k = x @ p["wk"] + p["bk"]
    v = x @ p["wv"] + p["bv"]
    q = q.reshape(B, S, NUM_HEADS, KEY_DIM).transpose(0, 2, 1, 3)
    k = k.reshape(B, S, NUM_HEADS, KEY_DIM).transpose(0, 2, 1, 3)
    v = v.reshape(B, S, NUM_HEADS, VALUE_DIM).transpose(0, 2, 1, 3)
    scores = jnp.einsum("bhsk,bhtk->bhst", q, k) / math.sqrt(KEY_DIM)
    probs = jax.nn.softmax(scores, axis=-1)
    att = jnp.einsum("bhst,bhtv->bhsv", probs, v)
    att = att.transpose(0, 2, 1, 3).reshape(B, S, NUM_HEADS * VALUE_DIM)
    att = att @ p["wo"] + p["bo"]
    y = ln(x + att, p["a1"], p["g1"])
    h1 = jax.nn.relu(y @ p["w1"] + p["b1"])
    h2 = jax.nn.relu(h1 @ p["w2"] + p["b2"])
    return ln(y + h2, p["a2"], p["g2"])


# ---------------------------------- main ------------------------------------
def init_params(key):
    ks = jax.random.split(key, 8)

    def w(k, shape, scale=0.05):
        return (scale * jax.random.normal(k, shape)).astype(jnp.float32)

    HK = NUM_HEADS * KEY_DIM
    HV = NUM_HEADS * VALUE_DIM
    return {
        "wq": w(ks[0], (EMB_DIM, HK)), "bq": w(ks[0], (1, HK), 0.01),
        "wk": w(ks[1], (EMB_DIM, HK)), "bk": w(ks[1], (1, HK), 0.01),
        "wv": w(ks[2], (EMB_DIM, HV)), "bv": w(ks[2], (1, HV), 0.01),
        "wo": w(ks[3], (HV, EMB_DIM)), "bo": w(ks[3], (1, EMB_DIM), 0.01),
        "a1": jnp.ones((1, EMB_DIM), jnp.float32),
        "g1": jnp.zeros((1, EMB_DIM), jnp.float32),
        "w1": w(ks[4], (EMB_DIM, HIDDEN_DIM)), "b1": w(ks[5], (1, HIDDEN_DIM), 0.01),
        "w2": w(ks[6], (HIDDEN_DIM, EMB_DIM)), "b2": w(ks[7], (1, EMB_DIM), 0.01),
        "a2": jnp.ones((1, EMB_DIM), jnp.float32),
        "g2": jnp.zeros((1, EMB_DIM), jnp.float32),
    }


if __name__ == "__main__":
    key = jax.random.PRNGKey(0)
    k_x, k_p = jax.random.split(key)

    B, S = 2, 8
    x = jax.random.normal(k_x, (B, S, EMB_DIM), dtype=jnp.float32)
    params = init_params(k_p)

    out = jax.block_until_ready(encoder_block(x, params))

    ref = encoder_block_ref(x, params)
    assert out.shape == (B, S, EMB_DIM)
    assert jnp.allclose(out, ref, rtol=1e-4, atol=1e-4), "mismatch vs reference"

    print("KERNEL_OK")
</pallas_src>

<mosaic_0001>
module attributes {stable_mosaic.version = 11 : i64} {
  func.func @encoder_block_kernel(%arg0: i32, %arg1: memref<16x32xf32, #tpu.memory_space<vmem>>, %arg2: memref<32x96xf32, #tpu.memory_space<vmem>>, %arg3: memref<1x96xf32, #tpu.memory_space<vmem>>, %arg4: memref<32x32xf32, #tpu.memory_space<vmem>>, %arg5: memref<1x32xf32, #tpu.memory_space<vmem>>, %arg6: memref<1x32xf32, #tpu.memory_space<vmem>>, %arg7: memref<1x32xf32, #tpu.memory_space<vmem>>, %arg8: memref<32x512xf32, #tpu.memory_space<vmem>>, %arg9: memref<1x512xf32, #tpu.memory_space<vmem>>, %arg10: memref<32x512xf32, #tpu.memory_space<vmem>>, %arg11: memref<1x32xf32, #tpu.memory_space<vmem>>, %arg12: memref<1x32xf32, #tpu.memory_space<vmem>>, %arg13: memref<1x32xf32, #tpu.memory_space<vmem>>, %arg14: memref<16x32xf32, #tpu.memory_space<vmem>>, %arg15: memref<16x32xf32, #tpu.memory_space<vmem>>, %arg16: memref<16x32xf32, #tpu.memory_space<vmem>>) attributes {dimension_semantics = [#tpu.dimension_semantics<arbitrary>], iteration_bounds = array<i64: 4>, scalar_prefetch = 0 : i64, scratch_operands = 2 : i64, tpu.core_type = #tpu.core_type<tc>, window_params = [{pipeline_mode = #tpu.pipeline_mode<synchronous>, transform_indices = @transform_0, window_bounds = array<i64: 16, 32>}, {pipeline_mode = #tpu.pipeline_mode<synchronous>, transform_indices = @transform_1, window_bounds = array<i64: 32, 96>}, {pipeline_mode = #tpu.pipeline_mode<synchronous>, transform_indices = @transform_2, window_bounds = array<i64: 1, 96>}, {pipeline_mode = #tpu.pipeline_mode<synchronous>, transform_indices = @transform_3, window_bounds = array<i64: 32, 32>}, {pipeline_mode = #tpu.pipeline_mode<synchronous>, transform_indices = @transform_4, window_bounds = array<i64: 1, 32>}, {pipeline_mode = #tpu.pipeline_mode<synchronous>, transform_indices = @transform_5, window_bounds = array<i64: 1, 32>}, {pipeline_mode = #tpu.pipeline_mode<synchronous>, transform_indices = @transform_6, window_bounds = array<i64: 1, 32>}, {transform_indices = @transform_7, window_bounds = array<i64: 32, 512>}, {transform_indices = @transform_8, window_bounds = array<i64: 1, 512>}, {transform_indices = @transform_9, window_bounds = array<i64: 32, 512>}, {pipeline_mode = #tpu.pipeline_mode<synchronous>, transform_indices = @transform_10, window_bounds = array<i64: 1, 32>}, {pipeline_mode = #tpu.pipeline_mode<synchronous>, transform_indices = @transform_11, window_bounds = array<i64: 1, 32>}, {pipeline_mode = #tpu.pipeline_mode<synchronous>, transform_indices = @transform_12, window_bounds = array<i64: 1, 32>}, {pipeline_mode = #tpu.pipeline_mode<synchronous>, transform_indices = @transform_13, window_bounds = array<i64: 16, 32>}]} {
    %c0_i32 = arith.constant 0 : i32
    %0 = arith.cmpi eq, %arg0, %c0_i32 : i32
    %1 = arith.extui %0 : i1 to i32
    %c0_i32_0 = arith.constant 0 : i32
    %2 = arith.cmpi ne, %1, %c0_i32_0 : i32
    scf.if %2 {
      %c0_15 = arith.constant 0 : index
      %c0_16 = arith.constant 0 : index
      %19 = vector.load %arg1[%c0_15, %c0_16] : memref<16x32xf32, #tpu.memory_space<vmem>>, vector<16x32xf32>
      %c0_17 = arith.constant 0 : index
      %c0_18 = arith.constant 0 : index
      %20 = vector.load %arg2[%c0_17, %c0_18] : memref<32x96xf32, #tpu.memory_space<vmem>>, vector<32x96xf32>
      %cst_19 = arith.constant dense<0.000000e+00> : vector<16x96xf32>
      %21 = tpu.matmul %19, %20, %cst_19 {dimension_numbers = #tpu.dot_dimension_numbers<[1], [0], [0], [1], [0, 0, 1, 1], [], []>, precision = #tpu.contract_precision<fp32>} : vector<16x32xf32>, vector<32x96xf32>, vector<16x96xf32> -> vector<16x96xf32>
      %c0_20 = arith.constant 0 : index
      %c0_21 = arith.constant 0 : index
      %22 = vector.load %arg3[%c0_20, %c0_21] : memref<1x96xf32, #tpu.memory_space<vmem>>, vector<1x96xf32>
      %23 = vector.broadcast %22 : vector<1x96xf32> to vector<16x96xf32>
      %24 = arith.addf %21, %23 : vector<16x96xf32>
      %25 = vector.extract_strided_slice %24 {offsets = [0, 0], sizes = [16, 32], strides = [1, 1]} : vector<16x96xf32> to vector<16x32xf32>
      %26 = vector.shape_cast %25 : vector<16x32xf32> to vector<2x8x32xf32>
      %27 = vector.extract_strided_slice %24 {offsets = [0, 32], sizes = [16, 32], strides = [1, 1]} : vector<16x96xf32> to vector<16x32xf32>
      %28 = vector.shape_cast %27 : vector<16x32xf32> to vector<2x8x32xf32>
      %29 = vector.extract_strided_slice %24 {offsets = [0, 64], sizes = [16, 32], strides = [1, 1]} : vector<16x96xf32> to vector<16x32xf32>
      %30 = vector.shape_cast %29 : vector<16x32xf32> to vector<2x8x32xf32>
      %c0_22 = arith.constant 0 : index
      %c0_23 = arith.constant 0 : index
      %31 = vector.load %arg4[%c0_22, %c0_23] : memref<32x32xf32, #tpu.memory_space<vmem>>, vector<32x32xf32>
      %32 = vector.extract_strided_slice %26 {offsets = [0, 0, 0], sizes = [2, 8, 8], strides = [1, 1, 1]} : vector<2x8x32xf32> to vector<2x8x8xf32>
      %33 = vector.extract_strided_slice %28 {offsets = [0, 0, 0], sizes = [2, 8, 8], strides = [1, 1, 1]} : vector<2x8x32xf32> to vector<2x8x8xf32>
      %34 = vector.extract_strided_slice %30 {offsets = [0, 0, 0], sizes = [2, 8, 8], strides = [1, 1, 1]} : vector<2x8x32xf32> to vector<2x8x8xf32>
      "tpu.trace_start"() <{level = 10 : i32, message = "bsk,btk->bst"}> : () -> ()
      %cst_24 = arith.constant dense<0.000000e+00> : vector<2x8x8xf32>
      %35 = tpu.matmul %32, %33, %cst_24 {dimension_numbers = #tpu.dot_dimension_numbers<[2], [2], [1], [1], [0, 0, 0, 1, 1, 1], [0], [0]>, precision = #tpu.contract_precision<fp32>} : vector<2x8x8xf32>, vector<2x8x8xf32>, vector<2x8x8xf32> -> vector<2x8x8xf32>
      "tpu.trace_stop"() : () -> ()
      %cst_25 = arith.constant 0.353553385 : f32
      %36 = vector.broadcast %cst_25 : f32 to vector<2x8x8xf32>
      %37 = arith.mulf %35, %36 : vector<2x8x8xf32>
      %cst_26 = arith.constant dense<0xFF800000> : vector<2x8xf32>
      %38 = vector.multi_reduction <maximumf>, %37, %cst_26 [2] : vector<2x8x8xf32> to vector<2x8xf32>
      %39 = vector.shape_cast %38 : vector<2x8xf32> to vector<2x8x1xf32>
      %40 = vector.broadcast %39 : vector<2x8x1xf32> to vector<2x8x8xf32>
      %41 = arith.subf %37, %40 : vector<2x8x8xf32>
      %42 = math.exp %41 : vector<2x8x8xf32>
      %cst_27 = arith.constant dense<0.000000e+00> : vector<2x8xf32>
      %43 = vector.multi_reduction <add>, %42, %cst_27 [2] : vector<2x8x8xf32> to vector<2x8xf32>
      %44 = vector.shape_cast %43 : vector<2x8xf32> to vector<2x8x1xf32>
      %45 = tpu.reciprocal %44 {approx = true} : vector<2x8x1xf32> -> vector<2x8x1xf32>
      %46 = arith.mulf %44, %45 : vector<2x8x1xf32>
      %cst_28 = arith.constant 2.000000e+00 : f32
      %47 = vector.broadcast %cst_28 : f32 to vector<2x8x1xf32>
      %48 = arith.subf %47, %46 : vector<2x8x1xf32>
      %49 = arith.mulf %45, %48 : vector<2x8x1xf32>
      %50 = vector.broadcast %49 : vector<2x8x1xf32> to vector<2x8x8xf32>
      %51 = arith.mulf %42, %50 : vector<2x8x8xf32>
      "tpu.trace_start"() <{level = 10 : i32, message = "bst,btv->bsv"}> : () -> ()
      %cst_29 = arith.constant dense<0.000000e+00> : vector<2x8x8xf32>
      %52 = tpu.matmul %51, %34, %cst_29 {dimension_numbers = #tpu.dot_dimension_numbers<[2], [1], [1], [2], [0, 0, 0, 1, 1, 2], [0], [0]>, precision = #tpu.contract_precision<fp32>} : vector<2x8x8xf32>, vector<2x8x8xf32>, vector<2x8x8xf32> -> vector<2x8x8xf32>
      "tpu.trace_stop"() : () -> ()
      %53 = vector.shape_cast %52 : vector<2x8x8xf32> to vector<16x8xf32>
      %54 = vector.extract_strided_slice %31 {offsets = [0, 0], sizes = [8, 32], strides = [1, 1]} : vector<32x32xf32> to vector<8x32xf32>
      %cst_30 = arith.constant dense<0.000000e+00> : vector<16x32xf32>
      %55 = tpu.matmul %53, %54, %cst_30 {dimension_numbers = #tpu.dot_dimension_numbers<[1], [0], [0], [1], [0, 0, 1, 1], [], []>, precision = #tpu.contract_precision<fp32>} : vector<16x8xf32>, vector<8x32xf32>, vector<16x32xf32> -> vector<16x32xf32>
      %56 = vector.extract_strided_slice %26 {offsets = [0, 0, 8], sizes = [2, 8, 8], strides = [1, 1, 1]} : vector<2x8x32xf32> to vector<2x8x8xf32>
      %57 = vector.extract_strided_slice %28 {offsets = [0, 0, 8], sizes = [2, 8, 8], strides = [1, 1, 1]} : vector<2x8x32xf32> to vector<2x8x8xf32>
      %58 = vector.extract_strided_slice %30 {offsets = [0, 0, 8], sizes = [2, 8, 8], strides = [1, 1, 1]} : vector<2x8x32xf32> to vector<2x8x8xf32>
      "tpu.trace_start"() <{level = 10 : i32, message = "bsk,btk->bst"}> : () -> ()
      %cst_31 = arith.constant dense<0.000000e+00> : vector<2x8x8xf32>
      %59 = tpu.matmul %56, %57, %cst_31 {dimension_numbers = #tpu.dot_dimension_numbers<[2], [2], [1], [1], [0, 0, 0, 1, 1, 1], [0], [0]>, precision = #tpu.contract_precision<fp32>} : vector<2x8x8xf32>, vector<2x8x8xf32>, vector<2x8x8xf32> -> vector<2x8x8xf32>
      "tpu.trace_stop"() : () -> ()
      %cst_32 = arith.constant 0.353553385 : f32
      %60 = vector.broadcast %cst_32 : f32 to vector<2x8x8xf32>
      %61 = arith.mulf %59, %60 : vector<2x8x8xf32>
      %cst_33 = arith.constant dense<0xFF800000> : vector<2x8xf32>
      %62 = vector.multi_reduction <maximumf>, %61, %cst_33 [2] : vector<2x8x8xf32> to vector<2x8xf32>
      %63 = vector.shape_cast %62 : vector<2x8xf32> to vector<2x8x1xf32>
      %64 = vector.broadcast %63 : vector<2x8x1xf32> to vector<2x8x8xf32>
      %65 = arith.subf %61, %64 : vector<2x8x8xf32>
      %66 = math.exp %65 : vector<2x8x8xf32>
      %cst_34 = arith.constant dense<0.000000e+00> : vector<2x8xf32>
      %67 = vector.multi_reduction <add>, %66, %cst_34 [2] : vector<2x8x8xf32> to vector<2x8xf32>
      %68 = vector.shape_cast %67 : vector<2x8xf32> to vector<2x8x1xf32>
      %69 = tpu.reciprocal %68 {approx = true} : vector<2x8x1xf32> -> vector<2x8x1xf32>
      %70 = arith.mulf %68, %69 : vector<2x8x1xf32>
      %cst_35 = arith.constant 2.000000e+00 : f32
      %71 = vector.broadcast %cst_35 : f32 to vector<2x8x1xf32>
      %72 = arith.subf %71, %70 : vector<2x8x1xf32>
      %73 = arith.mulf %69, %72 : vector<2x8x1xf32>
      %74 = vector.broadcast %73 : vector<2x8x1xf32> to vector<2x8x8xf32>
      %75 = arith.mulf %66, %74 : vector<2x8x8xf32>
      "tpu.trace_start"() <{level = 10 : i32, message = "bst,btv->bsv"}> : () -> ()
      %cst_36 = arith.constant dense<0.000000e+00> : vector<2x8x8xf32>
      %76 = tpu.matmul %75, %58, %cst_36 {dimension_numbers = #tpu.dot_dimension_numbers<[2], [1], [1], [2], [0, 0, 0, 1, 1, 2], [0], [0]>, precision = #tpu.contract_precision<fp32>} : vector<2x8x8xf32>, vector<2x8x8xf32>, vector<2x8x8xf32> -> vector<2x8x8xf32>
      "tpu.trace_stop"() : () -> ()
      %77 = vector.shape_cast %76 : vector<2x8x8xf32> to vector<16x8xf32>
      %78 = vector.extract_strided_slice %31 {offsets = [8, 0], sizes = [8, 32], strides = [1, 1]} : vector<32x32xf32> to vector<8x32xf32>
      %cst_37 = arith.constant dense<0.000000e+00> : vector<16x32xf32>
      %79 = tpu.matmul %77, %78, %cst_37 {dimension_numbers = #tpu.dot_dimension_numbers<[1], [0], [0], [1], [0, 0, 1, 1], [], []>, precision = #tpu.contract_precision<fp32>} : vector<16x8xf32>, vector<8x32xf32>, vector<16x32xf32> -> vector<16x32xf32>
      %80 = arith.addf %55, %79 : vector<16x32xf32>
      %81 = vector.extract_strided_slice %26 {offsets = [0, 0, 16], sizes = [2, 8, 8], strides = [1, 1, 1]} : vector<2x8x32xf32> to vector<2x8x8xf32>
      %82 = vector.extract_strided_slice %28 {offsets = [0, 0, 16], sizes = [2, 8, 8], strides = [1, 1, 1]} : vector<2x8x32xf32> to vector<2x8x8xf32>
      %83 = vector.extract_strided_slice %30 {offsets = [0, 0, 16], sizes = [2, 8, 8], strides = [1, 1, 1]} : vector<2x8x32xf32> to vector<2x8x8xf32>
      "tpu.trace_start"() <{level = 10 : i32, message = "bsk,btk->bst"}> : () -> ()
      %cst_38 = arith.constant dense<0.000000e+00> : vector<2x8x8xf32>
      %84 = tpu.matmul %81, %82, %cst_38 {dimension_numbers = #tpu.dot_dimension_numbers<[2], [2], [1], [1], [0, 0, 0, 1, 1, 1], [0], [0]>, precision = #tpu.contract_precision<fp32>} : vector<2x8x8xf32>, vector<2x8x8xf32>, vector<2x8x8xf32> -> vector<2x8x8xf32>
      "tpu.trace_stop"() : () -> ()
      %cst_39 = arith.constant 0.353553385 : f32
      %85 = vector.broadcast %cst_39 : f32 to vector<2x8x8xf32>
      %86 = arith.mulf %84, %85 : vector<2x8x8xf32>
      %cst_40 = arith.constant dense<0xFF800000> : vector<2x8xf32>
      %87 = vector.multi_reduction <maximumf>, %86, %cst_40 [2] : vector<2x8x8xf32> to vector<2x8xf32>
      %88 = vector.shape_cast %87 : vector<2x8xf32> to vector<2x8x1xf32>
      %89 = vector.broadcast %88 : vector<2x8x1xf32> to vector<2x8x8xf32>
      %90 = arith.subf %86, %89 : vector<2x8x8xf32>
      %91 = math.exp %90 : vector<2x8x8xf32>
      %cst_41 = arith.constant dense<0.000000e+00> : vector<2x8xf32>
      %92 = vector.multi_reduction <add>, %91, %cst_41 [2] : vector<2x8x8xf32> to vector<2x8xf32>
      %93 = vector.shape_cast %92 : vector<2x8xf32> to vector<2x8x1xf32>
      %94 = tpu.reciprocal %93 {approx = true} : vector<2x8x1xf32> -> vector<2x8x1xf32>
      %95 = arith.mulf %93, %94 : vector<2x8x1xf32>
      %cst_42 = arith.constant 2.000000e+00 : f32
      %96 = vector.broadcast %cst_42 : f32 to vector<2x8x1xf32>
      %97 = arith.subf %96, %95 : vector<2x8x1xf32>
      %98 = arith.mulf %94, %97 : vector<2x8x1xf32>
      %99 = vector.broadcast %98 : vector<2x8x1xf32> to vector<2x8x8xf32>
      %100 = arith.mulf %91, %99 : vector<2x8x8xf32>
      "tpu.trace_start"() <{level = 10 : i32, message = "bst,btv->bsv"}> : () -> ()
      %cst_43 = arith.constant dense<0.000000e+00> : vector<2x8x8xf32>
      %101 = tpu.matmul %100, %83, %cst_43 {dimension_numbers = #tpu.dot_dimension_numbers<[2], [1], [1], [2], [0, 0, 0, 1, 1, 2], [0], [0]>, precision = #tpu.contract_precision<fp32>} : vector<2x8x8xf32>, vector<2x8x8xf32>, vector<2x8x8xf32> -> vector<2x8x8xf32>
      "tpu.trace_stop"() : () -> ()
      %102 = vector.shape_cast %101 : vector<2x8x8xf32> to vector<16x8xf32>
      %103 = vector.extract_strided_slice %31 {offsets = [16, 0], sizes = [8, 32], strides = [1, 1]} : vector<32x32xf32> to vector<8x32xf32>
      %cst_44 = arith.constant dense<0.000000e+00> : vector<16x32xf32>
      %104 = tpu.matmul %102, %103, %cst_44 {dimension_numbers = #tpu.dot_dimension_numbers<[1], [0], [0], [1], [0, 0, 1, 1], [], []>, precision = #tpu.contract_precision<fp32>} : vector<16x8xf32>, vector<8x32xf32>, vector<16x32xf32> -> vector<16x32xf32>
      %105 = arith.addf %80, %104 : vector<16x32xf32>
      %106 = vector.extract_strided_slice %26 {offsets = [0, 0, 24], sizes = [2, 8, 8], strides = [1, 1, 1]} : vector<2x8x32xf32> to vector<2x8x8xf32>
      %107 = vector.extract_strided_slice %28 {offsets = [0, 0, 24], sizes = [2, 8, 8], strides = [1, 1, 1]} : vector<2x8x32xf32> to vector<2x8x8xf32>
      %108 = vector.extract_strided_slice %30 {offsets = [0, 0, 24], sizes = [2, 8, 8], strides = [1, 1, 1]} : vector<2x8x32xf32> to vector<2x8x8xf32>
      "tpu.trace_start"() <{level = 10 : i32, message = "bsk,btk->bst"}> : () -> ()
      %cst_45 = arith.constant dense<0.000000e+00> : vector<2x8x8xf32>
      %109 = tpu.matmul %106, %107, %cst_45 {dimension_numbers = #tpu.dot_dimension_numbers<[2], [2], [1], [1], [0, 0, 0, 1, 1, 1], [0], [0]>, precision = #tpu.contract_precision<fp32>} : vector<2x8x8xf32>, vector<2x8x8xf32>, vector<2x8x8xf32> -> vector<2x8x8xf32>
      "tpu.trace_stop"() : () -> ()
      %cst_46 = arith.constant 0.353553385 : f32
      %110 = vector.broadcast %cst_46 : f32 to vector<2x8x8xf32>
      %111 = arith.mulf %109, %110 : vector<2x8x8xf32>
      %cst_47 = arith.constant dense<0xFF800000> : vector<2x8xf32>
      %112 = vector.multi_reduction <maximumf>, %111, %cst_47 [2] : vector<2x8x8xf32> to vector<2x8xf32>
      %113 = vector.shape_cast %112 : vector<2x8xf32> to vector<2x8x1xf32>
      %114 = vector.broadcast %113 : vector<2x8x1xf32> to vector<2x8x8xf32>
      %115 = arith.subf %111, %114 : vector<2x8x8xf32>
      %116 = math.exp %115 : vector<2x8x8xf32>
      %cst_48 = arith.constant dense<0.000000e+00> : vector<2x8xf32>
      %117 = vector.multi_reduction <add>, %116, %cst_48 [2] : vector<2x8x8xf32> to vector<2x8xf32>
      %118 = vector.shape_cast %117 : vector<2x8xf32> to vector<2x8x1xf32>
      %119 = tpu.reciprocal %118 {approx = true} : vector<2x8x1xf32> -> vector<2x8x1xf32>
      %120 = arith.mulf %118, %119 : vector<2x8x1xf32>
      %cst_49 = arith.constant 2.000000e+00 : f32
      %121 = vector.broadcast %cst_49 : f32 to vector<2x8x1xf32>
      %122 = arith.subf %121, %120 : vector<2x8x1xf32>
      %123 = arith.mulf %119, %122 : vector<2x8x1xf32>
      %124 = vector.broadcast %123 : vector<2x8x1xf32> to vector<2x8x8xf32>
      %125 = arith.mulf %116, %124 : vector<2x8x8xf32>
      "tpu.trace_start"() <{level = 10 : i32, message = "bst,btv->bsv"}> : () -> ()
      %cst_50 = arith.constant dense<0.000000e+00> : vector<2x8x8xf32>
      %126 = tpu.matmul %125, %108, %cst_50 {dimension_numbers = #tpu.dot_dimension_numbers<[2], [1], [1], [2], [0, 0, 0, 1, 1, 2], [0], [0]>, precision = #tpu.contract_precision<fp32>} : vector<2x8x8xf32>, vector<2x8x8xf32>, vector<2x8x8xf32> -> vector<2x8x8xf32>
      "tpu.trace_stop"() : () -> ()
      %127 = vector.shape_cast %126 : vector<2x8x8xf32> to vector<16x8xf32>
      %128 = vector.extract_strided_slice %31 {offsets = [24, 0], sizes = [8, 32], strides = [1, 1]} : vector<32x32xf32> to vector<8x32xf32>
      %cst_51 = arith.constant dense<0.000000e+00> : vector<16x32xf32>
      %129 = tpu.matmul %127, %128, %cst_51 {dimension_numbers = #tpu.dot_dimension_numbers<[1], [0], [0], [1], [0, 0, 1, 1], [], []>, precision = #tpu.contract_precision<fp32>} : vector<16x8xf32>, vector<8x32xf32>, vector<16x32xf32> -> vector<16x32xf32>
      %130 = arith.addf %105, %129 : vector<16x32xf32>
      %c0_52 = arith.constant 0 : index
      %c0_53 = arith.constant 0 : index
      %131 = vector.load %arg5[%c0_52, %c0_53] : memref<1x32xf32, #tpu.memory_space<vmem>>, vector<1x32xf32>
      %132 = vector.broadcast %131 : vector<1x32xf32> to vector<16x32xf32>
      %133 = arith.addf %130, %132 : vector<16x32xf32>
      %134 = arith.addf %19, %133 : vector<16x32xf32>
      %c0_54 = arith.constant 0 : index
      %c0_55 = arith.constant 0 : index
      %135 = vector.load %arg6[%c0_54, %c0_55] : memref<1x32xf32, #tpu.memory_space<vmem>>, vector<1x32xf32>
      %c0_56 = arith.constant 0 : index
      %c0_57 = arith.constant 0 : index
      %136 = vector.load %arg7[%c0_56, %c0_57] : memref<1x32xf32, #tpu.memory_space<vmem>>, vector<1x32xf32>
      %cst_58 = arith.constant dense<0.000000e+00> : vector<16xf32>
      %137 = vector.multi_reduction <add>, %134, %cst_58 [1] : vector<16x32xf32> to vector<16xf32>
      %138 = vector.shape_cast %137 : vector<16xf32> to vector<16x1xf32>
      %cst_59 = arith.constant 3.200000e+01 : f32
      %139 = vector.broadcast %cst_59 : f32 to vector<16x1xf32>
      %140 = arith.divf %138, %139 : vector<16x1xf32>
      %141 = vector.broadcast %140 : vector<16x1xf32> to vector<16x32xf32>
      %142 = arith.subf %134, %141 : vector<16x32xf32>
      %143 = arith.mulf %142, %142 : vector<16x32xf32>
      %cst_60 = arith.constant dense<0.000000e+00> : vector<16xf32>
      %144 = vector.multi_reduction <add>, %143, %cst_60 [1] : vector<16x32xf32> to vector<16xf32>
      %145 = vector.shape_cast %144 : vector<16xf32> to vector<16x1xf32>
      %cst_61 = arith.constant 0.0322580636 : f32
      %146 = vector.broadcast %cst_61 : f32 to vector<16x1xf32>
      %147 = arith.mulf %145, %146 : vector<16x1xf32>
      %148 = math.sqrt %147 : vector<16x1xf32>
      %cst_62 = arith.constant 9.99999997E-7 : f32
      %149 = vector.broadcast %cst_62 : f32 to vector<16x1xf32>
      %150 = arith.addf %148, %149 : vector<16x1xf32>
      %151 = tpu.reciprocal %150 {approx = true} : vector<16x1xf32> -> vector<16x1xf32>
      %152 = arith.mulf %150, %151 : vector<16x1xf32>
      %cst_63 = arith.constant 2.000000e+00 : f32
      %153 = vector.broadcast %cst_63 : f32 to vector<16x1xf32>
      %154 = arith.subf %153, %152 : vector<16x1xf32>
      %155 = arith.mulf %151, %154 : vector<16x1xf32>
      %156 = vector.broadcast %140 : vector<16x1xf32> to vector<16x32xf32>
      %157 = arith.subf %134, %156 : vector<16x32xf32>
      %158 = vector.broadcast %135 : vector<1x32xf32> to vector<16x32xf32>
      %159 = vector.broadcast %155 : vector<16x1xf32> to vector<16x32xf32>
      %160 = arith.mulf %158, %159 : vector<16x32xf32>
      %161 = arith.mulf %157, %160 : vector<16x32xf32>
      %162 = vector.broadcast %136 : vector<1x32xf32> to vector<16x32xf32>
      %163 = arith.addf %161, %162 : vector<16x32xf32>
      %c0_64 = arith.constant 0 : index
      %c0_65 = arith.constant 0 : index
      %164 = vector.load %arg15[%c0_64, %c0_65] : memref<16x32xf32, #tpu.memory_space<vmem>>, vector<16x32xf32>
      tpu.vector_store %arg15[%c0_64, %c0_65], %163 {strides = array<i32>} : memref<16x32xf32, #tpu.memory_space<vmem>>, vector<16x32xf32>,
      %cst_66 = arith.constant 0.000000e+00 : f32
      %165 = vector.broadcast %cst_66 : f32 to vector<16x32xf32>
      %c0_67 = arith.constant 0 : index
      %c0_68 = arith.constant 0 : index
      %166 = vector.load %arg16[%c0_67, %c0_68] : memref<16x32xf32, #tpu.memory_space<vmem>>, vector<16x32xf32>
      tpu.vector_store %arg16[%c0_67, %c0_68], %165 {strides = array<i32>} : memref<16x32xf32, #tpu.memory_space<vmem>>, vector<16x32xf32>,
    } else {
    }
    %c0 = arith.constant 0 : index
    %c0_1 = arith.constant 0 : index
    %3 = vector.load %arg15[%c0, %c0_1] : memref<16x32xf32, #tpu.memory_space<vmem>>, vector<16x32xf32>
    %c0_2 = arith.constant 0 : index
    %c0_3 = arith.constant 0 : index
    %4 = vector.load %arg8[%c0_2, %c0_3] : memref<32x512xf32, #tpu.memory_space<vmem>>, vector<32x512xf32>
    %cst = arith.constant dense<0.000000e+00> : vector<16x512xf32>
    %5 = tpu.matmul %3, %4, %cst {dimension_numbers = #tpu.dot_dimension_numbers<[1], [0], [0], [1], [0, 0, 1, 1], [], []>, precision = #tpu.contract_precision<fp32>} : vector<16x32xf32>, vector<32x512xf32>, vector<16x512xf32> -> vector<16x512xf32>
    %c0_4 = arith.constant 0 : index
    %c0_5 = arith.constant 0 : index
    %6 = vector.load %arg9[%c0_4, %c0_5] : memref<1x512xf32, #tpu.memory_space<vmem>>, vector<1x512xf32>
    %7 = vector.broadcast %6 : vector<1x512xf32> to vector<16x512xf32>
    %8 = arith.addf %5, %7 : vector<16x512xf32>
    %cst_6 = arith.constant 0.000000e+00 : f32
    %9 = vector.broadcast %cst_6 : f32 to vector<16x512xf32>
    %10 = arith.maximumf %8, %9 : vector<16x512xf32>
    %c0_7 = arith.constant 0 : index
    %c0_8 = arith.constant 0 : index
    %11 = vector.load %arg16[%c0_7, %c0_8] : memref<16x32xf32, #tpu.memory_space<vmem>>, vector<16x32xf32>
    %c0_9 = arith.constant 0 : index
    %c0_10 = arith.constant 0 : index
    %12 = vector.load %arg10[%c0_9, %c0_10] : memref<32x512xf32, #tpu.memory_space<vmem>>, vector<32x512xf32>
    %cst_11 = arith.constant dense<0.000000e+00> : vector<16x32xf32>
    %13 = tpu.matmul %10, %12, %cst_11 {dimension_numbers = #tpu.dot_dimension_numbers<[1], [1], [0], [0], [0, 0, 1, 0], [], []>, precision = #tpu.contract_precision<fp32>} : vector<16x512xf32>, vector<32x512xf32>, vector<16x32xf32> -> vector<16x32xf32>
    %14 = arith.addf %11, %13 : vector<16x32xf32>
    %c0_12 = arith.constant 0 : index
    %c0_13 = arith.constant 0 : index
    %15 = vector.load %arg16[%c0_12, %c0_13] : memref<16x32xf32, #tpu.memory_space<vmem>>, vector<16x32xf32>
    tpu.vector_store %arg16[%c0_12, %c0_13], %14 {strides = array<i32>} : memref<16x32xf32, #tpu.memory_space<vmem>>, vector<16x32xf32>,
    %c3_i32 = arith.constant 3 : i32
    %16 = arith.cmpi eq, %arg0, %c3_i32 : i32
    %17 = arith.extui %16 : i1 to i32
    %c0_i32_14 = arith.constant 0 : i32
    %18 = arith.cmpi ne, %17, %c0_i32_14 : i32
    scf.if %18 {
      %c0_15 = arith.constant 0 : index
      %c0_16 = arith.constant 0 : index
      %19 = vector.load %arg16[%c0_15, %c0_16] : memref<16x32xf32, #tpu.memory_space<vmem>>, vector<16x32xf32>
      %c0_17 = arith.constant 0 : index
      %c0_18 = arith.constant 0 : index
      %20 = vector.load %arg11[%c0_17, %c0_18] : memref<1x32xf32, #tpu.memory_space<vmem>>, vector<1x32xf32>
      %21 = vector.broadcast %20 : vector<1x32xf32> to vector<16x32xf32>
      %22 = arith.addf %19, %21 : vector<16x32xf32>
      %cst_19 = arith.constant 0.000000e+00 : f32
      %23 = vector.broadcast %cst_19 : f32 to vector<16x32xf32>
      %24 = arith.maximumf %22, %23 : vector<16x32xf32>
      %c0_20 = arith.constant 0 : index
      %c0_21 = arith.constant 0 : index
      %25 = vector.load %arg15[%c0_20, %c0_21] : memref<16x32xf32, #tpu.memory_space<vmem>>, vector<16x32xf32>
      %26 = arith.addf %25, %24 : vector<16x32xf32>
      %c0_22 = arith.constant 0 : index
      %c0_23 = arith.constant 0 : index
      %27 = vector.load %arg12[%c0_22, %c0_23] : memref<1x32xf32, #tpu.memory_space<vmem>>, vector<1x32xf32>
      %c0_24 = arith.constant 0 : index
      %c0_25 = arith.constant 0 : index
      %28 = vector.load %arg13[%c0_24, %c0_25] : memref<1x32xf32, #tpu.memory_space<vmem>>, vector<1x32xf32>
      %cst_26 = arith.constant dense<0.000000e+00> : vector<16xf32>
      %29 = vector.multi_reduction <add>, %26, %cst_26 [1] : vector<16x32xf32> to vector<16xf32>
      %30 = vector.shape_cast %29 : vector<16xf32> to vector<16x1xf32>
      %cst_27 = arith.constant 3.200000e+01 : f32
      %31 = vector.broadcast %cst_27 : f32 to vector<16x1xf32>
      %32 = arith.divf %30, %31 : vector<16x1xf32>
      %33 = vector.broadcast %32 : vector<16x1xf32> to vector<16x32xf32>
      %34 = arith.subf %26, %33 : vector<16x32xf32>
      %35 = arith.mulf %34, %34 : vector<16x32xf32>
      %cst_28 = arith.constant dense<0.000000e+00> : vector<16xf32>
      %36 = vector.multi_reduction <add>, %35, %cst_28 [1] : vector<16x32xf32> to vector<16xf32>
      %37 = vector.shape_cast %36 : vector<16xf32> to vector<16x1xf32>
      %cst_29 = arith.constant 0.0322580636 : f32
      %38 = vector.broadcast %cst_29 : f32 to vector<16x1xf32>
      %39 = arith.mulf %37, %38 : vector<16x1xf32>
      %40 = math.sqrt %39 : vector<16x1xf32>
      %cst_30 = arith.constant 9.99999997E-7 : f32
      %41 = vector.broadcast %cst_30 : f32 to vector<16x1xf32>
      %42 = arith.addf %40, %41 : vector<16x1xf32>
      %43 = tpu.reciprocal %42 {approx = true} : vector<16x1xf32> -> vector<16x1xf32>
      %44 = arith.mulf %42, %43 : vector<16x1xf32>
      %cst_31 = arith.constant 2.000000e+00 : f32
      %45 = vector.broadcast %cst_31 : f32 to vector<16x1xf32>
      %46 = arith.subf %45, %44 : vector<16x1xf32>
      %47 = arith.mulf %43, %46 : vector<16x1xf32>
      %48 = vector.broadcast %32 : vector<16x1xf32> to vector<16x32xf32>
      %49 = arith.subf %26, %48 : vector<16x32xf32>
      %50 = vector.broadcast %27 : vector<1x32xf32> to vector<16x32xf32>
      %51 = vector.broadcast %47 : vector<16x1xf32> to vector<16x32xf32>
      %52 = arith.mulf %50, %51 : vector<16x32xf32>
      %53 = arith.mulf %49, %52 : vector<16x32xf32>
      %54 = vector.broadcast %28 : vector<1x32xf32> to vector<16x32xf32>
      %55 = arith.addf %53, %54 : vector<16x32xf32>
      %c0_32 = arith.constant 0 : index
      %c0_33 = arith.constant 0 : index
      %56 = vector.load %arg14[%c0_32, %c0_33] : memref<16x32xf32, #tpu.memory_space<vmem>>, vector<16x32xf32>
      tpu.vector_store %arg14[%c0_32, %c0_33], %55 {strides = array<i32>} : memref<16x32xf32, #tpu.memory_space<vmem>>, vector<16x32xf32>,
    } else {
    }
    return
  }
  func.func @transform_0(%arg0: i32) -> (i32, i32) {
    %c0_i32 = arith.constant 0 : i32
    %c0_i32_0 = arith.constant 0 : i32
    %c0_i32_1 = arith.constant 0 : i32
    return %c0_i32, %c0_i32_0 : i32, i32
  }
  func.func @transform_1(%arg0: i32) -> (i32, i32) {
    %c0_i32 = arith.constant 0 : i32
    %c0_i32_0 = arith.constant 0 : i32
    %c0_i32_1 = arith.constant 0 : i32
    return %c0_i32, %c0_i32_0 : i32, i32
  }
  func.func @transform_2(%arg0: i32) -> (i32, i32) {
    %c0_i32 = arith.constant 0 : i32
    %c0_i32_0 = arith.constant 0 : i32
    %c0_i32_1 = arith.constant 0 : i32
    return %c0_i32, %c0_i32_0 : i32, i32
  }
  func.func @transform_3(%arg0: i32) -> (i32, i32) {
    %c0_i32 = arith.constant 0 : i32
    %c0_i32_0 = arith.constant 0 : i32
    %c0_i32_1 = arith.constant 0 : i32
    return %c0_i32, %c0_i32_0 : i32, i32
  }
  func.func @transform_4(%arg0: i32) -> (i32, i32) {
    %c0_i32 = arith.constant 0 : i32
    %c0_i32_0 = arith.constant 0 : i32
    %c0_i32_1 = arith.constant 0 : i32
    return %c0_i32, %c0_i32_0 : i32, i32
  }
  func.func @transform_5(%arg0: i32) -> (i32, i32) {
    %c0_i32 = arith.constant 0 : i32
    %c0_i32_0 = arith.constant 0 : i32
    %c0_i32_1 = arith.constant 0 : i32
    return %c0_i32, %c0_i32_0 : i32, i32
  }
  func.func @transform_6(%arg0: i32) -> (i32, i32) {
    %c0_i32 = arith.constant 0 : i32
    %c0_i32_0 = arith.constant 0 : i32
    %c0_i32_1 = arith.constant 0 : i32
    return %c0_i32, %c0_i32_0 : i32, i32
  }
  func.func @transform_7(%arg0: i32) -> (i32, i32) {
    %c0_i32 = arith.constant 0 : i32
    %c0_i32_0 = arith.constant 0 : i32
    return %c0_i32, %arg0 : i32, i32
  }
  func.func @transform_8(%arg0: i32) -> (i32, i32) {
    %c0_i32 = arith.constant 0 : i32
    %c0_i32_0 = arith.constant 0 : i32
    return %c0_i32, %arg0 : i32, i32
  }
  func.func @transform_9(%arg0: i32) -> (i32, i32) {
    %c0_i32 = arith.constant 0 : i32
    %c0_i32_0 = arith.constant 0 : i32
    return %c0_i32, %arg0 : i32, i32
  }
  func.func @transform_10(%arg0: i32) -> (i32, i32) {
    %c0_i32 = arith.constant 0 : i32
    %c0_i32_0 = arith.constant 0 : i32
    %c0_i32_1 = arith.constant 0 : i32
    return %c0_i32, %c0_i32_0 : i32, i32
  }
  func.func @transform_11(%arg0: i32) -> (i32, i32) {
    %c0_i32 = arith.constant 0 : i32
    %c0_i32_0 = arith.constant 0 : i32
    %c0_i32_1 = arith.constant 0 : i32
    return %c0_i32, %c0_i32_0 : i32, i32
  }
  func.func @transform_12(%arg0: i32) -> (i32, i32) {
    %c0_i32 = arith.constant 0 : i32
    %c0_i32_0 = arith.constant 0 : i32
    %c0_i32_1 = arith.constant 0 : i32
    return %c0_i32, %c0_i32_0 : i32, i32
  }
  func.func @transform_13(%arg0: i32) -> (i32, i32) {
    %c0_i32 = arith.constant 0 : i32
    %c0_i32_0 = arith.constant 0 : i32
    %c0_i32_1 = arith.constant 0 : i32
    return %c0_i32, %c0_i32_0 : i32, i32
  }
}

</mosaic_0001>

<bundles_post_ra>
// kernel: encoder_block.1
= control target key start
LH: loop header
LB: loop body
LE: loop exit
PB: predicated region body
PF: predicated region fallthrough
CT: control target
= control target key end

     0   :  { %s16067_s0 = inlined_call_operand.vmem [shape: f32[16,32], index: 0, kind: input, shape index: {}]   ;;  %s16068_s1 = inlined_call_operand.vmem [shape: f32[32,96], index: 1, kind: input, shape index: {}]   ;;  %s16069_s2 = inlined_call_operand.vmem [shape: f32[1,96], index: 2, kind: input, shape index: {}]   ;;  %s16070_s3 = inlined_call_operand.vmem [shape: f32[32,32], index: 3, kind: input, shape index: {}]   ;;  %s16071_s4 = inlined_call_operand.vmem [shape: f32[1,32], index: 4, kind: input, shape index: {}]   ;;  %s16072_s5 = inlined_call_operand.vmem [shape: f32[1,32], index: 5, kind: input, shape index: {}]   ;;  %s16073_s6 = inlined_call_operand.vmem [shape: f32[1,32], index: 6, kind: input, shape index: {}]   ;;  %s16074_s7 = inlined_call_operand.hbm [shape: f32[32,2048], index: 7, kind: input, shape index: {}]   ;;  %s16075_s8 = inlined_call_operand.vmem [shape: f32[1,2048], index: 8, kind: input, shape index: {}]   ;;  %s16076_s9 = inlined_call_operand.hbm [shape: f32[32,2048], index: 9, kind: input, shape index: {}]   ;;  %s16077_s10 = inlined_call_operand.vmem [shape: f32[1,32], index: 10, kind: input, shape index: {}]   ;;  %s16078_s11 = inlined_call_operand.vmem [shape: f32[1,32], index: 11, kind: input, shape index: {}]   ;;  %s16079_s12 = inlined_call_operand.vmem [shape: f32[1,32], index: 12, kind: input, shape index: {}]   ;;  %s16080_s13 = inlined_call_operand.hbm [shape: f32[16,32], index: 13, kind: output, shape index: {}]  }
   0x1   :  { %16087 = sst [smem:[#allocation16_spill]] %s16074_s7 }
   0x2   :  { %16088 = sst [smem:[#allocation17_spill]] %s16079_s12 }
   0x3   :  { %16089 = sst [smem:[#allocation18_spill]] %s16080_s13 }
   0x4   :  { %18 = vsyncpa [#allocation5], 0 }
   0x5   :  { %20 = vsyncpa [#allocation5 + $0x1], 0 }
   0x6   :  { %21 = vsyncpa [#allocation8], 0 }
   0x7   :  { %23 = vsyncpa [#allocation8 + $0x1], 0 }
   0x8   :  { %24 = vsyncpa [#allocation6], 0  ;;  %s14477_s25 = smov 0   ;;  %s14479_s26 = smov 0  }
   0x9   :  { %s14481_s27 = smov 0   ;;  %s14483_s28 = smov 0  }
   0xa LB: > { %16090 = sst [smem:[#allocation13_spill]] %s14379_s27  ;;  %s14496_s29 = sadd.s32 4294967295, %s14383_s28   ;;  %s14383_s28 = sphi %s14483_s28, %s16103_s28   ;;  %s14379_s27 = sphi %s14481_s27, %s16105_s27   ;;  %s14375_s26 = sphi %s14479_s26, %s16107_s26   ;;  %s14371_s25 = sphi %s14477_s25, %s16106_s25  }
   0xb   : > { %s14499_s30 = sadd.s32 1, %s14383_s28   ;;  %s184_s15 = sadd.s32 1, %s14379_s27 }
   0xc   : > { %16091 = sst [smem:[#allocation14_spill]] %s14499_s30  ;;  %s181_s14 = ssub.s32 %s14383_s28, %s14499_s30 }
   0xd   : > { %p182_p0 = scmp.eq.s32.totalorder %s181_s14, 0  ;;  %p191_p1 = scmp.ne.s32.totalorder %s14379_s27, %s14375_s26 }
   0xe   : > { %p192_p2 = scmp.eq.s32.totalorder %s14383_s28, 0  ;;  %p197_p3 = scmp.ne.s32.totalorder %s14375_s26, %s14371_s25 }
   0xf   : > { %s14509_s16 = scalar_select %p182_p0, %s14379_s27, %s184_s15  }
  0x10   : > { %p193_p4 = por %p192_p2, %p191_p1  ;;  %p198_p5 = scmp.eq.s32.totalorder %s14496_s29, 0 }
  0x11   : > { %16092 = sst [smem:[#allocation15_spill]] %s14509_s16  ;;  %p14156_p6 = scmp.lt.s32.totalorder %s14383_s28, 4 }
  0x12   : > { %p14513_p7 = por %p198_p5, %p197_p3  ;;  %s14518_s18 = sand.u32 1, %s14379_s27  }
  0x13   : > { %s16081_s19 = sshll.u32 %s14518_s18, 7  ;;  %s16082_s20 = sshll.u32 %s14383_s28, 9 }
  0x14   : > { %s16093_s17 = scalar_select %p14513_p7, 1, 0 }
  0x15   : > { %s16094_s7 = sld [smem:[#allocation16_spill]]  ;;  %s391_s24 = scalar_lea.vmem [#allocation4], %s16081_s19 }
  0x16   : > { %s398_s25 = sshll.u32 %s391_s24, 4  ;;  %p14533_p8 = pnand %p14156_p6, %p193_p4  ;;  %s14531_s25 = int_to_ptr.vmem [resolvable:$true] %s398_s25 }
  0x18   : > { %p14263_p10 = pneg %p14533_p8 }
  0x1b   : > { %s14527_s23 = scalar_lea.hbm %s16094_s7, %s16082_s20  ;;  %s14266_s24 = scalar_lea.hbm %s16094_s7, 8192 }
  0x1c   : > { %s14261_s16 = scalar_lea.hbm %s14527_s23, 2048  ;;  %p14267_p13 = scmp.lt.s32.totalorder %s14527_s23, %s16094_s7 }
  0x1d   : > { %p14262_p9 = scmp.ne.s32.totalorder %s14527_s23, %s14261_s16  ;;  %p14268_p0 = scmp.lt.s32.totalorder %s14266_s24, %s14261_s16 }
  0x1f   : > { %p14264_p11 = pnand %p14263_p10, %p14262_p9  ;;  %p14269_p1 = por %p14268_p0, %p14267_p13 }
  0x21   : > { %p14265_p12 = pneg %p14264_p11 }
  0x23   : > { %p14270_p2 = pnand %p14269_p1, %p14265_p12 }
  0x25   : > { %14273 = shalt.err (!%p14270_p2)
}
  0x26   : > { %s14274_s15 = scalar_lea.vmem %s14531_s25, 2048  ;;  %s14385_s21 = smov [#allocation4]  }
  0x27   : > { %p14275_p3 = scmp.ne.s32.totalorder %s14531_s25, %s14274_s15  ;;  %s14279_s22 = sshll.u32 %s14385_s21, 4  ;;  %s14280_s22 = int_to_ptr.vmem [resolvable:$false] %s14279_s22 }
  0x28   : > { %s14281_s27 = scalar_lea.vmem %s14280_s22, 4096  ;;  %p14282_p6 = scmp.lt.s32.totalorder %s14531_s25, %s14280_s22 }
  0x29   : > { %p14277_p4 = pnand %p14275_p3, %p14263_p10  ;;  %p14283_p9 = scmp.lt.s32.totalorder %s14281_s27, %s14274_s15 }
  0x2b   : > { %p14278_p5 = pneg %p14277_p4  ;;  %p14284_p11 = por %p14283_p9, %p14282_p6 }
  0x2d   : > { %p14285_p13 = pnand %p14284_p11, %p14278_p5 }
  0x2f   : > { %14288 = shalt.err (!%p14285_p13)
}
  0x30   : > { %s14386_s16 = smov 2048   ;;  %s14387_s19 = smov 512  }
  0x31   : > { %s14388_s20 = smov 32   ;;  %s16096_s27 = scalar_lea.sflag [#allocation5], %s14518_s18 }
  0x32   : > { %14152 = dma.hbm_to_vmem [thread:$0]  (!%p14533_p8), %s14527_s23, 2048, %s14531_s25, %s16096_s27, %s14386_s16, %s14387_s19, %s14388_s20  }
  0x33   : > { %p13156_p12 = scmp.ge.s32.totalorder %s14383_s28, 1  ;;  %p435_p0 = scmp.lt.s32.totalorder %s14383_s28, 5 }
  0x34   : > { %s16098_s24 = sshll.u32 %s14383_s28, 9  ;;  %s16099_s30 = sshll.u32 %s14518_s18, 7 }
  0x35   : > { %p14569_p1 = pnand %p13156_p12, %p435_p0  ;;  %s14578_s7 = scalar_lea.hbm %s16076_s9, %s16098_s24 }
  0x36   : > { %s420_s13 = scalar_lea.vmem [#allocation7], %s16099_s30  ;;  %s417_s23 = scalar_lea.sflag [#allocation8], %s14518_s18 }
  0x37   : > { %s427_s12 = sshll.u32 %s420_s13, 4  ;;  %s14289_s25 = scalar_lea.hbm %s14578_s7, 2048  ;;  %s14582_s12 = int_to_ptr.vmem [resolvable:$true] %s427_s12 }
  0x38   : > { %p14290_p2 = scmp.ne.s32.totalorder %s14578_s7, %s14289_s25  ;;  %s14294_s24 = scalar_lea.hbm %s16076_s9, 8192 }
  0x39   : > { %p14295_p5 = scmp.lt.s32.totalorder %s14578_s7, %s16076_s9  ;;  %p14296_p6 = scmp.lt.s32.totalorder %s14294_s24, %s14289_s25 }
  0x3a   : > { %p14292_p3 = pnand %p14290_p2, %p14263_p10 }
  0x3b   : > { %p14297_p9 = por %p14296_p6, %p14295_p5 }
  0x3c   : > { %p14293_p4 = pneg %p14292_p3 }
  0x3e   : > { %p14298_p11 = pnand %p14297_p9, %p14293_p4 }
  0x40   : > { %14301 = shalt.err (!%p14298_p11)
}
  0x41   : > { %s14302_s13 = scalar_lea.vmem %s14582_s12, 2048  ;;  %s14389_s30 = smov [#allocation7]  }
  0x42   : > { %p14303_p13 = scmp.ne.s32.totalorder %s14582_s12, %s14302_s13  ;;  %s14307_s18 = sshll.u32 %s14389_s30, 4  ;;  %s14308_s18 = int_to_ptr.vmem [resolvable:$false] %s14307_s18 }
  0x43   : > { %s14309_s28 = scalar_lea.vmem %s14308_s18, 4096  ;;  %p14310_p2 = scmp.lt.s32.totalorder %s14582_s12, %s14308_s18 }
  0x44   : > { %p14305_p12 = pnand %p14303_p13, %p14263_p10  ;;  %p14311_p3 = scmp.lt.s32.totalorder %s14309_s28, %s14302_s13 }
  0x46   : > { %p14306_p0 = pneg %p14305_p12  ;;  %p14312_p7 = por %p14311_p3, %p14310_p2 }
  0x48   : > { %p14313_p5 = pnand %p14312_p7, %p14306_p0 }
  0x4a   : > { %14316 = shalt.err (!%p14313_p5)
}
  0x4b   : > { %14155 = dma.hbm_to_vmem [thread:$0]  (!%p14533_p8), %s14578_s7, 2048, %s14582_s12, %s417_s23, %s14386_s16, %s14387_s19, %s14388_s20  }
  0x4c   : > { %439 = sbr.rel (%p14569_p1) target bundleno = 4795 (0x12bb), region = 72  ;;  %s441_s25 = sand.u32 (!%p14569_p1), 1, %s14375_s26  }
  0x4d   : > { %s13157_s27 = sshll.u32 (!%p14569_p1), %s441_s25, 7  ;;  %s442_s24 = scalar_lea.sflag (!%p14569_p1), [#allocation5], %s441_s25 }
  0x4e   : > { %s14613_s21 = scalar_lea.vmem (!%p14569_p1), [#allocation4], %s13157_s27  ;;  %p16100_p7 = scmp.ne.s32.totalorder (!%p14569_p1), %s16093_s17, 0 }
  0x51   : > { %14358 = dma.done.wait (%p16100_p7), %s442_s24, 2048  }
  0x52   : > { %14360 = vsyncadd (%p16100_p7), %s442_s24, 4294965248  ;;  %s451_s14 = scalar_lea.sflag [#allocation8], %s441_s25  ;;  %s14619_s22 = scalar_lea.vmem [#allocation7], %s13157_s27 }
  0x53   : > { %14362 = dma.done.wait (%p16100_p7), %s451_s14, 2048  }
  0x54   : > { %14364 = vsyncadd (%p16100_p7), %s451_s14, 4294965248  ;;  %s13159_s7 = sshll.u32 %s14496_s29, 2  ;;  %p13160_p10 = scmp.ne.s32.totalorder %s14496_s29, 0 }
  0x55   : > { %p503_p8 = scmp.lt.s32.totalorder %s13159_s7, 15  ;;  %s14392_s20 = smov (!%p13160_p10), 96  }
  0x56   : > { %511 = sbr.rel (%p13160_p10) target bundleno = 3888 (0xf30), region = 84  ;;  %s14393_s15 = smov (!%p13160_p10), 64  }
  0x57   : > { %s16109_s7 = smov (!%p503_p8, %s13159_s7), 15  ;;  %s14394_s23 = smov (!%p13160_p10), 88  }
  0x58   : > { %s505_s19 = scalar_lea.vmem %s16075_s8, %s16109_s7  ;;  %s14395_s17 = smov (!%p13160_p10), 120  }
  0x59   : > { %s14396_s13 = smov (!%p13160_p10), 56   ;;  %s14397_s30 = smov (!%p13160_p10), 80  }
  0x5a   : > { %s14398_s18 = smov (!%p13160_p10), 112   ;;  %s14399_s14 = smov (!%p13160_p10), 48  }
  0x5b   : > { %v517_v0 = vld [vmem:[%s16068_s1 + $0x18] sm:$0xff]  ;;  %v516_v1 = vld [vmem:[%s16068_s1 + $0x10] sm:$0xff]  ;;  %v515_v2 = vld [vmem:[%s16068_s1 + $0x8] sm:$0xff]  ;;  %vm525_vm0 = vcmask 261120   ;;  %v14390_v8 = vmov 0.0   ;;  %vm14391_vm1 = vmmov 0  }
  0x5c   : > { %v14642_v3 = vand.u32 4294901760, %v517_v0  ;;  %v14644_v4 = vand.u32 4294901760, %v516_v1  ;;  %v14646_v5 = vand.u32 4294901760, %v515_v2  ;;  %v514_v6 = vld [vmem:[%s16068_s1] sm:$0xff]  ;;  %10493 = vst.msk [vmem:[#allocation3] sm:$0xff] %vm525_vm0, %v14390_v8  ;;  %10494 = vst.msk [vmem:[#allocation3 + $0x8] sm:$0xff] %vm525_vm0, %v14390_v8 }
  0x5d   : > { %v512_v7 = vld [vmem:[%s16067_s0] sm:$0xff]  ;;  %v513_v9 = vld [vmem:[%s16067_s0 + $0x8] sm:$0xff]  ;;  %v14661_v10 = vand.u32 4294901760, %v514_v6  ;;  %vm1067_vm2 = vcmask 64512   ;;  %s14400_s12 = smov 72   ;;  %s14401_s16 = smov 104  }
  0x5e   : > { %v527_v11 = vsel %vm525_vm0, %v512_v7, 0  ;;  %v530_v12 = vsel %vm525_vm0, %v513_v9, 0  ;;  %13475 = vmatprep.subr.mxu0 %v14642_v3  ;;  %v647_v13 = vsub.f32 %v517_v0, %v14642_v3  ;;  %v654_v15 = vsub.f32 %v516_v1, %v14644_v4  ;;  %v13161_v40 = vld [vmem:[%s16069_s2] ss:$0 sm:$0xff] }
  0x5f   : > { %v14667_v14 = vand.u32 4294901760, %v527_v11  ;;  %v14670_v16 = vand.u32 4294901760, %v530_v12  ;;  %13476 = vmatpush3.msra.mxu0 %v14642_v3  ;;  %v661_v17 = vsub.f32 %v515_v2, %v14646_v5  ;;  %v668_v18 = vsub.f32 %v514_v6, %v14661_v10 }
  0x60   : > { %13477 = vmatprep.subr.mxu0 %v14644_v4  ;;  %v648_v19 = vand.u32 4294901760, %v647_v13  ;;  %v655_v21 = vand.u32 4294901760, %v654_v15 }
  0x61   : > { %v602_v20 = vsub.f32 %v527_v11, %v14667_v14  ;;  %v612_v22 = vsub.f32 %v530_v12, %v14670_v16  ;;  %13494 = vmatprep.mubr.f32.mxu1 %v14667_v14  ;;  %13478 = vmatpush3.msra.mxu0 %v14644_v4  ;;  %v662_v23 = vand.u32 4294901760, %v661_v17  ;;  %v669_v24 = vand.u32 4294901760, %v668_v18 }
  0x62   : > { %13479 = vmatprep.subr.mxu0 %v14646_v5  ;;  %v649_v25 = vsub.f32 %v647_v13, %v648_v19  ;;  %v656_v27 = vsub.f32 %v654_v15, %v655_v21 }
  0x63   : > { %v603_v26 = vand.u32 4294901760, %v602_v20  ;;  %v613_v28 = vand.u32 4294901760, %v612_v22  ;;  %13480 = vmatpush3.msra.mxu0 %v14646_v5  ;;  %v663_v29 = vsub.f32 %v661_v17, %v662_v23  ;;  %v670_v30 = vsub.f32 %v668_v18, %v669_v24 }
  0x64   : > { %13481 = vmatprep.subr.mxu0 %v14661_v10  ;;  %v650_v31 = vand.u32 4294901760, %v649_v25  ;;  %v657_v33 = vand.u32 4294901760, %v656_v27 }
  0x65   : > { %v604_v32 = vsub.f32 %v602_v20, %v603_v26  ;;  %v614_v34 = vsub.f32 %v612_v22, %v613_v28  ;;  %13482 = vmatpush3.msra.mxu0 %v14661_v10  ;;  %v664_v37 = vand.u32 4294901760, %v663_v29  ;;  %v671_v38 = vand.u32 4294901760, %v670_v30 }
  0x66   : > { %13486 = vmatprep.subr.mxu1 %v650_v31  ;;  %13497 = vmatprep.subr.mxu0 %v647_v13 }
  0x67   : > { %v605_v35 = vand.u32 4294901760, %v604_v32  ;;  %v615_v36 = vand.u32 4294901760, %v614_v34  ;;  %13487 = vmatpush3.msra.mxu1 %v650_v31 }
  0x68   : > { %13488 = vmatprep.subr.mxu1 %v657_v33 }
  0x69   : > { %13483 = vmatprep.mubr.f32.mxu0 %v605_v35  ;;  %13489 = vmatpush3.msra.mxu1 %v657_v33 }
  0x6a   : > { %13484 = vmatmul.mubr.f32.vlgmr.msra.gmra.mxu0 %v615_v36  ;;  %13490 = vmatprep.subr.mxu1 %v664_v37 }
  0x6b   : > { %13498 = vmatpush3.msra.mxu0 %v647_v13  ;;  %13491 = vmatpush3.msra.mxu1 %v664_v37 }
  0x6c   : > { %13499 = vmatprep.subr.mxu0 %v654_v15  ;;  %13492 = vmatprep.subr.mxu1 %v671_v38 }
  0x6d   : > { %13500 = vmatpush3.msra.mxu0 %v654_v15  ;;  %13493 = vmatpush3.msra.mxu1 %v671_v38 }
  0x6e   : > { %13501 = vmatprep.subr.mxu0 %v661_v17  ;;  %13495 = vmatmul.mubr.f32.vlgmr.msra.gmra.mxu1 %v14670_v16 }
  0x6f   : > { %13502 = vmatpush3.msra.mxu0 %v661_v17  ;;  %13508 = vmatprep.subr.mxu1 %v14642_v3 }
  0x70   : > { %13503 = vmatprep.subr.mxu0 %v668_v18  ;;  %13505 = vmatprep.mubr.f32.mxu0 %v602_v20 }
  0x71   : > { %13504 = vmatpush3.msra.mxu0 %v668_v18  ;;  %13509 = vmatpush3.msra.mxu1 %v14642_v3 }
  0x72   : > { %13506 = vmatmul.mubr.f32.vlgmr.msra.gmra.mxu0 %v612_v22  ;;  %13510 = vmatprep.subr.mxu1 %v14644_v4 }
  0x73   : > { %13519 = vmatprep.subr.mxu0 %v648_v19  ;;  %13511 = vmatpush3.msra.mxu1 %v14644_v4 }
  0x74   : > { %13520 = vmatpush3.msra.mxu0 %v648_v19  ;;  %13512 = vmatprep.subr.mxu1 %v14646_v5 }
  0x75   : > { %13521 = vmatprep.subr.mxu0 %v655_v21  ;;  %13513 = vmatpush3.msra.mxu1 %v14646_v5 }
  0x76   : > { %13522 = vmatpush3.msra.mxu0 %v655_v21  ;;  %13514 = vmatprep.subr.mxu1 %v14661_v10 }
  0x77   : > { %13523 = vmatprep.subr.mxu0 %v662_v23  ;;  %13515 = vmatpush3.msra.mxu1 %v14661_v10 }
  0x78   : > { %13516 = vmatprep.mubr.f32.mxu1 %v603_v26  ;;  %13524 = vmatpush3.msra.mxu0 %v662_v23 }
  0x79   : > { %13517 = vmatmul.mubr.f32.vlgmr.msra.gmra.mxu1 %v613_v28  ;;  %13525 = vmatprep.subr.mxu0 %v669_v24 }
  0x7a   : > { %13530 = vmatprep.subr.mxu1 %v14642_v3  ;;  %13526 = vmatpush3.msra.mxu0 %v669_v24 }
  0x7b   : > { %13527 = vmatprep.mubr.f32.mxu0 %v14667_v14  ;;  %13531 = vmatpush3.msra.mxu1 %v14642_v3 }
  0x7c   : > { %13528 = vmatmul.mubr.f32.vlgmr.msra.gmra.mxu0 %v14670_v16  ;;  %13532 = vmatprep.subr.mxu1 %v14644_v4 }
  0x7d   : > { %13538 = vmatprep.mubr.f32.mxu1 %v14667_v14  ;;  %13533 = vmatpush3.msra.mxu1 %v14644_v4 }
  0x7e   : > { %13541 = vmatprep.subr.mxu0 %v14390_v8  ;;  %13534 = vmatprep.subr.mxu1 %v14646_v5 }
  0x7f   : > { %13535 = vmatpush3.msra.mxu1 %v14646_v5  ;;  %13543 = vmatprep.mubr.msk.f32.mxu0 %vm14391_vm1, %v14390_v8 }
  0x80   : > { %13536 = vmatprep.subr.mxu1 %v14661_v10 }
  0x81   : > { %13537 = vmatpush3.msra.mxu1 %v14661_v10 }
  0x82   : > { %13539 = vmatmul.mubr.f32.vlgmr.msra.gmra.mxu1 %v14670_v16  ;;  %13546 = vmatprep.subr.mxu1 %v14390_v8 }
  0x83   : > { %13548 = vmatprep.mubr.msk.f32.mxu1 %vm14391_vm1, %v14390_v8 }
 0x12a   : > { %v13485_v39 = vpop.f32.mrf.mxu0 }
 0x12b   : > { %v618_v47 = vadd.f32 %v13485_v39, %v13161_v40 }
 0x12c   : > { %v607_v41 = vpop.f32.mrf.mxu0 }
 0x12d   : > { %v608_v43 = vadd.f32 %v13161_v40, %v607_v41 }
 0x12e   : > { %v13496_v42 = vpop.f32.mrf.mxu1 }
 0x12f   : > { %v715_v52 = vadd.f32 %v13496_v42, %v618_v47 }
 0x130   : > { %v708_v44 = vpop.f32.mrf.mxu1 }
 0x131   : > { %v709_v48 = vadd.f32 %v708_v44, %v608_v43 }
 0x132   : > { %v13507_v45 = vpop.f32.mrf.mxu0 }
 0x133   : > { %v802_v56 = vadd.f32 %v13507_v45, %v715_v52 }
 0x134   : > { %v794_v49 = vpop.f32.mrf.mxu0 }
 0x135   : > { %v795_v53 = vadd.f32 %v794_v49, %v709_v48 }
 0x139   : > { %v13518_v46 = vpop.f32.mrf.mxu1 }
 0x13a   : > { %v887_v58 = vadd.f32 %v13518_v46, %v802_v56 }
 0x13b   : > { %v878_v50 = vpop.f32.mrf.mxu1 }
 0x13c   : > { %v13529_v51 = vpop.f32.mrf.mxu0  ;;  %v879_v54 = vadd.f32 %v878_v50, %v795_v53 }
 0x13d   : > { %v976_v62 = vadd.f32 %v13529_v51, %v887_v58 }
 0x13e   : > { %v969_v55 = vpop.f32.mrf.mxu0 }
 0x13f   : > { %v970_v59 = vadd.f32 %v969_v55, %v879_v54 }
 0x142   : > { %v13540_v57 = vpop.f32.mrf.mxu1 }
 0x143   : > { %v14717_v63 = vadd.f32 %v13540_v57, %v976_v62 }
 0x144   : > { %v1050_v60 = vpop.f32.mrf.mxu1 }
 0x145   : > { %v14714_v61 = vadd.f32 %v1050_v60, %v970_v59  ;;  %v1521_v4 = vsel %vm1067_vm2, %v14717_v63, 0 }
 0x146   : > { %v14725_v9 = vand.u32 4294901760, %v1521_v4 }
 0x147   : > { %1065 = vrot.lane.b32.xlu0 %v14714_v61, %s14392_s20  ;;  %v1068_v0 = vsel %vm1067_vm2, %v14714_v61, 0 }
 0x148   : > { %v1138_v1 = vand.u32 4294901760, %v1068_v0  ;;  %v1592_v15 = vsub.f32 %v1521_v4, %v14725_v9 }
 0x14a   : > { %v1139_v2 = vsub.f32 %v1068_v0, %v1138_v1  ;;  %v1593_v19 = vand.u32 4294901760, %v1592_v15 }
 0x14b   : > { %1519 = vrot.lane.b32.xlu0 %v14717_v63, %s14392_s20 }
 0x14c   : > { %v1140_v3 = vand.u32 4294901760, %v1139_v2  ;;  %v1594_v22 = vsub.f32 %v1592_v15, %v1593_v19 }
 0x14e   : > { %v1141_v7 = vsub.f32 %v1139_v2, %v1140_v3  ;;  %v1595_v24 = vand.u32 4294901760, %v1594_v22 }
 0x150   : > { %v1142_v14 = vand.u32 4294901760, %v1141_v7 }
 0x1b9   : > { %v1066_v5 = vpop.permute.xlu0 %1065 }
 0x1ba   : > { %v1070_v6 = vsel %vm1067_vm2, %v1066_v5, 0 }
 0x1bb   : > { %v1103_v10 = vand.u32 4294901760, %v1070_v6 }
 0x1bd   : > { %v1180_v11 = vsub.f32 %v1070_v6, %v1103_v10  ;;  %13542 = vmatpush3.xpose.msra.mxu0 %v1103_v10  ;;  %v1520_v12 = vpop.permute.xlu0 %1519 }
 0x1be   : > { %v1523_v13 = vsel %vm1067_vm2, %v1520_v12, 0  ;;  %13551 = vmatprep.subr.mxu0 %v14390_v8 }
 0x1bf   : > { %v1181_v16 = vand.u32 4294901760, %v1180_v11  ;;  %v1556_v17 = vand.u32 4294901760, %v1523_v13 }
 0x1c0   : > { %13544 = vmatmul.mubr.f32.vlgmr.msra.gmra.mxu0 %v1142_v14 }
 0x1c1   : > { %v1182_v18 = vsub.f32 %v1180_v11, %v1181_v16  ;;  %13552 = vmatpush3.xpose.msra.mxu0 %v1180_v11  ;;  %13553 = vmatprep.mubr.msk.f32.mxu0 %vm14391_vm1, %v14390_v8  ;;  %v1633_v21 = vsub.f32 %v1523_v13, %v1556_v17 }
 0x1c2   : > { %13561 = vmatprep.subr.mxu0 %v14390_v8 }
 0x1c3   : > { %v1183_v20 = vand.u32 4294901760, %v1182_v18  ;;  %v1634_v23 = vand.u32 4294901760, %v1633_v21 }
 0x1c4   : > { %13554 = vmatmul.mubr.f32.vlgmr.msra.gmra.mxu0 %v1139_v2 }
 0x1c5   : > { %13547 = vmatpush3.xpose.msra.mxu1 %v1183_v20  ;;  %13562 = vmatpush3.xpose.msra.mxu0 %v1181_v16  ;;  %v1635_v25 = vsub.f32 %v1633_v21, %v1634_v23 }
 0x1c6   : > { %13563 = vmatprep.mubr.msk.f32.mxu0 %vm14391_vm1, %v14390_v8  ;;  %13556 = vmatprep.subr.mxu1 %v14390_v8 }
 0x1c7   : > { %13571 = vmatprep.subr.mxu0 %v14390_v8  ;;  %v1636_v26 = vand.u32 4294901760, %v1635_v25 }
 0x1c8   : > { %13549 = vmatmul.mubr.f32.vlgmr.msra.gmra.mxu1 %v1138_v1  ;;  %13564 = vmatmul.mubr.f32.vlgmr.msra.gmra.mxu0 %v1138_v1 }
 0x1c9   : > { %13557 = vmatpush3.xpose.msra.mxu1 %v1103_v10  ;;  %13572 = vmatpush3.xpose.msra.mxu0 %v1556_v17 }
 0x1ca   : > { %13558 = vmatprep.mubr.msk.f32.mxu1 %vm14391_vm1, %v14390_v8  ;;  %13573 = vmatprep.mubr.msk.f32.mxu0 %vm14391_vm1, %v14390_v8 }
 0x1cb   : > { %13566 = vmatprep.subr.mxu1 %v14390_v8  ;;  %13581 = vmatprep.subr.mxu0 %v14390_v8 }
 0x1cc   : > { %13559 = vmatmul.mubr.f32.vlgmr.msra.gmra.mxu1 %v1140_v3  ;;  %13574 = vmatmul.mubr.f32.vlgmr.msra.gmra.mxu0 %v1595_v24 }
 0x1cd   : > { %13567 = vmatpush3.xpose.msra.mxu1 %v1103_v10  ;;  %13582 = vmatpush3.xpose.msra.mxu0 %v1633_v21 }
 0x1ce   : > { %13568 = vmatprep.mubr.msk.f32.mxu1 %vm14391_vm1, %v14390_v8  ;;  %13583 = vmatprep.mubr.msk.f32.mxu0 %vm14391_vm1, %v14390_v8 }
 0x1cf   : > { %13576 = vmatprep.subr.mxu1 %v14390_v8  ;;  %13591 = vmatprep.subr.mxu0 %v14390_v8 }
 0x1d0   : > { %13569 = vmatmul.mubr.f32.vlgmr.msra.gmra.mxu1 %v1138_v1  ;;  %13584 = vmatmul.mubr.f32.vlgmr.msra.gmra.mxu0 %v1592_v15 }
 0x1d1   : > { %13577 = vmatpush3.xpose.msra.mxu1 %v1636_v26  ;;  %13592 = vmatpush3.xpose.msra.mxu0 %v1634_v23 }
 0x1d2   : > { %13578 = vmatprep.mubr.msk.f32.mxu1 %vm14391_vm1, %v14390_v8  ;;  %13593 = vmatprep.mubr.msk.f32.mxu0 %vm14391_vm1, %v14390_v8 }
 0x1d3   : > { %13586 = vmatprep.subr.mxu1 %v14390_v8  ;;  %13601 = vmatprep.subr.mxu0 %v14390_v8 }
 0x1d4   : > { %13579 = vmatmul.mubr.f32.vlgmr.msra.gmra.mxu1 %v14725_v9  ;;  %13594 = vmatmul.mubr.f32.vlgmr.msra.gmra.mxu0 %v14725_v9 }
 0x1d5   : > { %13587 = vmatpush3.xpose.msra.mxu1 %v1556_v17  ;;  %13588 = vmatprep.mubr.msk.f32.mxu1 %vm14391_vm1, %v14390_v8 }
 0x1d6   : > { %13596 = vmatprep.subr.mxu1 %v14390_v8  ;;  %13603 = vmatprep.mubr.msk.f32.mxu0 %vm14391_vm1, %v14390_v8 }
 0x1d8   : > { %13589 = vmatmul.mubr.f32.vlgmr.msra.gmra.mxu1 %v1593_v19 }
 0x1d9   : > { %13597 = vmatpush3.xpose.msra.mxu1 %v1556_v17  ;;  %13598 = vmatprep.mubr.msk.f32.mxu1 %vm14391_vm1, %v14390_v8 }
 0x1da   : > { %13606 = vmatprep.subr.mxu1 %v14390_v8 }
 0x1dc   : > { %13599 = vmatmul.mubr.f32.vlgmr.msra.gmra.mxu1 %v14725_v9 }
 0x1dd   : > { %13608 = vmatprep.mubr.msk.f32.mxu1 %vm14391_vm1, %v14390_v8 }
 0x280   : > { %v1144_v27 = vpop.f32.mrf.mxu0 }
 0x282   : > { %v13545_v28 = vpop.f32.mrf.mxu0 }
 0x284   : > { %v1294_v29 = vpop.f32.mrf.mxu0 }
 0x286   : > { %v13555_v30 = vpop.f32.mrf.mxu0 }
 0x288   : > { %v1220_v31 = vpop.f32.mrf.mxu1  ;;  %v1442_v32 = vpop.f32.mrf.mxu0 }
 0x289   : > { %v1221_v33 = vadd.f32 %v1220_v31, %v1144_v27 }
 0x28a   : > { %v13550_v34 = vpop.f32.mrf.mxu1  ;;  %v13565_v35 = vpop.f32.mrf.mxu0 }
 0x28b   : > { %v1295_v36 = vadd.f32 %v1294_v29, %v1221_v33 }
 0x28c   : > { %v1368_v37 = vpop.f32.mrf.mxu1  ;;  %v1597_v38 = vpop.f32.mrf.mxu0 }
 0x28d   : > { %v1369_v39 = vadd.f32 %v1368_v37, %v1295_v36 }
 0x28e   : > { %v13560_v40 = vpop.f32.mrf.mxu1  ;;  %v13575_v41 = vpop.f32.mrf.mxu0 }
 0x28f   : > { %v1443_v42 = vadd.f32 %v1442_v32, %v1369_v39 }
 0x290   : > { %v1514_v43 = vpop.f32.mrf.mxu1  ;;  %v1747_v44 = vpop.f32.mrf.mxu0 }
 0x291   : > { %v1515_v45 = vadd.f32 %v1514_v43, %v1443_v42 }
 0x292   : > { %v13570_v46 = vpop.f32.mrf.mxu1  ;;  %v13585_v47 = vpop.f32.mrf.mxu0 }
 0x293   : > { %v1971_v48 = vmul.f32 0.35355338, %v1515_v45 }
 0x294   : > { %v1673_v49 = vpop.f32.mrf.mxu1  ;;  %v1895_v50 = vpop.f32.mrf.mxu0 }
 0x295   : > { %v1674_v51 = vadd.f32 %v1673_v49, %v1597_v38  ;;  %v1973_v52 = vsel %vm1067_vm2, %v1971_v48, -inf }
 0x296   : > { %v13580_v53 = vpop.f32.mrf.mxu1  ;;  %1974 = vmax.xlane.f32.xlu1 %v1973_v52  ;;  %v13595_v54 = vpop.f32.mrf.mxu0 }
 0x297   : > { %v1748_v55 = vadd.f32 %v1747_v44, %v1674_v51 }
 0x298   : > { %v1821_v56 = vpop.f32.mrf.mxu1 }
 0x299   : > { %v1822_v57 = vadd.f32 %v1821_v56, %v1748_v55 }
 0x29a   : > { %v13590_v58 = vpop.f32.mrf.mxu1 }
 0x29b   : > { %v1896_v59 = vadd.f32 %v1895_v50, %v1822_v57 }
 0x29c   : > { %v1967_v60 = vpop.f32.mrf.mxu1 }
 0x29d   : > { %v1968_v62 = vadd.f32 %v1967_v60, %v1896_v59 }
 0x29e   : > { %v13600_v0 = vpop.f32.mrf.mxu1 }
 0x29f   : > { %v1972_v1 = vmul.f32 0.35355338, %v1968_v62 }
 0x2a1   : > { %v1976_v2 = vsel %vm1067_vm2, %v1972_v1, -inf }
 0x2a2   : > { %1977 = vmax.xlane.f32.xlu1 %v1976_v2 }
 0x2b3   : > { %2001 = vrot.lane.b32.xlu1 %v14714_v61, %s14393_s15 }
 0x31f   : > { %v1975_v3 = vpop.xlane.xlu1 %1974 }
 0x320   : > { %v1979_v4 = vsub.f32 %v1971_v48, %v1975_v3 }
 0x322   : > { %v1981_v5 = vmul.f32 1.442695, %v1979_v4 }
 0x324   : > { %14211 = vpow2.f32 %v1981_v5 }
 0x32b   : > { %v1978_v6 = vpop.xlane.xlu1 %1977 }
 0x32c   : > { %v1980_v7 = vsub.f32 %v1972_v1, %v1978_v6 }
 0x32e   : > { %v1983_v9 = vmul.f32 1.442695, %v1980_v7 }
 0x32f   : > { %v2002_v10 = vpop.permute.xlu1 %2001 }
 0x330   : > { %14213 = vpow2.f32 %v1983_v9  ;;  %v2038_v11 = vand.u32 4294901760, %v2002_v10 }
 0x331   : > { %v14212_v12 = vpop.eup %14211 }
 0x332   : > { %v14771_v13 = vsub.f32 %v2002_v10, %v2038_v11  ;;  %13602 = vmatpush3.msra.mxu0 %v2038_v11  ;;  %v1985_v14 = vsel %vm1067_vm2, %v14212_v12, 0.0 }
 0x333   : > { %1986 = vadd.xlane.f32.xlu0 %v1985_v14  ;;  %13611 = vmatprep.subr.mxu0 %v14390_v8 }
 0x334   : > { %v2116_v15 = vand.u32 4294901760, %v14771_v13 }
 0x336   : > { %v2117_v16 = vsub.f32 %v14771_v13, %v2116_v15 }
 0x338   : > { %v2118_v17 = vand.u32 4294901760, %v2117_v16 }
 0x33a   : > { %13607 = vmatpush3.msra.mxu1 %v2118_v17 }
 0x33b   : > { %13616 = vmatprep.subr.mxu1 %v14390_v8 }
 0x33d   : > { %v14214_v18 = vpop.eup %14213 }
 0x33e   : > { %v1988_v19 = vsel %vm1067_vm2, %v14214_v18, 0.0 }
 0x33f   : > { %1989 = vadd.xlane.f32.xlu1 %v1988_v19 }
 0x349   : > { %3361 = vrot.lane.b32.xlu0 %v14717_v63, %s14394_s23 }
 0x350   : > { %2453 = vrot.lane.b32.xlu1 %v14717_v63, %s14393_s15 }
 0x354   : > { %2907 = vrot.lane.b32.xlu1 %v14714_v61, %s14394_s23  ;;  %s14402_s23 = smov 40  }
 0x358   : > { %2905 = vrot.lane.b32.xlu1 %v14714_v61, %s14395_s17 }
 0x35c   : > { %3359 = vrot.lane.b32.xlu1 %v14717_v63, %s14395_s17 }
 0x3bc   : > { %v1987_v20 = vpop.xlane.xlu0 %1986 }
 0x3bd   : > { %14215 = vrcp.f32 %v1987_v20 }
 0x3c0   : > { %v3362_v49 = vpop.permute.xlu0 %3361 }
 0x3c1   : > { %v3365_v54 = vsel %vm1067_vm2, %v3362_v49, 0 }
 0x3c2   : > { %v14823_v58 = vand.u32 4294901760, %v3365_v54 }
 0x3c4   : > { %v14836_v1 = vsub.f32 %v3365_v54, %v14823_v58 }
 0x3c6   : > { %v3476_v5 = vand.u32 4294901760, %v14836_v1 }
 0x3c8   : > { %v1990_v21 = vpop.xlane.xlu1 %1989  ;;  %v3477_v10 = vsub.f32 %v14836_v1, %v3476_v5 }
 0x3c9   : > { %14217 = vrcp.f32 %v1990_v21 }
 0x3ca   : > { %v14216_v22 = vpop.eup %14215 }
 0x3cb   : > { %v1993_v23 = vmul.f32 %v14216_v22, %v1987_v20 }
 0x3cc   : > { %v2454_v24 = vpop.permute.xlu1 %2453 }
 0x3cd   : > { %v1995_v25 = vsub.f32 2.0, %v1993_v23  ;;  %v2490_v26 = vand.u32 4294901760, %v2454_v24 }
 0x3cf   : > { %v1997_v27 = vmul.f32 %v14216_v22, %v1995_v25  ;;  %v14786_v29 = vsub.f32 %v2454_v24, %v2490_v26 }
 0x3d0   : > { %v2908_v31 = vpop.permute.xlu1 %2907 }
 0x3d1   : > { %v1999_v28 = vmul.f32 %v14212_v12, %v1997_v27  ;;  %v2568_v33 = vand.u32 4294901760, %v14786_v29  ;;  %v2911_v35 = vsel %vm1067_vm2, %v2908_v31, 0 }
 0x3d2   : > { %v14797_v41 = vand.u32 4294901760, %v2911_v35 }
 0x3d3   : > { %v2005_v30 = vsel %vm1067_vm2, %v1999_v28, 0  ;;  %v2569_v40 = vsub.f32 %v14786_v29, %v2568_v33 }
 0x3d4   : > { %v2073_v32 = vand.u32 4294901760, %v2005_v30  ;;  %v14803_v47 = vsub.f32 %v2911_v35, %v14797_v41  ;;  %v2906_v48 = vpop.permute.xlu1 %2905 }
 0x3d5   : > { %v2570_v46 = vand.u32 4294901760, %v2569_v40  ;;  %v2909_v53 = vsel %vm1067_vm2, %v2906_v48, 0 }
 0x3d6   : > { %v14218_v34 = vpop.eup %14217  ;;  %13609 = vmatmul.mubr.f32.vlgmr.msra.gmra.mxu1 %v2073_v32  ;;  %v2074_v36 = vsub.f32 %v2005_v30, %v2073_v32  ;;  %v3022_v52 = vand.u32 4294901760, %v14803_v47  ;;  %v14818_v56 = vand.u32 4294901760, %v2909_v53 }
 0x3d7   : > { %v1994_v37 = vmul.f32 %v14218_v34, %v1990_v21  ;;  %13617 = vmatpush3.msra.mxu1 %v2038_v11  ;;  %13618 = vmatprep.mubr.msk.f32.mxu1 %vm14391_vm1, %v14390_v8 }
 0x3d8   : > { %13626 = vmatprep.subr.mxu1 %v14390_v8  ;;  %v2075_v38 = vand.u32 4294901760, %v2074_v36  ;;  %v3023_v59 = vsub.f32 %v14803_v47, %v3022_v52  ;;  %v2980_v62 = vsub.f32 %v2909_v53, %v14818_v56  ;;  %v3360_v3 = vpop.permute.xlu1 %3359 }
 0x3d9   : > { %v1996_v39 = vsub.f32 2.0, %v1994_v37  ;;  %v3363_v6 = vsel %vm1067_vm2, %v3360_v3, 0 }
 0x3da   : > { %13619 = vmatmul.mubr.f32.vlgmr.msra.gmra.mxu1 %v2075_v38  ;;  %v2076_v42 = vsub.f32 %v2074_v36, %v2075_v38  ;;  %v3024_v2 = vand.u32 4294901760, %v3023_v59  ;;  %v2981_v4 = vand.u32 4294901760, %v2980_v62  ;;  %v3433_v9 = vand.u32 4294901760, %v3363_v6 }
 0x3db   : > { %v1998_v43 = vmul.f32 %v14218_v34, %v1996_v39  ;;  %13627 = vmatpush3.msra.mxu1 %v2038_v11  ;;  %13628 = vmatprep.mubr.msk.f32.mxu1 %vm14391_vm1, %v14390_v8 }
 0x3dc   : > { %13636 = vmatprep.subr.mxu1 %v14390_v8  ;;  %v2077_v44 = vand.u32 4294901760, %v2076_v42  ;;  %v2982_v7 = vsub.f32 %v2980_v62, %v2981_v4  ;;  %v3434_v12 = vsub.f32 %v3363_v6, %v3433_v9 }
 0x3dd   : > { %v2000_v45 = vmul.f32 %v14214_v18, %v1998_v43 }
 0x3de   : > { %13604 = vmatmul.mubr.f32.vlgmr.msra.gmra.mxu0 %v2077_v44  ;;  %13629 = vmatmul.mubr.f32.vlgmr.msra.gmra.mxu1 %v2073_v32  ;;  %v2983_v11 = vand.u32 4294901760, %v2982_v7  ;;  %v3435_v14 = vand.u32 4294901760, %v3434_v12 }
 0x3df   : > { %v2457_v50 = vsel %vm1067_vm2, %v2000_v45, 0  ;;  %13612 = vmatpush3.msra.mxu0 %v14771_v13  ;;  %13637 = vmatpush3.msra.mxu1 %v2570_v46  ;;  %v3478_v13 = vand.u32 4294901760, %v3477_v10 }
 0x3e0   : > { %13613 = vmatprep.mubr.msk.f32.mxu0 %vm14391_vm1, %v14390_v8  ;;  %13621 = vmatprep.subr.mxu0 %v14390_v8  ;;  %v2525_v51 = vand.u32 4294901760, %v2457_v50 }
 0x3e1   : > { %13638 = vmatprep.mubr.msk.f32.mxu1 %vm14391_vm1, %v14390_v8  ;;  %13646 = vmatprep.subr.mxu1 %v14390_v8 }
 0x3e2   : > { %13614 = vmatmul.mubr.f32.vlgmr.msra.gmra.mxu0 %v2074_v36  ;;  %13639 = vmatmul.mubr.f32.vlgmr.msra.gmra.mxu1 %v2525_v51  ;;  %v2526_v55 = vsub.f32 %v2457_v50, %v2525_v51 }
 0x3e3   : > { %13622 = vmatpush3.msra.mxu0 %v2116_v15  ;;  %13647 = vmatpush3.msra.mxu1 %v2490_v26  ;;  %v3436_v15 = vsub.f32 %v3434_v12, %v3435_v14 }
 0x3e4   : > { %13623 = vmatprep.mubr.msk.f32.mxu0 %vm14391_vm1, %v14390_v8  ;;  %13631 = vmatprep.subr.mxu0 %v14390_v8  ;;  %v2527_v57 = vand.u32 4294901760, %v2526_v55 }
 0x3e5   : > { %13648 = vmatprep.mubr.msk.f32.mxu1 %vm14391_vm1, %v14390_v8  ;;  %13656 = vmatprep.subr.mxu1 %v14390_v8  ;;  %v3437_v16 = vand.u32 4294901760, %v3436_v15 }
 0x3e6   : > { %13624 = vmatmul.mubr.f32.vlgmr.msra.gmra.mxu0 %v2073_v32  ;;  %13649 = vmatmul.mubr.f32.vlgmr.msra.gmra.mxu1 %v2527_v57  ;;  %v2528_v60 = vsub.f32 %v2526_v55, %v2527_v57 }
 0x3e7   : > { %13632 = vmatpush3.msra.mxu0 %v2490_v26  ;;  %13657 = vmatpush3.msra.mxu1 %v2490_v26 }
 0x3e8   : > { %13633 = vmatprep.mubr.msk.f32.mxu0 %vm14391_vm1, %v14390_v8  ;;  %13641 = vmatprep.subr.mxu0 %v14390_v8  ;;  %v2529_v0 = vand.u32 4294901760, %v2528_v60 }
 0x3e9   : > { %13658 = vmatprep.mubr.msk.f32.mxu1 %vm14391_vm1, %v14390_v8  ;;  %13666 = vmatprep.subr.mxu1 %v14390_v8 }
 0x3ea   : > { %13634 = vmatmul.mubr.f32.vlgmr.msra.gmra.mxu0 %v2529_v0  ;;  %13659 = vmatmul.mubr.f32.vlgmr.msra.gmra.mxu1 %v2525_v51 }
 0x3eb   : > { %13642 = vmatpush3.msra.mxu0 %v14786_v29  ;;  %13667 = vmatpush3.xpose.msra.mxu1 %v3024_v2 }
 0x3ec   : > { %13643 = vmatprep.mubr.msk.f32.mxu0 %vm14391_vm1, %v14390_v8  ;;  %13651 = vmatprep.subr.mxu0 %v14390_v8 }
 0x3ed   : > { %13668 = vmatprep.mubr.msk.f32.mxu1 %vm14391_vm1, %v14390_v8  ;;  %13676 = vmatprep.subr.mxu1 %v14390_v8 }
 0x3ee   : > { %13644 = vmatmul.mubr.f32.vlgmr.msra.gmra.mxu0 %v2526_v55  ;;  %13669 = vmatmul.mubr.f32.vlgmr.msra.gmra.mxu1 %v14818_v56 }
 0x3ef   : > { %13652 = vmatpush3.msra.mxu0 %v2568_v33  ;;  %13677 = vmatpush3.xpose.msra.mxu1 %v14797_v41 }
 0x3f0   : > { %13653 = vmatprep.mubr.msk.f32.mxu0 %vm14391_vm1, %v14390_v8  ;;  %13661 = vmatprep.subr.mxu0 %v14390_v8 }
 0x3f1   : > { %13678 = vmatprep.mubr.msk.f32.mxu1 %vm14391_vm1, %v14390_v8  ;;  %13686 = vmatprep.subr.mxu1 %v14390_v8 }
 0x3f2   : > { %13654 = vmatmul.mubr.f32.vlgmr.msra.gmra.mxu0 %v2525_v51  ;;  %13679 = vmatmul.mubr.f32.vlgmr.msra.gmra.mxu1 %v2981_v4 }
 0x3f3   : > { %13662 = vmatpush3.xpose.msra.mxu0 %v14797_v41  ;;  %13687 = vmatpush3.xpose.msra.mxu1 %v14797_v41 }
 0x3f4   : > { %13663 = vmatprep.mubr.msk.f32.mxu0 %vm14391_vm1, %v14390_v8  ;;  %13671 = vmatprep.subr.mxu0 %v14390_v8 }
 0x3f5   : > { %13688 = vmatprep.mubr.msk.f32.mxu1 %vm14391_vm1, %v14390_v8  ;;  %13696 = vmatprep.subr.mxu1 %v14390_v8 }
 0x3f6   : > { %13664 = vmatmul.mubr.f32.vlgmr.msra.gmra.mxu0 %v2983_v11  ;;  %13689 = vmatmul.mubr.f32.vlgmr.msra.gmra.mxu1 %v14818_v56 }
 0x3f7   : > { %13672 = vmatpush3.xpose.msra.mxu0 %v14803_v47  ;;  %13697 = vmatpush3.xpose.msra.mxu1 %v3478_v13 }
 0x3f8   : > { %13673 = vmatprep.mubr.msk.f32.mxu0 %vm14391_vm1, %v14390_v8  ;;  %13681 = vmatprep.subr.mxu0 %v14390_v8 }
 0x3f9   : > { %13698 = vmatprep.mubr.msk.f32.mxu1 %vm14391_vm1, %v14390_v8  ;;  %13706 = vmatprep.subr.mxu1 %v14390_v8 }
 0x3fa   : > { %13674 = vmatmul.mubr.f32.vlgmr.msra.gmra.mxu0 %v2980_v62  ;;  %13699 = vmatmul.mubr.f32.vlgmr.msra.gmra.mxu1 %v3433_v9 }
 0x3fb   : > { %13682 = vmatpush3.xpose.msra.mxu0 %v3022_v52  ;;  %13707 = vmatpush3.xpose.msra.mxu1 %v14823_v58 }
 0x3fc   : > { %13683 = vmatprep.mubr.msk.f32.mxu0 %vm14391_vm1, %v14390_v8  ;;  %13691 = vmatprep.subr.mxu0 %v14390_v8 }
 0x3fd   : > { %13708 = vmatprep.mubr.msk.f32.mxu1 %vm14391_vm1, %v14390_v8  ;;  %13716 = vmatprep.subr.mxu1 %v14390_v8 }
 0x3fe   : > { %13684 = vmatmul.mubr.f32.vlgmr.msra.gmra.mxu0 %v14818_v56  ;;  %13709 = vmatmul.mubr.f32.vlgmr.msra.gmra.mxu1 %v3435_v14 }
 0x3ff   : > { %13692 = vmatpush3.xpose.msra.mxu0 %v14823_v58  ;;  %13717 = vmatpush3.xpose.msra.mxu1 %v14823_v58 }
 0x400   : > { %13693 = vmatprep.mubr.msk.f32.mxu0 %vm14391_vm1, %v14390_v8  ;;  %13701 = vmatprep.subr.mxu0 %v14390_v8 }
 0x401   : > { %13718 = vmatprep.mubr.msk.f32.mxu1 %vm14391_vm1, %v14390_v8  ;;  %13726 = vmatprep.subr.mxu1 %v14390_v8 }
 0x402   : > { %13694 = vmatmul.mubr.f32.vlgmr.msra.gmra.mxu0 %v3437_v16  ;;  %13719 = vmatmul.mubr.f32.vlgmr.msra.gmra.mxu1 %v3433_v9 }
 0x403   : > { %13702 = vmatpush3.xpose.msra.mxu0 %v14836_v1  ;;  %13703 = vmatprep.mubr.msk.f32.mxu0 %vm14391_vm1, %v14390_v8 }
 0x404   : > { %13711 = vmatprep.subr.mxu0 %v14390_v8  ;;  %13728 = vmatprep.mubr.msk.f32.mxu1 %vm14391_vm1, %v14390_v8 }
 0x406   : > { %13704 = vmatmul.mubr.f32.vlgmr.msra.gmra.mxu0 %v3434_v12 }
 0x407   : > { %13712 = vmatpush3.xpose.msra.mxu0 %v3476_v5  ;;  %13713 = vmatprep.mubr.msk.f32.mxu0 %vm14391_vm1, %v14390_v8 }
 0x408   : > { %13721 = vmatprep.subr.mxu0 %v14390_v8 }
 0x40a   : > { %13714 = vmatmul.mubr.f32.vlgmr.msra.gmra.mxu0 %v3433_v9 }
 0x40b   : > { %13723 = vmatprep.mubr.msk.f32.mxu0 %vm14391_vm1, %v14390_v8 }
 0x496   : > { %v2155_v17 = vpop.f32.mrf.mxu1 }
 0x498   : > { %v13610_v18 = vpop.f32.mrf.mxu1 }
 0x49a   : > { %v2303_v19 = vpop.f32.mrf.mxu1 }
 0x49c   : > { %v13620_v20 = vpop.f32.mrf.mxu1 }
 0x49e   : > { %v2079_v21 = vpop.f32.mrf.mxu0  ;;  %v2449_v22 = vpop.f32.mrf.mxu1 }
 0x49f   : > { %v2156_v23 = vadd.f32 %v2155_v17, %v2079_v21 }
 0x4a0   : > { %v13605_v24 = vpop.f32.mrf.mxu0  ;;  %v13630_v25 = vpop.f32.mrf.mxu1 }
 0x4a2   : > { %v2229_v26 = vpop.f32.mrf.mxu0  ;;  %v2607_v27 = vpop.f32.mrf.mxu1 }
 0x4a3   : > { %v2230_v28 = vadd.f32 %v2229_v26, %v2156_v23 }
 0x4a4   : > { %v13615_v29 = vpop.f32.mrf.mxu0  ;;  %v13640_v30 = vpop.f32.mrf.mxu1 }
 0x4a5   : > { %v2304_v31 = vadd.f32 %v2303_v19, %v2230_v28 }
 0x4a6   : > { %v2377_v32 = vpop.f32.mrf.mxu0  ;;  %v2755_v33 = vpop.f32.mrf.mxu1 }
 0x4a7   : > { %v2378_v34 = vadd.f32 %v2377_v32, %v2304_v31 }
 0x4a8   : > { %v13625_v35 = vpop.f32.mrf.mxu0  ;;  %v13650_v36 = vpop.f32.mrf.mxu1 }
 0x4a9   : > { %v14906_v37 = vadd.f32 %v2449_v22, %v2378_v34 }
 0x4aa   : > { %v2531_v38 = vpop.f32.mrf.mxu0  ;;  %v2901_v39 = vpop.f32.mrf.mxu1 }
 0x4ab   : > { %v2608_v40 = vadd.f32 %v2607_v27, %v2531_v38 }
 0x4ac   : > { %v13635_v41 = vpop.f32.mrf.mxu0  ;;  %v13660_v42 = vpop.f32.mrf.mxu1 }
 0x4ae   : > { %v2681_v43 = vpop.f32.mrf.mxu0  ;;  %v3061_v44 = vpop.f32.mrf.mxu1 }
 0x4af   : > { %v2682_v45 = vadd.f32 %v2681_v43, %v2608_v40 }
 0x4b0   : > { %v13645_v46 = vpop.f32.mrf.mxu0  ;;  %v13670_v47 = vpop.f32.mrf.mxu1 }
 0x4b1   : > { %v2756_v48 = vadd.f32 %v2755_v33, %v2682_v45 }
 0x4b2   : > { %v2829_v49 = vpop.f32.mrf.mxu0  ;;  %v3209_v50 = vpop.f32.mrf.mxu1 }
 0x4b3   : > { %v2830_v51 = vadd.f32 %v2829_v49, %v2756_v48 }
 0x4b4   : > { %v13655_v52 = vpop.f32.mrf.mxu0  ;;  %v13680_v53 = vpop.f32.mrf.mxu1 }
 0x4b5   : > { %v14908_v54 = vadd.f32 %v2901_v39, %v2830_v51 }
 0x4b6   : > { %v2985_v55 = vpop.f32.mrf.mxu0  ;;  %v3355_v56 = vpop.f32.mrf.mxu1 }
 0x4b7   : > { %v3062_v59 = vadd.f32 %v3061_v44, %v2985_v55 }
 0x4b8   : > { %v13665_v57 = vpop.f32.mrf.mxu0  ;;  %v13690_v58 = vpop.f32.mrf.mxu1 }
 0x4ba   : > { %v3135_v60 = vpop.f32.mrf.mxu0  ;;  %v3515_v62 = vpop.f32.mrf.mxu1 }
 0x4bb   : > { %v3136_v0 = vadd.f32 %v3135_v60, %v3062_v59 }
 0x4bc   : > { %v13675_v1 = vpop.f32.mrf.mxu0  ;;  %v13700_v2 = vpop.f32.mrf.mxu1 }
 0x4bd   : > { %v3210_v3 = vadd.f32 %v3209_v50, %v3136_v0 }
 0x4be   : > { %v3283_v4 = vpop.f32.mrf.mxu0  ;;  %v3663_v5 = vpop.f32.mrf.mxu1 }
 0x4bf   : > { %v3284_v6 = vadd.f32 %v3283_v4, %v3210_v3 }
 0x4c0   : > { %v13685_v7 = vpop.f32.mrf.mxu0  ;;  %v13710_v9 = vpop.f32.mrf.mxu1 }
 0x4c1   : > { %v3356_v10 = vadd.f32 %v3355_v56, %v3284_v6 }
 0x4c2   : > { %v3439_v11 = vpop.f32.mrf.mxu0  ;;  %v3809_v12 = vpop.f32.mrf.mxu1 }
 0x4c3   : > { %v3813_v13 = vmul.f32 0.35355338, %v3356_v10  ;;  %v3516_v16 = vadd.f32 %v3515_v62, %v3439_v11 }
 0x4c4   : > { %v13695_v14 = vpop.f32.mrf.mxu0  ;;  %v13720_v15 = vpop.f32.mrf.mxu1 }
 0x4c5   : > { %v3815_v17 = vsel %vm1067_vm2, %v3813_v13, -inf  ;;  %v1061_v15 = vld [vmem:[%s16070_s3 + $0x8] sm:$0xff] }
 0x4c6   : > { %3816 = vmax.xlane.f32.xlu1 %v3815_v17  ;;  %v3589_v18 = vpop.f32.mrf.mxu0 }
 0x4c7   : > { %v3590_v19 = vadd.f32 %v3589_v18, %v3516_v16  ;;  %v14955_v16 = vand.u32 4294901760, %v1061_v15 }
 0x4c8   : > { %v13705_v20 = vpop.f32.mrf.mxu0 }
 0x4c9   : > { %v3664_v21 = vadd.f32 %v3663_v5, %v3590_v19  ;;  %v14958_v17 = vsub.f32 %v1061_v15, %v14955_v16 }
 0x4ca   : > { %v3737_v22 = vpop.f32.mrf.mxu0 }
 0x4cb   : > { %v3738_v23 = vadd.f32 %v3737_v22, %v3664_v21  ;;  %v14963_v18 = vand.u32 4294901760, %v14958_v17 }
 0x4cc   : > { %v13715_v24 = vpop.f32.mrf.mxu0 }
 0x4cd   : > { %v3810_v25 = vadd.f32 %v3809_v12, %v3738_v23  ;;  %v4873_v19 = vsub.f32 %v14958_v17, %v14963_v18 }
 0x4cf   : > { %v3814_v26 = vmul.f32 0.35355338, %v3810_v25  ;;  %v4874_v20 = vand.u32 4294901760, %v4873_v19 }
 0x4d1   : > { %v3818_v27 = vsel %vm1067_vm2, %v3814_v26, -inf }
 0x4d2   : > { %3819 = vmax.xlane.f32.xlu0 %v3818_v27 }
 0x4e8   : > { %4295 = vrot.lane.b32.xlu0 %v14717_v63, %s14396_s13 }
 0x4ec   : > { %6193 = vrot.lane.b32.xlu0 %v14717_v63, %s14397_s30 }
 0x54f   : > { %v3817_v28 = vpop.xlane.xlu1 %3816 }
 0x550   : > { %v3821_v29 = vsub.f32 %v3813_v13, %v3817_v28 }
 0x552   : > { %v3823_v30 = vmul.f32 1.442695, %v3821_v29 }
 0x554   : > { %14219 = vpow2.f32 %v3823_v30 }
 0x55b   : > { %v3820_v31 = vpop.xlane.xlu0 %3819 }
 0x55c   : > { %v3822_v32 = vsub.f32 %v3814_v26, %v3820_v31 }
 0x55e   : > { %v3825_v33 = vmul.f32 1.442695, %v3822_v32 }
 0x55f   : > { %v4296_v43 = vpop.permute.xlu0 %4295 }
 0x560   : > { %14221 = vpow2.f32 %v3825_v33  ;;  %v4332_v47 = vand.u32 4294901760, %v4296_v43 }
 0x561   : > { %v14220_v34 = vpop.eup %14219 }
 0x562   : > { %v3827_v35 = vsel %vm1067_vm2, %v14220_v34, 0.0  ;;  %v4409_v52 = vsub.f32 %v4296_v43, %v4332_v47 }
 0x563   : > { %3828 = vadd.xlane.f32.xlu1 %v3827_v35 }
 0x564   : > { %v4410_v60 = vand.u32 4294901760, %v4409_v52 }
 0x566   : > { %v4411_v3 = vsub.f32 %v4409_v52, %v4410_v60 }
 0x568   : > { %v4412_v7 = vand.u32 4294901760, %v4411_v3 }
 0x56d   : > { %v14222_v36 = vpop.eup %14221 }
 0x56e   : > { %v3830_v38 = vsel %vm1067_vm2, %v14222_v36, 0.0 }
 0x56f   : > { %3831 = vadd.xlane.f32.xlu1 %v3830_v38 }
 0x580   : > { %3843 = vrot.lane.b32.xlu1 %v14714_v61, %s14396_s13 }
 0x584   : > { %5739 = vrot.lane.b32.xlu1 %v14714_v61, %s14397_s30 }
 0x588   : > { %5737 = vrot.lane.b32.xlu1 %v14714_v61, %s14398_s18 }
 0x58c   : > { %6191 = vrot.lane.b32.xlu1 %v14717_v63, %s14398_s18 }
 0x5ec   : > { %v3829_v39 = vpop.xlane.xlu1 %3828 }
 0x5ed   : > { %14223 = vrcp.f32 %v3829_v39 }
 0x5f8   : > { %v3832_v40 = vpop.xlane.xlu1 %3831 }
 0x5f9   : > { %14225 = vrcp.f32 %v3832_v40 }
 0x5fa   : > { %v14224_v41 = vpop.eup %14223 }
 0x5fb   : > { %v3835_v42 = vmul.f32 %v14224_v41, %v3829_v39 }
 0x5fc   : > { %v3844_v44 = vpop.permute.xlu1 %3843 }
 0x5fd   : > { %v3837_v45 = vsub.f32 2.0, %v3835_v42  ;;  %v3880_v46 = vand.u32 4294901760, %v3844_v44  ;;  %v1060_v42 = vld [vmem:[%s16070_s3] sm:$0xff] }
 0x5ff   : > { %v3839_v48 = vmul.f32 %v14224_v41, %v3837_v45  ;;  %v3957_v49 = vsub.f32 %v3844_v44, %v3880_v46  ;;  %13722 = vmatpush3.msra.mxu0 %v3880_v46 }
 0x600   : > { %13731 = vmatprep.subr.mxu0 %v14390_v8 }
 0x601   : > { %v3841_v50 = vmul.f32 %v14220_v34, %v3839_v48  ;;  %v3958_v51 = vand.u32 4294901760, %v3957_v49 }
 0x603   : > { %v3847_v53 = vsel %vm1067_vm2, %v3841_v50, 0  ;;  %v3959_v55 = vsub.f32 %v3957_v49, %v3958_v51 }
 0x604   : > { %v3915_v56 = vand.u32 4294901760, %v3847_v53 }
 0x605   : > { %v3960_v57 = vand.u32 4294901760, %v3959_v55 }
 0x606   : > { %v14226_v58 = vpop.eup %14225  ;;  %v3916_v59 = vsub.f32 %v3847_v53, %v3915_v56 }
 0x607   : > { %v3836_v62 = vmul.f32 %v14226_v58, %v3832_v40  ;;  %13727 = vmatpush3.msra.mxu1 %v3960_v57 }
 0x608   : > { %13729 = vmatmul.mubr.f32.vlgmr.msra.gmra.mxu1 %v3915_v56  ;;  %13736 = vmatprep.subr.mxu1 %v14390_v8  ;;  %v3917_v0 = vand.u32 4294901760, %v3916_v59 }
 0x609   : > { %v3838_v1 = vsub.f32 2.0, %v3836_v62  ;;  %13737 = vmatpush3.msra.mxu1 %v3880_v46  ;;  %13738 = vmatprep.mubr.msk.f32.mxu1 %vm14391_vm1, %v14390_v8 }
 0x60a   : > { %13746 = vmatprep.subr.mxu1 %v14390_v8  ;;  %v3918_v2 = vsub.f32 %v3916_v59, %v3917_v0 }
 0x60b   : > { %v3840_v4 = vmul.f32 %v14226_v58, %v3838_v1 }
 0x60c   : > { %13739 = vmatmul.mubr.f32.vlgmr.msra.gmra.mxu1 %v3917_v0  ;;  %v3919_v5 = vand.u32 4294901760, %v3918_v2 }
 0x60d   : > { %v3842_v6 = vmul.f32 %v14222_v36, %v3840_v4  ;;  %13747 = vmatpush3.msra.mxu1 %v3880_v46  ;;  %13748 = vmatprep.mubr.msk.f32.mxu1 %vm14391_vm1, %v14390_v8 }
 0x60e   : > { %13724 = vmatmul.mubr.f32.vlgmr.msra.gmra.mxu0 %v3919_v5  ;;  %13756 = vmatprep.subr.mxu1 %v14390_v8  ;;  %v5243_v5 = vsel %vm1067_vm2, %v14906_v37, 0 }
 0x60f   : > { %v4299_v9 = vsel %vm1067_vm2, %v3842_v6, 0  ;;  %13732 = vmatpush3.msra.mxu0 %v3957_v49  ;;  %13733 = vmatprep.mubr.msk.f32.mxu0 %vm14391_vm1, %v14390_v8  ;;  %v14975_v49 = vand.u32 4294901760, %v1060_v42  ;;  %v5740_v6 = vpop.permute.xlu1 %5739 }
 0x610   : > { %13749 = vmatmul.mubr.f32.vlgmr.msra.gmra.mxu1 %v3915_v56  ;;  %13741 = vmatprep.subr.mxu0 %v14390_v8  ;;  %v4367_v10 = vand.u32 4294901760, %v4299_v9 }
 0x611   : > { %13757 = vmatpush3.msra.mxu1 %v4412_v7  ;;  %13758 = vmatprep.mubr.msk.f32.mxu1 %vm14391_vm1, %v14390_v8  ;;  %v14980_v58 = vsub.f32 %v1060_v42, %v14975_v49 }
 0x612   : > { %13734 = vmatmul.mubr.f32.vlgmr.msra.gmra.mxu0 %v3916_v59  ;;  %13766 = vmatprep.subr.mxu1 %v14390_v8  ;;  %v4368_v11 = vsub.f32 %v4299_v9, %v4367_v10 }
 0x613   : > { %13742 = vmatpush3.msra.mxu0 %v3958_v51  ;;  %13743 = vmatprep.mubr.msk.f32.mxu0 %vm14391_vm1, %v14390_v8  ;;  %v14983_v3 = vand.u32 4294901760, %v14980_v58 }
 0x614   : > { %13759 = vmatmul.mubr.f32.vlgmr.msra.gmra.mxu1 %v4367_v10  ;;  %13751 = vmatprep.subr.mxu0 %v14390_v8  ;;  %v4369_v12 = vand.u32 4294901760, %v4368_v11 }
 0x615   : > { %13767 = vmatpush3.msra.mxu1 %v4332_v47  ;;  %13768 = vmatprep.mubr.msk.f32.mxu1 %vm14391_vm1, %v14390_v8 }
 0x616   : > { %13744 = vmatmul.mubr.f32.vlgmr.msra.gmra.mxu0 %v3915_v56  ;;  %13776 = vmatprep.subr.mxu1 %v14390_v8  ;;  %v4370_v13 = vsub.f32 %v4368_v11, %v4369_v12 }
 0x617   : > { %13752 = vmatpush3.msra.mxu0 %v4332_v47  ;;  %13753 = vmatprep.mubr.msk.f32.mxu0 %vm14391_vm1, %v14390_v8 }
 0x618   : > { %13769 = vmatmul.mubr.f32.vlgmr.msra.gmra.mxu1 %v4369_v12  ;;  %13761 = vmatprep.subr.mxu0 %v14390_v8  ;;  %v4371_v14 = vand.u32 4294901760, %v4370_v13  ;;  %v5246_v12 = vsel %vm1067_vm2, %v14908_v54, 0  ;;  %v5743_v13 = vsel %vm1067_vm2, %v5740_v6, 0 }
 0x619   : > { %13777 = vmatpush3.msra.mxu1 %v4332_v47  ;;  %13778 = vmatprep.mubr.msk.f32.mxu1 %vm14391_vm1, %v14390_v8  ;;  %v14996_v37 = vand.u32 4294901760, %v5246_v12 }
 0x61a   : > { %13754 = vmatmul.mubr.f32.vlgmr.msra.gmra.mxu0 %v4371_v14  ;;  %13786 = vmatprep.subr.mxu1 %v4874_v20 }
 0x61b   : > { %13762 = vmatpush3.msra.mxu0 %v4409_v52  ;;  %13763 = vmatprep.mubr.msk.f32.mxu0 %vm14391_vm1, %v14390_v8  ;;  %v5325_v54 = vsub.f32 %v5246_v12, %v14996_v37 }
 0x61c   : > { %13779 = vmatmul.mubr.f32.vlgmr.msra.gmra.mxu1 %v4367_v10  ;;  %13771 = vmatprep.subr.mxu0 %v14390_v8 }
 0x61d   : > { %13787 = vmatpush3.msra.mxu1 %v4874_v20 }
 0x61e   : > { %13764 = vmatmul.mubr.f32.vlgmr.msra.gmra.mxu0 %v4368_v11  ;;  %13796 = vmatprep.subr.mxu1 %v14955_v16  ;;  %v14990_v11 = vand.u32 4294901760, %v5243_v5 }
 0x61f   : > { %13772 = vmatpush3.msra.mxu0 %v4410_v60  ;;  %13773 = vmatprep.mubr.msk.f32.mxu0 %vm14391_vm1, %v14390_v8 }
 0x620   : > { %13781 = vmatprep.subr.mxu0 %v14955_v16  ;;  %v5315_v20 = vsub.f32 %v5243_v5, %v14990_v11 }
 0x622   : > { %13774 = vmatmul.mubr.f32.vlgmr.msra.gmra.mxu0 %v4367_v10  ;;  %v5368_v10 = vsub.f32 %v14980_v58, %v14983_v3 }
 0x623   : > { %13782 = vmatpush3.msra.mxu0 %v14955_v16 }
 0x624   : > { %13791 = vmatprep.subr.mxu0 %v14958_v17  ;;  %v5369_v19 = vand.u32 4294901760, %v5368_v10 }
 0x6c8   : > { %v3997_v21 = vpop.f32.mrf.mxu1 }
 0x6ca   : > { %v13730_v22 = vpop.f32.mrf.mxu1 }
 0x6cc   : > { %v4145_v23 = vpop.f32.mrf.mxu1 }
 0x6ce   : > { %v3921_v24 = vpop.f32.mrf.mxu0  ;;  %v13740_v25 = vpop.f32.mrf.mxu1 }
 0x6cf   : > { %v3998_v28 = vadd.f32 %v3997_v21, %v3921_v24  ;;  %v15000_v21 = vand.u32 4294901760, %v5743_v13  ;;  %v5316_v25 = vand.u32 4294901760, %v5315_v20 }
 0x6d0   : > { %v13725_v26 = vpop.f32.mrf.mxu0  ;;  %v4291_v27 = vpop.f32.mrf.mxu1 }
 0x6d1   : > { %v15006_v24 = vsub.f32 %v5743_v13, %v15000_v21  ;;  %v5738_v26 = vpop.permute.xlu1 %5737 }
 0x6d2   : > { %v4071_v29 = vpop.f32.mrf.mxu0  ;;  %v13750_v30 = vpop.f32.mrf.mxu1 }
 0x6d3   : > { %v4072_v31 = vadd.f32 %v4071_v29, %v3998_v28  ;;  %v5326_v28 = vand.u32 4294901760, %v5325_v54  ;;  %v5741_v29 = vsel %vm1067_vm2, %v5738_v26, 0  ;;  %v5317_v30 = vsub.f32 %v5315_v20, %v5316_v25 }
 0x6d4   : > { %v13735_v32 = vpop.f32.mrf.mxu0  ;;  %v4449_v33 = vpop.f32.mrf.mxu1 }
 0x6d5   : > { %v4146_v34 = vadd.f32 %v4145_v23, %v4072_v31  ;;  %v5327_v32 = vsub.f32 %v5325_v54, %v5326_v28 }
 0x6d6   : > { %v4219_v35 = vpop.f32.mrf.mxu0  ;;  %v13760_v36 = vpop.f32.mrf.mxu1 }
 0x6d7   : > { %v4220_v38 = vadd.f32 %v4219_v35, %v4146_v34  ;;  %v5318_v35 = vand.u32 4294901760, %v5317_v30  ;;  %v5328_v36 = vand.u32 4294901760, %v5327_v32 }
 0x6d8   : > { %v13745_v39 = vpop.f32.mrf.mxu0  ;;  %v4597_v40 = vpop.f32.mrf.mxu1 }
 0x6d9   : > { %v4292_v41 = vadd.f32 %v4291_v27, %v4220_v38  ;;  %v6194_v27 = vpop.permute.xlu0 %6193 }
 0x6da   : > { %v4373_v43 = vpop.f32.mrf.mxu0  ;;  %v13770_v44 = vpop.f32.mrf.mxu1  ;;  %v6197_v31 = vsel %vm1067_vm2, %v6194_v27, 0 }
 0x6db   : > { %v4748_v45 = vsel %vm1067_vm2, %v4292_v41, 0  ;;  %v4450_v50 = vadd.f32 %v4449_v33, %v4373_v43  ;;  %v15021_v33 = vand.u32 4294901760, %v6197_v31 }
 0x6dc   : > { %v14973_v46 = vand.u32 4294901760, %v4748_v45  ;;  %v13755_v47 = vpop.f32.mrf.mxu0  ;;  %v4743_v48 = vpop.f32.mrf.mxu1 }
 0x6dd   : > { %v15033_v38 = vsub.f32 %v6197_v31, %v15021_v33 }
 0x6de   : > { %v4820_v51 = vsub.f32 %v4748_v45, %v14973_v46  ;;  %v4523_v52 = vpop.f32.mrf.mxu0  ;;  %v13780_v53 = vpop.f32.mrf.mxu1  ;;  %13788 = vmatprep.mubr.f32.mxu1 %v14973_v46 }
 0x6df   : > { %v4524_v55 = vadd.f32 %v4523_v52, %v4450_v50  ;;  %v6308_v42 = vand.u32 4294901760, %v15033_v38 }
 0x6e0   : > { %v13765_v56 = vpop.f32.mrf.mxu0  ;;  %v4821_v57 = vand.u32 4294901760, %v4820_v51 }
 0x6e1   : > { %v4598_v59 = vadd.f32 %v4597_v40, %v4524_v55  ;;  %v6192_v40 = vpop.permute.xlu1 %6191 }
 0x6e2   : > { %v4671_v60 = vpop.f32.mrf.mxu0  ;;  %v4822_v62 = vsub.f32 %v4820_v51, %v4821_v57  ;;  %v6195_v43 = vsel %vm1067_vm2, %v6192_v40, 0 }
 0x6e3   : > { %v4672_v0 = vadd.f32 %v4671_v60, %v4598_v59  ;;  %v6265_v45 = vand.u32 4294901760, %v6195_v43 }
 0x6e4   : > { %v13775_v1 = vpop.f32.mrf.mxu0  ;;  %v4823_v2 = vand.u32 4294901760, %v4822_v62 }
 0x6e5   : > { %v4744_v4 = vadd.f32 %v4743_v48, %v4672_v0  ;;  %v6266_v48 = vsub.f32 %v6195_v43, %v6265_v45 }
 0x6e6   : > { %13783 = vmatprep.mubr.f32.mxu0 %v4823_v2 }
 0x6e7   : > { %v4751_v7 = vsel %vm1067_vm2, %v4744_v4, 0  ;;  %v6267_v50 = vand.u32 4294901760, %v6266_v48 }
 0x6e8   : > { %v4829_v9 = vand.u32 4294901760, %v4751_v7 }
 0x6ea   : > { %v4830_v14 = vsub.f32 %v4751_v7, %v4829_v9  ;;  %13789 = vmatmul.mubr.f32.vlgmr.msra.gmra.mxu1 %v4829_v9 }
 0x6eb   : > { %13798 = vmatprep.mubr.f32.mxu1 %v4821_v57  ;;  %13797 = vmatpush3.msra.mxu1 %v14955_v16 }
 0x6ec   : > { %v4831_v15 = vand.u32 4294901760, %v4830_v14  ;;  %13806 = vmatprep.subr.mxu1 %v14955_v16 }
 0x6ee   : > { %13799 = vmatmul.mubr.f32.vlgmr.msra.gmra.mxu1 %v4831_v15  ;;  %v4832_v22 = vsub.f32 %v4830_v14, %v4831_v15 }
 0x6ef   : > { %13808 = vmatprep.mubr.f32.mxu1 %v14973_v46  ;;  %13807 = vmatpush3.msra.mxu1 %v14955_v16  ;;  %v5854_v16 = vand.u32 4294901760, %v15006_v24 }
 0x6f0   : > { %v4833_v23 = vand.u32 4294901760, %v4832_v22  ;;  %13816 = vmatprep.subr.mxu1 %v5369_v19 }
 0x6f1   : > { %v5855_v34 = vsub.f32 %v15006_v24, %v5854_v16 }
 0x6f2   : > { %13784 = vmatmul.mubr.f32.vlgmr.msra.gmra.mxu0 %v4833_v23  ;;  %13809 = vmatmul.mubr.f32.vlgmr.msra.gmra.mxu1 %v4829_v9 }
 0x6f3   : > { %13792 = vmatpush3.msra.mxu0 %v14958_v17  ;;  %13793 = vmatprep.mubr.f32.mxu0 %v4820_v51  ;;  %v15018_v17 = vand.u32 4294901760, %v5741_v29  ;;  %v5856_v39 = vand.u32 4294901760, %v5855_v34  ;;  %v6268_v51 = vsub.f32 %v6266_v48, %v6267_v50 }
 0x6f4   : > { %13818 = vmatprep.mubr.f32.mxu1 %v14990_v11  ;;  %13817 = vmatpush3.msra.mxu1 %v5369_v19 }
 0x6f5   : > { %13801 = vmatprep.subr.mxu0 %v14963_v18  ;;  %13826 = vmatprep.subr.mxu1 %v14975_v49  ;;  %v6269_v52 = vand.u32 4294901760, %v6268_v51 }
 0x6f6   : > { %13794 = vmatmul.mubr.f32.vlgmr.msra.gmra.mxu0 %v4830_v14  ;;  %13819 = vmatmul.mubr.f32.vlgmr.msra.gmra.mxu1 %v14996_v37 }
 0x6f7   : > { %13802 = vmatpush3.msra.mxu0 %v14963_v18  ;;  %13803 = vmatprep.mubr.f32.mxu0 %v14973_v46  ;;  %v5812_v18 = vsub.f32 %v5741_v29, %v15018_v17  ;;  %v6309_v46 = vsub.f32 %v15033_v38, %v6308_v42 }
 0x6f8   : > { %13828 = vmatprep.mubr.f32.mxu1 %v5316_v25  ;;  %13827 = vmatpush3.msra.mxu1 %v14975_v49 }
 0x6f9   : > { %13811 = vmatprep.subr.mxu0 %v14975_v49  ;;  %13836 = vmatprep.subr.mxu1 %v14975_v49  ;;  %v5813_v41 = vand.u32 4294901760, %v5812_v18 }
 0x6fa   : > { %13804 = vmatmul.mubr.f32.vlgmr.msra.gmra.mxu0 %v4829_v9  ;;  %13829 = vmatmul.mubr.f32.vlgmr.msra.gmra.mxu1 %v5326_v28 }
 0x6fb   : > { %13812 = vmatpush3.msra.mxu0 %v14975_v49  ;;  %13813 = vmatprep.mubr.f32.mxu0 %v5318_v35  ;;  %v5814_v44 = vsub.f32 %v5812_v18, %v5813_v41 }
 0x6fc   : > { %13838 = vmatprep.mubr.f32.mxu1 %v14990_v11  ;;  %13837 = vmatpush3.msra.mxu1 %v14975_v49  ;;  %v6310_v49 = vand.u32 4294901760, %v6309_v46 }
 0x6fd   : > { %13846 = vmatprep.subr.mxu1 %v14390_v8  ;;  %13821 = vmatprep.subr.mxu0 %v14980_v58  ;;  %v5815_v47 = vand.u32 4294901760, %v5814_v44 }
 0x6fe   : > { %13814 = vmatmul.mubr.f32.vlgmr.msra.gmra.mxu0 %v5328_v36  ;;  %13839 = vmatmul.mubr.f32.vlgmr.msra.gmra.mxu1 %v14996_v37 }
 0x6ff   : > { %13847 = vmatpush3.xpose.msra.mxu1 %v5856_v39  ;;  %13822 = vmatpush3.msra.mxu0 %v14980_v58 }
 0x700   : > { %13823 = vmatprep.mubr.f32.mxu0 %v5315_v20  ;;  %13848 = vmatprep.mubr.msk.f32.mxu1 %vm14391_vm1, %v14390_v8 }
 0x701   : > { %13856 = vmatprep.subr.mxu1 %v14390_v8  ;;  %13831 = vmatprep.subr.mxu0 %v14983_v3 }
 0x702   : > { %13824 = vmatmul.mubr.f32.vlgmr.msra.gmra.mxu0 %v5325_v54  ;;  %13849 = vmatmul.mubr.f32.vlgmr.msra.gmra.mxu1 %v15018_v17 }
 0x703   : > { %13857 = vmatpush3.xpose.msra.mxu1 %v15000_v21  ;;  %13832 = vmatpush3.msra.mxu0 %v14983_v3 }
 0x704   : > { %13833 = vmatprep.mubr.f32.mxu0 %v14990_v11  ;;  %13841 = vmatprep.subr.mxu0 %v14390_v8 }
 0x705   : > { %13858 = vmatprep.mubr.msk.f32.mxu1 %vm14391_vm1, %v14390_v8  ;;  %13866 = vmatprep.subr.mxu1 %v14390_v8 }
 0x706   : > { %13834 = vmatmul.mubr.f32.vlgmr.msra.gmra.mxu0 %v14996_v37  ;;  %13859 = vmatmul.mubr.f32.vlgmr.msra.gmra.mxu1 %v5813_v41 }
 0x707   : > { %13842 = vmatpush3.xpose.msra.mxu0 %v15000_v21  ;;  %13867 = vmatpush3.xpose.msra.mxu1 %v15000_v21 }
 0x708   : > { %13843 = vmatprep.mubr.msk.f32.mxu0 %vm14391_vm1, %v14390_v8  ;;  %13851 = vmatprep.subr.mxu0 %v14390_v8 }
 0x709   : > { %13868 = vmatprep.mubr.msk.f32.mxu1 %vm14391_vm1, %v14390_v8  ;;  %13876 = vmatprep.subr.mxu1 %v14390_v8 }
 0x70a   : > { %13844 = vmatmul.mubr.f32.vlgmr.msra.gmra.mxu0 %v5815_v47  ;;  %13869 = vmatmul.mubr.f32.vlgmr.msra.gmra.mxu1 %v15018_v17 }
 0x70b   : > { %13852 = vmatpush3.xpose.msra.mxu0 %v15006_v24  ;;  %13877 = vmatpush3.xpose.msra.mxu1 %v6310_v49 }
 0x70c   : > { %13853 = vmatprep.mubr.msk.f32.mxu0 %vm14391_vm1, %v14390_v8  ;;  %13861 = vmatprep.subr.mxu0 %v14390_v8 }
 0x70d   : > { %13878 = vmatprep.mubr.msk.f32.mxu1 %vm14391_vm1, %v14390_v8  ;;  %13886 = vmatprep.subr.mxu1 %v14390_v8 }
 0x70e   : > { %13854 = vmatmul.mubr.f32.vlgmr.msra.gmra.mxu0 %v5812_v18  ;;  %13879 = vmatmul.mubr.f32.vlgmr.msra.gmra.mxu1 %v6265_v45 }
 0x70f   : > { %13862 = vmatpush3.xpose.msra.mxu0 %v5854_v16  ;;  %13887 = vmatpush3.xpose.msra.mxu1 %v15021_v33 }
 0x710   : > { %13863 = vmatprep.mubr.msk.f32.mxu0 %vm14391_vm1, %v14390_v8  ;;  %13871 = vmatprep.subr.mxu0 %v14390_v8 }
 0x711   : > { %13888 = vmatprep.mubr.msk.f32.mxu1 %vm14391_vm1, %v14390_v8  ;;  %13896 = vmatprep.subr.mxu1 %v14390_v8 }
 0x712   : > { %13864 = vmatmul.mubr.f32.vlgmr.msra.gmra.mxu0 %v15018_v17  ;;  %13889 = vmatmul.mubr.f32.vlgmr.msra.gmra.mxu1 %v6267_v50 }
 0x713   : > { %13872 = vmatpush3.xpose.msra.mxu0 %v15021_v33  ;;  %13897 = vmatpush3.xpose.msra.mxu1 %v15021_v33 }
 0x714   : > { %13873 = vmatprep.mubr.msk.f32.mxu0 %vm14391_vm1, %v14390_v8  ;;  %13881 = vmatprep.subr.mxu0 %v14390_v8 }
 0x715   : > { %13898 = vmatprep.mubr.msk.f32.mxu1 %vm14391_vm1, %v14390_v8  ;;  %13906 = vmatprep.subr.mxu1 %v14390_v8 }
 0x716   : > { %13874 = vmatmul.mubr.f32.vlgmr.msra.gmra.mxu0 %v6269_v52  ;;  %13899 = vmatmul.mubr.f32.vlgmr.msra.gmra.mxu1 %v6265_v45 }
 0x717   : > { %13882 = vmatpush3.xpose.msra.mxu0 %v15033_v38  ;;  %13883 = vmatprep.mubr.msk.f32.mxu0 %vm14391_vm1, %v14390_v8 }
 0x718   : > { %13891 = vmatprep.subr.mxu0 %v14390_v8  ;;  %13908 = vmatprep.mubr.msk.f32.mxu1 %vm14391_vm1, %v14390_v8 }
 0x71a   : > { %13884 = vmatmul.mubr.f32.vlgmr.msra.gmra.mxu0 %v6266_v48 }
 0x71b   : > { %13892 = vmatpush3.xpose.msra.mxu0 %v6308_v42  ;;  %13893 = vmatprep.mubr.msk.f32.mxu0 %vm14391_vm1, %v14390_v8 }
 0x71c   : > { %13901 = vmatprep.subr.mxu0 %v14390_v8 }
 0x71e   : > { %13894 = vmatmul.mubr.f32.vlgmr.msra.gmra.mxu0 %v6265_v45 }
 0x71f   : > { %13903 = vmatprep.mubr.msk.f32.mxu0 %vm14391_vm1, %v14390_v8 }
 0x7aa   : > { %v13790_v53 = vpop.f32.mrf.mxu1 }
 0x7ac   : > { %v4911_v55 = vpop.f32.mrf.mxu1 }
 0x7ae   : > { %v13800_v56 = vpop.f32.mrf.mxu1 }
 0x7b0   : > { %v5072_v57 = vpop.f32.mrf.mxu1 }
 0x7b2   : > { %v13785_v58 = vpop.f32.mrf.mxu0  ;;  %v13810_v59 = vpop.f32.mrf.mxu1 }
 0x7b3   : > { %v4918_v60 = vadd.f32 %v13790_v53, %v13785_v58 }
 0x7b4   : > { %v4825_v62 = vpop.f32.mrf.mxu0  ;;  %v5232_v0 = vpop.f32.mrf.mxu1 }
 0x7b5   : > { %v4912_v1 = vadd.f32 %v4911_v55, %v4825_v62 }
 0x7b6   : > { %v13795_v2 = vpop.f32.mrf.mxu0  ;;  %v13820_v3 = vpop.f32.mrf.mxu1 }
 0x7b7   : > { %v4999_v4 = vadd.f32 %v13795_v2, %v4918_v60 }
 0x7b8   : > { %v4991_v5 = vpop.f32.mrf.mxu0  ;;  %v5406_v6 = vpop.f32.mrf.mxu1 }
 0x7b9   : > { %v4992_v7 = vadd.f32 %v4991_v5, %v4912_v1  ;;  %v5081_v9 = vadd.f32 %v13800_v56, %v4999_v4 }
 0x7ba   : > { %v13805_v10 = vpop.f32.mrf.mxu0  ;;  %v13830_v11 = vpop.f32.mrf.mxu1 }
 0x7bb   : > { %v5161_v12 = vadd.f32 %v13805_v10, %v5081_v9  ;;  %v5073_v13 = vadd.f32 %v5072_v57, %v4992_v7 }
 0x7bc   : > { %v5154_v14 = vpop.f32.mrf.mxu0  ;;  %v5567_v37 = vpop.f32.mrf.mxu1 }
 0x7bd   : > { %v5155_v15 = vadd.f32 %v5154_v14, %v5073_v13  ;;  %v5239_v19 = vadd.f32 %v13810_v59, %v5161_v12 }
 0x7be   : > { %v13815_v20 = vpop.f32.mrf.mxu0  ;;  %v13840_v21 = vpop.f32.mrf.mxu1 }
 0x7bf   : > { %v5331_v22 = vadd.f32 %v13815_v20, %v5239_v19  ;;  %v5233_v54 = vadd.f32 %v5232_v0, %v5155_v15 }
 0x7c0   : > { %v5320_v23 = vpop.f32.mrf.mxu0  ;;  %v5727_v24 = vpop.f32.mrf.mxu1 }
 0x7c1   : > { %v5321_v25 = vadd.f32 %v5320_v23, %v5233_v54  ;;  %v5413_v26 = vadd.f32 %v13820_v3, %v5331_v22 }
 0x7c2   : > { %v13825_v27 = vpop.f32.mrf.mxu0  ;;  %v5893_v28 = vpop.f32.mrf.mxu1 }
 0x7c3   : > { %v5494_v16 = vadd.f32 %v13825_v27, %v5413_v26  ;;  %v5407_v29 = vadd.f32 %v5406_v6, %v5321_v25 }
 0x7c4   : > { %v5486_v30 = vpop.f32.mrf.mxu0  ;;  %v13850_v31 = vpop.f32.mrf.mxu1 }
 0x7c5   : > { %v5487_v17 = vadd.f32 %v5486_v30, %v5407_v29  ;;  %v5576_v32 = vadd.f32 %v13830_v11, %v5494_v16 }
 0x7c6   : > { %v13835_v33 = vpop.f32.mrf.mxu0  ;;  %v6041_v34 = vpop.f32.mrf.mxu1 }
 0x7c7   : > { %v5656_v35 = vadd.f32 %v13835_v33, %v5576_v32  ;;  %v5568_v18 = vadd.f32 %v5567_v37, %v5487_v17 }
 0x7c8   : > { %v5649_v36 = vpop.f32.mrf.mxu0  ;;  %v13860_v38 = vpop.f32.mrf.mxu1 }
 0x7c9   : > { %v15100_v39 = vadd.f32 %v13840_v21, %v5656_v35  ;;  %v5650_v40 = vadd.f32 %v5649_v36, %v5568_v18 }
 0x7ca   : > { %v5817_v41 = vpop.f32.mrf.mxu0  ;;  %v6187_v42 = vpop.f32.mrf.mxu1 }
 0x7cb   : > { %v15102_v43 = vadd.f32 %v5727_v24, %v5650_v40  ;;  %v5894_v46 = vadd.f32 %v5893_v28, %v5817_v41 }
 0x7cc   : > { %v13845_v44 = vpop.f32.mrf.mxu0  ;;  %v13870_v45 = vpop.f32.mrf.mxu1 }
 0x7ce   : > { %v5967_v47 = vpop.f32.mrf.mxu0  ;;  %v6347_v48 = vpop.f32.mrf.mxu1 }
 0x7cf   : > { %v5968_v49 = vadd.f32 %v5967_v47, %v5894_v46 }
 0x7d0   : > { %v13855_v50 = vpop.f32.mrf.mxu0  ;;  %v13880_v51 = vpop.f32.mrf.mxu1 }
 0x7d1   : > { %v6042_v52 = vadd.f32 %v6041_v34, %v5968_v49 }
 0x7d2   : > { %v6115_v53 = vpop.f32.mrf.mxu0  ;;  %v6495_v55 = vpop.f32.mrf.mxu1 }
 0x7d3   : > { %v6116_v56 = vadd.f32 %v6115_v53, %v6042_v52 }
 0x7d4   : > { %v13865_v57 = vpop.f32.mrf.mxu0  ;;  %v13890_v58 = vpop.f32.mrf.mxu1 }
 0x7d5   : > { %v6188_v59 = vadd.f32 %v6187_v42, %v6116_v56 }
 0x7d6   : > { %v6271_v60 = vpop.f32.mrf.mxu0  ;;  %v6641_v62 = vpop.f32.mrf.mxu1 }
 0x7d7   : > { %v6645_v0 = vmul.f32 0.35355338, %v6188_v59  ;;  %v6348_v3 = vadd.f32 %v6347_v48, %v6271_v60 }
 0x7d8   : > { %v13875_v1 = vpop.f32.mrf.mxu0  ;;  %v13900_v2 = vpop.f32.mrf.mxu1 }
 0x7d9   : > { %v6647_v4 = vsel %vm1067_vm2, %v6645_v0, -inf  ;;  %v1062_v2 = vld [vmem:[%s16070_s3 + $0x10] sm:$0xff] }
 0x7da   : > { %6648 = vmax.xlane.f32.xlu0 %v6647_v4  ;;  %v6421_v5 = vpop.f32.mrf.mxu0 }
 0x7db   : > { %v6422_v6 = vadd.f32 %v6421_v5, %v6348_v3  ;;  %v15153_v3 = vand.u32 4294901760, %v1062_v2 }
 0x7dc   : > { %v13885_v7 = vpop.f32.mrf.mxu0 }
 0x7dd   : > { %v6496_v9 = vadd.f32 %v6495_v55, %v6422_v6  ;;  %v15156_v4 = vsub.f32 %v1062_v2, %v15153_v3 }
 0x7de   : > { %v6569_v10 = vpop.f32.mrf.mxu0 }
 0x7df   : > { %v6570_v11 = vadd.f32 %v6569_v10, %v6496_v9  ;;  %v15161_v5 = vand.u32 4294901760, %v15156_v4 }
 0x7e0   : > { %v13895_v12 = vpop.f32.mrf.mxu0 }
 0x7e1   : > { %v6642_v13 = vadd.f32 %v6641_v62, %v6570_v11  ;;  %v7705_v6 = vsub.f32 %v15156_v4, %v15161_v5 }
 0x7e3   : > { %v6646_v14 = vmul.f32 0.35355338, %v6642_v13  ;;  %v7706_v7 = vand.u32 4294901760, %v7705_v6 }
 0x7e5   : > { %v6650_v37 = vsel %vm1067_vm2, %v6646_v14, -inf }
 0x7e6   : > { %6651 = vmax.xlane.f32.xlu1 %v6650_v37 }
 0x7f7   : > { %6675 = vrot.lane.b32.xlu1 %v14714_v61, %s14399_s14 }
 0x7fb   : > { %8078 = vrot.lane.b32.xlu1 %v14714_v61, %s14400_s12 }
 0x7ff   : > { %8076 = vrot.lane.b32.xlu1 %v14714_v61, %s14401_s16 }
 0x803   : > { %8530 = vrot.lane.b32.xlu1 %v14717_v63, %s14401_s16 }
 0x863   : > { %v6649_v15 = vpop.xlane.xlu0 %6648 }
 0x864   : > { %v6653_v19 = vsub.f32 %v6645_v0, %v6649_v15 }
 0x866   : > { %v6655_v20 = vmul.f32 1.442695, %v6653_v19 }
 0x868   : > { %14227 = vpow2.f32 %v6655_v20 }
 0x86f   : > { %v6652_v21 = vpop.xlane.xlu1 %6651 }
 0x870   : > { %v6654_v22 = vsub.f32 %v6646_v14, %v6652_v21 }
 0x872   : > { %v6657_v54 = vmul.f32 1.442695, %v6654_v22 }
 0x873   : > { %v6676_v23 = vpop.permute.xlu1 %6675 }
 0x874   : > { %14229 = vpow2.f32 %v6657_v54  ;;  %v6712_v24 = vand.u32 4294901760, %v6676_v23 }
 0x875   : > { %v14228_v25 = vpop.eup %14227 }
 0x876   : > { %v6789_v26 = vsub.f32 %v6676_v23, %v6712_v24  ;;  %13902 = vmatpush3.msra.mxu0 %v6712_v24  ;;  %v6659_v27 = vsel %vm1067_vm2, %v14228_v25, 0.0 }
 0x877   : > { %6660 = vadd.xlane.f32.xlu0 %v6659_v27  ;;  %13911 = vmatprep.subr.mxu0 %v14390_v8 }
 0x878   : > { %v6790_v28 = vand.u32 4294901760, %v6789_v26 }
 0x87a   : > { %v6791_v16 = vsub.f32 %v6789_v26, %v6790_v28 }
 0x87c   : > { %v6792_v29 = vand.u32 4294901760, %v6791_v16 }
 0x87e   : > { %13907 = vmatpush3.msra.mxu1 %v6792_v29 }
 0x87f   : > { %13916 = vmatprep.subr.mxu1 %v14390_v8 }
 0x881   : > { %v14230_v30 = vpop.eup %14229 }
 0x882   : > { %v6662_v31 = vsel %vm1067_vm2, %v14230_v30, 0.0 }
 0x883   : > { %6663 = vadd.xlane.f32.xlu0 %v6662_v31 }
 0x899   : > { %7127 = vrot.lane.b32.xlu0 %v14717_v63, %s14399_s14 }
 0x89d   : > { %8532 = vrot.lane.b32.xlu0 %v14717_v63, %s14400_s12 }
 0x900   : > { %v6661_v17 = vpop.xlane.xlu0 %6660 }
 0x901   : > { %14231 = vrcp.f32 %v6661_v17 }
 0x90c   : > { %v6664_v32 = vpop.xlane.xlu0 %6663 }
 0x90d   : > { %14233 = vrcp.f32 %v6664_v32 }
 0x90e   : > { %v14232_v33 = vpop.eup %14231 }
 0x90f   : > { %v6667_v34 = vmul.f32 %v14232_v33, %v6661_v17  ;;  %v8079_v17 = vpop.permute.xlu1 %8078 }
 0x910   : > { %v7128_v35 = vpop.permute.xlu0 %7127 }
 0x911   : > { %v6669_v18 = vsub.f32 2.0, %v6667_v34  ;;  %v7164_v36 = vand.u32 4294901760, %v7128_v35 }
 0x913   : > { %v6671_v38 = vmul.f32 %v14232_v33, %v6669_v18  ;;  %v7241_v41 = vsub.f32 %v7128_v35, %v7164_v36 }
 0x915   : > { %v6673_v40 = vmul.f32 %v14228_v25, %v6671_v38  ;;  %v7242_v45 = vand.u32 4294901760, %v7241_v41 }
 0x917   : > { %v6679_v42 = vsel %vm1067_vm2, %v6673_v40, 0  ;;  %v7243_v51 = vsub.f32 %v7241_v41, %v7242_v45 }
 0x918   : > { %v6747_v44 = vand.u32 4294901760, %v6679_v42 }
 0x919   : > { %v7244_v57 = vand.u32 4294901760, %v7243_v51 }
 0x91a   : > { %v14234_v46 = vpop.eup %14233  ;;  %13909 = vmatmul.mubr.f32.vlgmr.msra.gmra.mxu1 %v6747_v44  ;;  %v6748_v47 = vsub.f32 %v6679_v42, %v6747_v44 }
 0x91b   : > { %v6668_v48 = vmul.f32 %v14234_v46, %v6664_v32  ;;  %13917 = vmatpush3.msra.mxu1 %v6712_v24  ;;  %13918 = vmatprep.mubr.msk.f32.mxu1 %vm14391_vm1, %v14390_v8 }
 0x91c   : > { %13926 = vmatprep.subr.mxu1 %v14390_v8  ;;  %v6749_v49 = vand.u32 4294901760, %v6748_v47 }
 0x91d   : > { %v6670_v50 = vsub.f32 2.0, %v6668_v48 }
 0x91e   : > { %13919 = vmatmul.mubr.f32.vlgmr.msra.gmra.mxu1 %v6749_v49  ;;  %v6750_v52 = vsub.f32 %v6748_v47, %v6749_v49 }
 0x91f   : > { %v6672_v53 = vmul.f32 %v14234_v46, %v6670_v50  ;;  %13927 = vmatpush3.msra.mxu1 %v6712_v24  ;;  %13928 = vmatprep.mubr.msk.f32.mxu1 %vm14391_vm1, %v14390_v8 }
 0x920   : > { %13936 = vmatprep.subr.mxu1 %v14390_v8  ;;  %v6751_v55 = vand.u32 4294901760, %v6750_v52 }
 0x921   : > { %v6674_v56 = vmul.f32 %v14230_v30, %v6672_v53 }
 0x922   : > { %13904 = vmatmul.mubr.f32.vlgmr.msra.gmra.mxu0 %v6751_v55  ;;  %13929 = vmatmul.mubr.f32.vlgmr.msra.gmra.mxu1 %v6747_v44  ;;  %v8077_v55 = vpop.permute.xlu1 %8076 }
 0x923   : > { %v7131_v58 = vsel %vm1067_vm2, %v6674_v56, 0  ;;  %13912 = vmatpush3.msra.mxu0 %v6789_v26  ;;  %13937 = vmatpush3.msra.mxu1 %v7244_v57  ;;  %v8533_v56 = vpop.permute.xlu0 %8532 }
 0x924   : > { %13913 = vmatprep.mubr.msk.f32.mxu0 %vm14391_vm1, %v14390_v8  ;;  %13921 = vmatprep.subr.mxu0 %v14390_v8  ;;  %v7199_v59 = vand.u32 4294901760, %v7131_v58 }
 0x925   : > { %13938 = vmatprep.mubr.msk.f32.mxu1 %vm14391_vm1, %v14390_v8  ;;  %13946 = vmatprep.subr.mxu1 %v14390_v8 }
 0x926   : > { %13914 = vmatmul.mubr.f32.vlgmr.msra.gmra.mxu0 %v6748_v47  ;;  %13939 = vmatmul.mubr.f32.vlgmr.msra.gmra.mxu1 %v7199_v59  ;;  %v7200_v60 = vsub.f32 %v7131_v58, %v7199_v59 }
 0x927   : > { %13922 = vmatpush3.msra.mxu0 %v6790_v28  ;;  %13947 = vmatpush3.msra.mxu1 %v7164_v36 }
 0x928   : > { %13923 = vmatprep.mubr.msk.f32.mxu0 %vm14391_vm1, %v14390_v8  ;;  %13931 = vmatprep.subr.mxu0 %v14390_v8  ;;  %v7201_v62 = vand.u32 4294901760, %v7200_v60 }
 0x929   : > { %13948 = vmatprep.mubr.msk.f32.mxu1 %vm14391_vm1, %v14390_v8  ;;  %13956 = vmatprep.subr.mxu1 %v14390_v8 }
 0x92a   : > { %13924 = vmatmul.mubr.f32.vlgmr.msra.gmra.mxu0 %v6747_v44  ;;  %13949 = vmatmul.mubr.f32.vlgmr.msra.gmra.mxu1 %v7201_v62  ;;  %v7202_v0 = vsub.f32 %v7200_v60, %v7201_v62  ;;  %v8536_v62 = vsel %vm1067_vm2, %v8533_v56, 0 }
 0x92b   : > { %13932 = vmatpush3.msra.mxu0 %v7164_v36  ;;  %13957 = vmatpush3.msra.mxu1 %v7164_v36  ;;  %v8082_v36 = vsel %vm1067_vm2, %v8079_v17, 0 }
 0x92c   : > { %13933 = vmatprep.mubr.msk.f32.mxu0 %vm14391_vm1, %v14390_v8  ;;  %13941 = vmatprep.subr.mxu0 %v14390_v8  ;;  %v7203_v1 = vand.u32 4294901760, %v7202_v0 }
 0x92d   : > { %13958 = vmatprep.mubr.msk.f32.mxu1 %vm14391_vm1, %v14390_v8  ;;  %13966 = vmatprep.subr.mxu1 %v7706_v7 }
 0x92e   : > { %13934 = vmatmul.mubr.f32.vlgmr.msra.gmra.mxu0 %v7203_v1  ;;  %13959 = vmatmul.mubr.f32.vlgmr.msra.gmra.mxu1 %v7199_v59 }
 0x92f   : > { %13942 = vmatpush3.msra.mxu0 %v7241_v41  ;;  %13943 = vmatprep.mubr.msk.f32.mxu0 %vm14391_vm1, %v14390_v8 }
 0x930   : > { %13951 = vmatprep.subr.mxu0 %v14390_v8  ;;  %13967 = vmatpush3.msra.mxu1 %v7706_v7  ;;  %v15186_v7 = vand.u32 4294901760, %v8536_v62 }
 0x931   : > { %13976 = vmatprep.subr.mxu1 %v15153_v3 }
 0x932   : > { %13944 = vmatmul.mubr.f32.vlgmr.msra.gmra.mxu0 %v7200_v60  ;;  %v8080_v60 = vsel %vm1067_vm2, %v8077_v55, 0 }
 0x933   : > { %13952 = vmatpush3.msra.mxu0 %v7242_v45  ;;  %13953 = vmatprep.mubr.msk.f32.mxu0 %vm14391_vm1, %v14390_v8  ;;  %v8115_v45 = vand.u32 4294901760, %v8082_v36  ;;  %v15180_v1 = vand.u32 4294901760, %v8080_v60 }
 0x934   : > { %13961 = vmatprep.subr.mxu0 %v15153_v3 }
 0x935   : > { %v15173_v52 = vsub.f32 %v8082_v36, %v8115_v45 }
 0x936   : > { %13954 = vmatmul.mubr.f32.vlgmr.msra.gmra.mxu0 %v7199_v59 }
 0x937   : > { %13962 = vmatpush3.msra.mxu0 %v15153_v3  ;;  %v8193_v59 = vand.u32 4294901760, %v15173_v52 }
 0x938   : > { %13971 = vmatprep.subr.mxu0 %v15156_v4 }
 0x939   : > { %v8194_v6 = vsub.f32 %v15173_v52, %v8193_v59 }
 0x9da   : > { %v6829_v9 = vpop.f32.mrf.mxu1 }
 0x9dc   : > { %v13910_v10 = vpop.f32.mrf.mxu1 }
 0x9dd   : > { %v8151_v10 = vsub.f32 %v8080_v60, %v15180_v1 }
 0x9de   : > { %v6977_v11 = vpop.f32.mrf.mxu1 }
 0x9e0   : > { %v13920_v12 = vpop.f32.mrf.mxu1 }
 0x9e1   : > { %v8195_v12 = vand.u32 4294901760, %v8194_v6 }
 0x9e2   : > { %v6753_v13 = vpop.f32.mrf.mxu0  ;;  %v7123_v14 = vpop.f32.mrf.mxu1 }
 0x9e3   : > { %v6830_v19 = vadd.f32 %v6829_v9, %v6753_v13  ;;  %v15193_v13 = vsub.f32 %v8536_v62, %v15186_v7 }
 0x9e4   : > { %v13905_v37 = vpop.f32.mrf.mxu0  ;;  %v13930_v15 = vpop.f32.mrf.mxu1 }
 0x9e5   : > { %v8152_v37 = vand.u32 4294901760, %v8151_v10  ;;  %v8647_v15 = vand.u32 4294901760, %v15193_v13 }
 0x9e6   : > { %v6903_v20 = vpop.f32.mrf.mxu0  ;;  %v7281_v21 = vpop.f32.mrf.mxu1 }
 0x9e7   : > { %v6904_v22 = vadd.f32 %v6903_v20, %v6830_v19  ;;  %v8648_v20 = vsub.f32 %v15193_v13, %v8647_v15 }
 0x9e8   : > { %v13915_v54 = vpop.f32.mrf.mxu0  ;;  %v13940_v23 = vpop.f32.mrf.mxu1 }
 0x9e9   : > { %v6978_v24 = vadd.f32 %v6977_v11, %v6904_v22 }
 0x9ea   : > { %v7051_v25 = vpop.f32.mrf.mxu0  ;;  %v7429_v26 = vpop.f32.mrf.mxu1 }
 0x9eb   : > { %v7052_v27 = vadd.f32 %v7051_v25, %v6978_v24 }
 0x9ec   : > { %v13925_v28 = vpop.f32.mrf.mxu0  ;;  %v13950_v16 = vpop.f32.mrf.mxu1 }
 0x9ed   : > { %v7124_v29 = vadd.f32 %v7123_v14, %v7052_v27  ;;  %v8531_v14 = vpop.permute.xlu1 %8530 }
 0x9ee   : > { %v7205_v30 = vpop.f32.mrf.mxu0  ;;  %v7575_v31 = vpop.f32.mrf.mxu1 }
 0x9ef   : > { %v7580_v32 = vsel %vm1067_vm2, %v7124_v29, 0  ;;  %v7282_v18 = vadd.f32 %v7281_v21, %v7205_v30 }
 0x9f0   : > { %v15168_v33 = vand.u32 4294901760, %v7580_v32  ;;  %v13935_v34 = vpop.f32.mrf.mxu0  ;;  %v13960_v35 = vpop.f32.mrf.mxu1 }
 0x9f2   : > { %v7652_v38 = vsub.f32 %v7580_v32, %v15168_v33  ;;  %v7355_v40 = vpop.f32.mrf.mxu0  ;;  %13968 = vmatprep.mubr.f32.mxu1 %v15168_v33 }
 0x9f3   : > { %v7356_v41 = vadd.f32 %v7355_v40, %v7282_v18 }
 0x9f4   : > { %v13945_v42 = vpop.f32.mrf.mxu0  ;;  %v7653_v44 = vand.u32 4294901760, %v7652_v38 }
 0x9f5   : > { %v7430_v46 = vadd.f32 %v7429_v26, %v7356_v41 }
 0x9f6   : > { %v7503_v47 = vpop.f32.mrf.mxu0  ;;  %v7654_v48 = vsub.f32 %v7652_v38, %v7653_v44 }
 0x9f7   : > { %v7504_v49 = vadd.f32 %v7503_v47, %v7430_v46 }
 0x9f8   : > { %v13955_v50 = vpop.f32.mrf.mxu0  ;;  %v7655_v51 = vand.u32 4294901760, %v7654_v48 }
 0x9f9   : > { %v7576_v53 = vadd.f32 %v7575_v31, %v7504_v49 }
 0x9fa   : > { %13963 = vmatprep.mubr.f32.mxu0 %v7655_v51 }
 0x9fb   : > { %v7583_v57 = vsel %vm1067_vm2, %v7576_v53, 0 }
 0x9fc   : > { %v7661_v58 = vand.u32 4294901760, %v7583_v57 }
 0x9fe   : > { %v7662_v0 = vsub.f32 %v7583_v57, %v7661_v58  ;;  %13969 = vmatmul.mubr.f32.vlgmr.msra.gmra.mxu1 %v7661_v58 }
 0x9ff   : > { %13978 = vmatprep.mubr.f32.mxu1 %v7653_v44  ;;  %13977 = vmatpush3.msra.mxu1 %v15153_v3 }
 0xa00   : > { %v7663_v2 = vand.u32 4294901760, %v7662_v0  ;;  %13986 = vmatprep.subr.mxu1 %v15153_v3 }
 0xa02   : > { %13979 = vmatmul.mubr.f32.vlgmr.msra.gmra.mxu1 %v7663_v2  ;;  %v7664_v9 = vsub.f32 %v7662_v0, %v7663_v2 }
 0xa03   : > { %13988 = vmatprep.mubr.f32.mxu1 %v15168_v33  ;;  %13987 = vmatpush3.msra.mxu1 %v15153_v3  ;;  %v8534_v3 = vsel %vm1067_vm2, %v8531_v14, 0 }
 0xa04   : > { %13996 = vmatprep.subr.mxu1 %v14390_v8  ;;  %v7665_v11 = vand.u32 4294901760, %v7664_v9  ;;  %v8604_v19 = vand.u32 4294901760, %v8534_v3 }
 0xa06   : > { %13964 = vmatmul.mubr.f32.vlgmr.msra.gmra.mxu0 %v7665_v11  ;;  %13989 = vmatmul.mubr.f32.vlgmr.msra.gmra.mxu1 %v7661_v58  ;;  %v8605_v22 = vsub.f32 %v8534_v3, %v8604_v19 }
 0xa07   : > { %13997 = vmatpush3.xpose.msra.mxu1 %v8195_v12  ;;  %13972 = vmatpush3.msra.mxu0 %v15156_v4  ;;  %v8153_v4 = vsub.f32 %v8151_v10, %v8152_v37 }
 0xa08   : > { %13973 = vmatprep.mubr.f32.mxu0 %v7652_v38  ;;  %13998 = vmatprep.mubr.msk.f32.mxu1 %vm14391_vm1, %v14390_v8  ;;  %v8606_v54 = vand.u32 4294901760, %v8605_v22 }
 0xa09   : > { %14006 = vmatprep.subr.mxu1 %v14390_v8  ;;  %13981 = vmatprep.subr.mxu0 %v15161_v5  ;;  %v8154_v21 = vand.u32 4294901760, %v8153_v4 }
 0xa0a   : > { %13974 = vmatmul.mubr.f32.vlgmr.msra.gmra.mxu0 %v7662_v0  ;;  %13999 = vmatmul.mubr.f32.vlgmr.msra.gmra.mxu1 %v15180_v1  ;;  %v8607_v23 = vsub.f32 %v8605_v22, %v8606_v54 }
 0xa0b   : > { %14007 = vmatpush3.xpose.msra.mxu1 %v8115_v45  ;;  %13982 = vmatpush3.msra.mxu0 %v15161_v5  ;;  %v8649_v5 = vand.u32 4294901760, %v8648_v20 }
 0xa0c   : > { %13983 = vmatprep.mubr.f32.mxu0 %v15168_v33  ;;  %13991 = vmatprep.subr.mxu0 %v14390_v8  ;;  %v8608_v24 = vand.u32 4294901760, %v8607_v23 }
 0xa0d   : > { %14008 = vmatprep.mubr.msk.f32.mxu1 %vm14391_vm1, %v14390_v8  ;;  %14016 = vmatprep.subr.mxu1 %v14390_v8 }
 0xa0e   : > { %13984 = vmatmul.mubr.f32.vlgmr.msra.gmra.mxu0 %v7661_v58  ;;  %14009 = vmatmul.mubr.f32.vlgmr.msra.gmra.mxu1 %v8152_v37 }
 0xa0f   : > { %13992 = vmatpush3.xpose.msra.mxu0 %v8115_v45  ;;  %14017 = vmatpush3.xpose.msra.mxu1 %v8115_v45 }
 0xa10   : > { %13993 = vmatprep.mubr.msk.f32.mxu0 %vm14391_vm1, %v14390_v8  ;;  %14001 = vmatprep.subr.mxu0 %v14390_v8 }
 0xa11   : > { %14018 = vmatprep.mubr.msk.f32.mxu1 %vm14391_vm1, %v14390_v8  ;;  %14026 = vmatprep.subr.mxu1 %v14390_v8 }
 0xa12   : > { %13994 = vmatmul.mubr.f32.vlgmr.msra.gmra.mxu0 %v8154_v21  ;;  %14019 = vmatmul.mubr.f32.vlgmr.msra.gmra.mxu1 %v15180_v1 }
 0xa13   : > { %14002 = vmatpush3.xpose.msra.mxu0 %v15173_v52  ;;  %14027 = vmatpush3.xpose.msra.mxu1 %v8649_v5 }
 0xa14   : > { %14003 = vmatprep.mubr.msk.f32.mxu0 %vm14391_vm1, %v14390_v8  ;;  %14011 = vmatprep.subr.mxu0 %v14390_v8 }
 0xa15   : > { %14028 = vmatprep.mubr.msk.f32.mxu1 %vm14391_vm1, %v14390_v8  ;;  %14036 = vmatprep.subr.mxu1 %v14390_v8 }
 0xa16   : > { %14004 = vmatmul.mubr.f32.vlgmr.msra.gmra.mxu0 %v8151_v10  ;;  %14029 = vmatmul.mubr.f32.vlgmr.msra.gmra.mxu1 %v8604_v19 }
 0xa17   : > { %14012 = vmatpush3.xpose.msra.mxu0 %v8193_v59  ;;  %14037 = vmatpush3.xpose.msra.mxu1 %v15186_v7 }
 0xa18   : > { %14013 = vmatprep.mubr.msk.f32.mxu0 %vm14391_vm1, %v14390_v8  ;;  %14021 = vmatprep.subr.mxu0 %v14390_v8 }
 0xa19   : > { %14038 = vmatprep.mubr.msk.f32.mxu1 %vm14391_vm1, %v14390_v8  ;;  %14046 = vmatprep.subr.mxu1 %v14390_v8 }
 0xa1a   : > { %14014 = vmatmul.mubr.f32.vlgmr.msra.gmra.mxu0 %v15180_v1  ;;  %14039 = vmatmul.mubr.f32.vlgmr.msra.gmra.mxu1 %v8606_v54 }
 0xa1b   : > { %14022 = vmatpush3.xpose.msra.mxu0 %v15186_v7  ;;  %14047 = vmatpush3.xpose.msra.mxu1 %v15186_v7 }
 0xa1c   : > { %14023 = vmatprep.mubr.msk.f32.mxu0 %vm14391_vm1, %v14390_v8  ;;  %14031 = vmatprep.subr.mxu0 %v14390_v8 }
 0xa1d   : > { %14048 = vmatprep.mubr.msk.f32.mxu1 %vm14391_vm1, %v14390_v8  ;;  %14056 = vmatprep.subr.mxu1 %v14390_v8 }
 0xa1e   : > { %14024 = vmatmul.mubr.f32.vlgmr.msra.gmra.mxu0 %v8608_v24  ;;  %14049 = vmatmul.mubr.f32.vlgmr.msra.gmra.mxu1 %v8604_v19 }
 0xa1f   : > { %14032 = vmatpush3.xpose.msra.mxu0 %v15193_v13  ;;  %14033 = vmatprep.mubr.msk.f32.mxu0 %vm14391_vm1, %v14390_v8 }
 0xa20   : > { %14041 = vmatprep.subr.mxu0 %v14390_v8  ;;  %14058 = vmatprep.mubr.msk.f32.mxu1 %vm14391_vm1, %v14390_v8 }
 0xa22   : > { %14034 = vmatmul.mubr.f32.vlgmr.msra.gmra.mxu0 %v8605_v22 }
 0xa23   : > { %14042 = vmatpush3.xpose.msra.mxu0 %v8647_v15  ;;  %14043 = vmatprep.mubr.msk.f32.mxu0 %vm14391_vm1, %v14390_v8 }
 0xa24   : > { %14051 = vmatprep.subr.mxu0 %v14390_v8 }
 0xa26   : > { %14044 = vmatmul.mubr.f32.vlgmr.msra.gmra.mxu0 %v8604_v19 }
 0xa27   : > { %14053 = vmatprep.mubr.msk.f32.mxu0 %vm14391_vm1, %v14390_v8 }
 0xabe   : > { %v13970_v25 = vpop.f32.mrf.mxu1 }
 0xac0   : > { %v7743_v26 = vpop.f32.mrf.mxu1 }
 0xac2   : > { %v13980_v27 = vpop.f32.mrf.mxu1 }
 0xac4   : > { %v7904_v28 = vpop.f32.mrf.mxu1 }
 0xac6   : > { %v13965_v16 = vpop.f32.mrf.mxu0  ;;  %v13990_v29 = vpop.f32.mrf.mxu1 }
 0xac7   : > { %v7750_v30 = vadd.f32 %v13970_v25, %v13965_v16 }
 0xac8   : > { %v7657_v31 = vpop.f32.mrf.mxu0  ;;  %v8064_v17 = vpop.f32.mrf.mxu1 }
 0xac9   : > { %v7744_v32 = vadd.f32 %v7743_v26, %v7657_v31 }
 0xaca   : > { %v13975_v33 = vpop.f32.mrf.mxu0  ;;  %v8232_v34 = vpop.f32.mrf.mxu1 }
 0xacb   : > { %v7831_v35 = vadd.f32 %v13975_v33, %v7750_v30 }
 0xacc   : > { %v7823_v18 = vpop.f32.mrf.mxu0  ;;  %v14000_v36 = vpop.f32.mrf.mxu1 }
 0xacd   : > { %v7824_v38 = vadd.f32 %v7823_v18, %v7744_v32  ;;  %v7913_v40 = vadd.f32 %v13980_v27, %v7831_v35 }
 0xace   : > { %v13985_v41 = vpop.f32.mrf.mxu0  ;;  %v8380_v42 = vpop.f32.mrf.mxu1 }
 0xacf   : > { %v7993_v44 = vadd.f32 %v13985_v41, %v7913_v40  ;;  %v7905_v45 = vadd.f32 %v7904_v28, %v7824_v38 }
 0xad0   : > { %v7986_v46 = vpop.f32.mrf.mxu0  ;;  %v14010_v47 = vpop.f32.mrf.mxu1 }
 0xad1   : > { %v8071_v48 = vadd.f32 %v13990_v29, %v7993_v44  ;;  %v7987_v49 = vadd.f32 %v7986_v46, %v7905_v45 }
 0xad2   : > { %v8156_v50 = vpop.f32.mrf.mxu0  ;;  %v8526_v51 = vpop.f32.mrf.mxu1 }
 0xad3   : > { %v15254_v52 = vadd.f32 %v8071_v48, %v15100_v39  ;;  %v8065_v53 = vadd.f32 %v8064_v17, %v7987_v49  ;;  %v8233_v58 = vadd.f32 %v8232_v34, %v8156_v50 }
 0xad4   : > { %v13995_v55 = vpop.f32.mrf.mxu0  ;;  %v14020_v56 = vpop.f32.mrf.mxu1 }
 0xad5   : > { %v15257_v57 = vadd.f32 %v8065_v53, %v15102_v43 }
 0xad6   : > { %v8306_v59 = vpop.f32.mrf.mxu0  ;;  %v8686_v60 = vpop.f32.mrf.mxu1 }
 0xad7   : > { %v8307_v62 = vadd.f32 %v8306_v59, %v8233_v58 }
 0xad8   : > { %v14005_v0 = vpop.f32.mrf.mxu0  ;;  %v14030_v1 = vpop.f32.mrf.mxu1 }
 0xad9   : > { %v8381_v2 = vadd.f32 %v8380_v42, %v8307_v62 }
 0xada   : > { %v8454_v6 = vpop.f32.mrf.mxu0  ;;  %v8834_v7 = vpop.f32.mrf.mxu1 }
 0xadb   : > { %v8455_v9 = vadd.f32 %v8454_v6, %v8381_v2 }
 0xadc   : > { %v14015_v10 = vpop.f32.mrf.mxu0  ;;  %v14040_v11 = vpop.f32.mrf.mxu1 }
 0xadd   : > { %v8527_v39 = vadd.f32 %v8526_v51, %v8455_v9 }
 0xade   : > { %v8610_v12 = vpop.f32.mrf.mxu0  ;;  %v8980_v13 = vpop.f32.mrf.mxu1 }
 0xadf   : > { %v8984_v14 = vmul.f32 0.35355338, %v8527_v39  ;;  %v8687_v43 = vadd.f32 %v8686_v60, %v8610_v12 }
 0xae0   : > { %v14025_v37 = vpop.f32.mrf.mxu0  ;;  %v14050_v3 = vpop.f32.mrf.mxu1 }
 0xae1   : > { %v8986_v15 = vsel %vm1067_vm2, %v8984_v14, -inf }
 0xae2   : > { %8987 = vmax.xlane.f32.xlu0 %v8986_v15  ;;  %v8760_v4 = vpop.f32.mrf.mxu0 }
 0xae3   : > { %v8761_v19 = vadd.f32 %v8760_v4, %v8687_v43 }
 0xae4   : > { %v14035_v20 = vpop.f32.mrf.mxu0 }
 0xae5   : > { %v8835_v21 = vadd.f32 %v8834_v7, %v8761_v19 }
 0xae6   : > { %v8908_v22 = vpop.f32.mrf.mxu0 }
 0xae7   : > { %v8909_v5 = vadd.f32 %v8908_v22, %v8835_v21 }
 0xae8   : > { %v14045_v54 = vpop.f32.mrf.mxu0 }
 0xae9   : > { %v8981_v23 = vadd.f32 %v8980_v13, %v8909_v5 }
 0xaeb   : > { %v8985_v24 = vmul.f32 0.35355338, %v8981_v23 }
 0xaed   : > { %v8989_v25 = vsel %vm1067_vm2, %v8985_v24, -inf }
 0xaee   : > { %8990 = vmax.xlane.f32.xlu1 %v8989_v25 }
 0xaff   : > { %9014 = vrot.lane.b32.xlu1 %v14714_v61, %s14402_s23 }
 0xb6b   : > { %v8988_v26 = vpop.xlane.xlu0 %8987 }
 0xb6c   : > { %v8992_v27 = vsub.f32 %v8984_v14, %v8988_v26  ;;  %v1063_v14 = vld [vmem:[%s16070_s3 + $0x18] sm:$0xff] }
 0xb6d   : > { %v15300_v37 = vand.u32 4294901760, %v1063_v14 }
 0xb6e   : > { %v8994_v28 = vmul.f32 1.442695, %v8992_v27 }
 0xb6f   : > { %v15303_v3 = vsub.f32 %v1063_v14, %v15300_v37 }
 0xb70   : > { %14235 = vpow2.f32 %v8994_v28 }
 0xb71   : > { %v15308_v43 = vand.u32 4294901760, %v15303_v3 }
 0xb77   : > { %v8991_v16 = vpop.xlane.xlu1 %8990 }
 0xb78   : > { %v8993_v29 = vsub.f32 %v8985_v24, %v8991_v16 }
 0xb7a   : > { %v8996_v30 = vmul.f32 1.442695, %v8993_v29 }
 0xb7b   : > { %v9015_v31 = vpop.permute.xlu1 %9014 }
 0xb7c   : > { %14237 = vpow2.f32 %v8996_v30  ;;  %v9051_v17 = vand.u32 4294901760, %v9015_v31 }
 0xb7d   : > { %v14236_v32 = vpop.eup %14235 }
 0xb7e   : > { %v9128_v33 = vsub.f32 %v9015_v31, %v9051_v17  ;;  %14052 = vmatpush3.msra.mxu0 %v9051_v17  ;;  %v8998_v34 = vsel %vm1067_vm2, %v14236_v32, 0.0 }
 0xb7f   : > { %8999 = vadd.xlane.f32.xlu0 %v8998_v34  ;;  %14061 = vmatprep.subr.mxu0 %v14390_v8 }
 0xb80   : > { %v9129_v35 = vand.u32 4294901760, %v9128_v33 }
 0xb82   : > { %v9130_v61 = vsub.f32 %v9128_v33, %v9129_v35 }
 0xb84   : > { %v9131_v18 = vand.u32 4294901760, %v9130_v61 }
 0xb86   : > { %14057 = vmatpush3.msra.mxu1 %v9131_v18 }
 0xb87   : > { %14066 = vmatprep.subr.mxu1 %v14390_v8 }
 0xb89   : > { %v14238_v36 = vpop.eup %14237 }
 0xb8a   : > { %v9001_v38 = vsel %vm1067_vm2, %v14238_v36, 0.0 }
 0xb8b   : > { %9002 = vadd.xlane.f32.xlu0 %v9001_v38 }
 0xba1   : > { %9466 = vrot.lane.b32.xlu0 %v14717_v63, %s14402_s23 }
 0xc08   : > { %v9000_v40 = vpop.xlane.xlu0 %8999 }
 0xc09   : > { %14239 = vrcp.f32 %v9000_v40 }
 0xc14   : > { %v9003_v41 = vpop.xlane.xlu0 %9002 }
 0xc15   : > { %14241 = vrcp.f32 %v9003_v41 }
 0xc16   : > { %v14240_v42 = vpop.eup %14239 }
 0xc17   : > { %v9006_v44 = vmul.f32 %v14240_v42, %v9000_v40 }
 0xc18   : > { %v9467_v45 = vpop.permute.xlu0 %9466 }
 0xc19   : > { %v9008_v46 = vsub.f32 2.0, %v9006_v44  ;;  %v9503_v47 = vand.u32 4294901760, %v9467_v45 }
 0xc1b   : > { %v9010_v48 = vmul.f32 %v14240_v42, %v9008_v46  ;;  %v9580_v50 = vsub.f32 %v9467_v45, %v9503_v47 }
 0xc1d   : > { %v9012_v49 = vmul.f32 %v14236_v32, %v9010_v48  ;;  %v9581_v55 = vand.u32 4294901760, %v9580_v50 }
 0xc1f   : > { %v9018_v51 = vsel %vm1067_vm2, %v9012_v49, 0  ;;  %v9582_v62 = vsub.f32 %v9580_v50, %v9581_v55 }
 0xc20   : > { %v9086_v53 = vand.u32 4294901760, %v9018_v51 }
 0xc21   : > { %v9583_v7 = vand.u32 4294901760, %v9582_v62 }
 0xc22   : > { %v14242_v56 = vpop.eup %14241  ;;  %14059 = vmatmul.mubr.f32.vlgmr.msra.gmra.mxu1 %v9086_v53  ;;  %v9087_v58 = vsub.f32 %v9018_v51, %v9086_v53 }
 0xc23   : > { %v9007_v63 = vmul.f32 %v14242_v56, %v9003_v41  ;;  %14067 = vmatpush3.msra.mxu1 %v9051_v17  ;;  %14068 = vmatprep.mubr.msk.f32.mxu1 %vm14391_vm1, %v14390_v8 }
 0xc24   : > { %14076 = vmatprep.subr.mxu1 %v14390_v8  ;;  %v9088_v59 = vand.u32 4294901760, %v9087_v58 }
 0xc25   : > { %v9009_v60 = vsub.f32 2.0, %v9007_v63 }
 0xc26   : > { %14069 = vmatmul.mubr.f32.vlgmr.msra.gmra.mxu1 %v9088_v59  ;;  %v9089_v0 = vsub.f32 %v9087_v58, %v9088_v59 }
 0xc27   : > { %v9011_v1 = vmul.f32 %v14242_v56, %v9009_v60  ;;  %14077 = vmatpush3.msra.mxu1 %v9051_v17  ;;  %14078 = vmatprep.mubr.msk.f32.mxu1 %vm14391_vm1, %v14390_v8 }
 0xc28   : > { %14086 = vmatprep.subr.mxu1 %v14390_v8  ;;  %v9090_v2 = vand.u32 4294901760, %v9089_v0 }
 0xc29   : > { %v9013_v6 = vmul.f32 %v14238_v36, %v9011_v1 }
 0xc2a   : > { %14054 = vmatmul.mubr.f32.vlgmr.msra.gmra.mxu0 %v9090_v2  ;;  %14079 = vmatmul.mubr.f32.vlgmr.msra.gmra.mxu1 %v9086_v53 }
 0xc2b   : > { %v9470_v9 = vsel %vm1067_vm2, %v9013_v6, 0  ;;  %14062 = vmatpush3.msra.mxu0 %v9128_v33  ;;  %14087 = vmatpush3.msra.mxu1 %v9583_v7 }
 0xc2c   : > { %v9538_v10 = vand.u32 4294901760, %v9470_v9  ;;  %14063 = vmatprep.mubr.msk.f32.mxu0 %vm14391_vm1, %v14390_v8  ;;  %14071 = vmatprep.subr.mxu0 %v14390_v8 }
 0xc2d   : > { %14088 = vmatprep.mubr.msk.f32.mxu1 %vm14391_vm1, %v14390_v8  ;;  %14096 = vmatprep.subr.mxu1 %v14390_v8 }
 0xc2e   : > { %v9539_v11 = vsub.f32 %v9470_v9, %v9538_v10  ;;  %14064 = vmatmul.mubr.f32.vlgmr.msra.gmra.mxu0 %v9087_v58  ;;  %14089 = vmatmul.mubr.f32.vlgmr.msra.gmra.mxu1 %v9538_v10 }
 0xc2f   : > { %14072 = vmatpush3.msra.mxu0 %v9129_v35  ;;  %14097 = vmatpush3.msra.mxu1 %v9503_v47 }
 0xc30   : > { %14073 = vmatprep.mubr.msk.f32.mxu0 %vm14391_vm1, %v14390_v8  ;;  %14081 = vmatprep.subr.mxu0 %v14390_v8  ;;  %v9540_v39 = vand.u32 4294901760, %v9539_v11 }
 0xc31   : > { %14098 = vmatprep.mubr.msk.f32.mxu1 %vm14391_vm1, %v14390_v8  ;;  %14106 = vmatprep.subr.mxu1 %v14390_v8 }
 0xc32   : > { %14074 = vmatmul.mubr.f32.vlgmr.msra.gmra.mxu0 %v9086_v53  ;;  %14099 = vmatmul.mubr.f32.vlgmr.msra.gmra.mxu1 %v9540_v39  ;;  %v9541_v12 = vsub.f32 %v9539_v11, %v9540_v39 }
 0xc33   : > { %14082 = vmatpush3.msra.mxu0 %v9503_v47  ;;  %14107 = vmatpush3.msra.mxu1 %v9503_v47 }
 0xc34   : > { %14083 = vmatprep.mubr.msk.f32.mxu0 %vm14391_vm1, %v14390_v8  ;;  %14091 = vmatprep.subr.mxu0 %v14390_v8  ;;  %v9542_v13 = vand.u32 4294901760, %v9541_v12 }
 0xc35   : > { %14108 = vmatprep.mubr.msk.f32.mxu1 %vm14391_vm1, %v14390_v8 }
 0xc36   : > { %14084 = vmatmul.mubr.f32.vlgmr.msra.gmra.mxu0 %v9542_v13  ;;  %14109 = vmatmul.mubr.f32.vlgmr.msra.gmra.mxu1 %v9538_v10 }
 0xc37   : > { %14092 = vmatpush3.msra.mxu0 %v9580_v50  ;;  %14093 = vmatprep.mubr.msk.f32.mxu0 %vm14391_vm1, %v14390_v8 }
 0xc38   : > { %14101 = vmatprep.subr.mxu0 %v14390_v8 }
 0xc3a   : > { %14094 = vmatmul.mubr.f32.vlgmr.msra.gmra.mxu0 %v9539_v11 }
 0xc3b   : > { %14102 = vmatpush3.msra.mxu0 %v9581_v55  ;;  %14103 = vmatprep.mubr.msk.f32.mxu0 %vm14391_vm1, %v14390_v8  ;;  %v10044_v8 = vsub.f32 %v15303_v3, %v15308_v43 }
 0xc3c   : > { %14111 = vmatprep.subr.mxu0 %v15300_v37 }
 0xc3d   : > { %v10045_v15 = vand.u32 4294901760, %v10044_v8 }
 0xc3e   : > { %14104 = vmatmul.mubr.f32.vlgmr.msra.gmra.mxu0 %v9538_v10 }
 0xc3f   : > { %14112 = vmatpush3.msra.mxu0 %v15300_v37  ;;  %14116 = vmatprep.subr.mxu1 %v10045_v15 }
 0xc40   : > { %14121 = vmatprep.subr.mxu0 %v15303_v3  ;;  %14117 = vmatpush3.msra.mxu1 %v10045_v15 }
 0xc41   : > { %14126 = vmatprep.subr.mxu1 %v15300_v37 }
 0xce2   : > { %v9168_v4 = vpop.f32.mrf.mxu1 }
 0xce4   : > { %v14060_v19 = vpop.f32.mrf.mxu1 }
 0xce6   : > { %v9316_v20 = vpop.f32.mrf.mxu1 }
 0xce8   : > { %v14070_v21 = vpop.f32.mrf.mxu1 }
 0xcea   : > { %v9092_v22 = vpop.f32.mrf.mxu0  ;;  %v9462_v5 = vpop.f32.mrf.mxu1 }
 0xceb   : > { %v9169_v24 = vadd.f32 %v9168_v4, %v9092_v22 }
 0xcec   : > { %v14055_v54 = vpop.f32.mrf.mxu0  ;;  %v14080_v23 = vpop.f32.mrf.mxu1 }
 0xcee   : > { %v9242_v25 = vpop.f32.mrf.mxu0  ;;  %v9620_v26 = vpop.f32.mrf.mxu1 }
 0xcef   : > { %v9243_v27 = vadd.f32 %v9242_v25, %v9169_v24 }
 0xcf0   : > { %v14065_v28 = vpop.f32.mrf.mxu0  ;;  %v14090_v16 = vpop.f32.mrf.mxu1 }
 0xcf1   : > { %v9317_v29 = vadd.f32 %v9316_v20, %v9243_v27 }
 0xcf2   : > { %v9390_v30 = vpop.f32.mrf.mxu0  ;;  %v9768_v31 = vpop.f32.mrf.mxu1 }
 0xcf3   : > { %v9391_v17 = vadd.f32 %v9390_v30, %v9317_v29  ;;  %v14252_v29 = vld [vmem:[%s16067_s0] sm:$0xff] }
 0xcf4   : > { %v14075_v32 = vpop.f32.mrf.mxu0  ;;  %v14100_v33 = vpop.f32.mrf.mxu1 }
 0xcf5   : > { %v9463_v34 = vadd.f32 %v9462_v5, %v9391_v17  ;;  %v13162_v5 = vld [vmem:[%s16071_s4] ss:$0 sm:$0xff] }
 0xcf6   : > { %v9544_v35 = vpop.f32.mrf.mxu0  ;;  %v9914_v61 = vpop.f32.mrf.mxu1 }
 0xcf7   : > { %v9919_v18 = vsel %vm1067_vm2, %v9463_v34, 0  ;;  %v9621_v41 = vadd.f32 %v9620_v26, %v9544_v35  ;;  %v14251_v26 = vld [vmem:[%s16067_s0 + $0x8] sm:$0xff] }
 0xcf8   : > { %v9990_v36 = vand.u32 4294901760, %v9919_v18  ;;  %v14085_v38 = vpop.f32.mrf.mxu0  ;;  %v14110_v40 = vpop.f32.mrf.mxu1 }
 0xcfa   : > { %v9991_v42 = vsub.f32 %v9919_v18, %v9990_v36  ;;  %v9694_v44 = vpop.f32.mrf.mxu0  ;;  %14118 = vmatprep.mubr.f32.mxu1 %v9990_v36 }
 0xcfb   : > { %v9695_v45 = vadd.f32 %v9694_v44, %v9621_v41 }
 0xcfc   : > { %v14095_v46 = vpop.f32.mrf.mxu0  ;;  %v9992_v47 = vand.u32 4294901760, %v9991_v42 }
 0xcfd   : > { %v9769_v48 = vadd.f32 %v9768_v31, %v9695_v45 }
 0xcfe   : > { %v9842_v49 = vpop.f32.mrf.mxu0  ;;  %v9993_v50 = vsub.f32 %v9991_v42, %v9992_v47 }
 0xcff   : > { %v9843_v51 = vadd.f32 %v9842_v49, %v9769_v48 }
 0xd00   : > { %v14105_v53 = vpop.f32.mrf.mxu0  ;;  %v9994_v55 = vand.u32 4294901760, %v9993_v50 }
 0xd01   : > { %v9915_v56 = vadd.f32 %v9914_v61, %v9843_v51 }
 0xd02   : > { %14113 = vmatprep.mubr.f32.mxu0 %v9994_v55 }
 0xd03   : > { %v9922_v58 = vsel %vm1067_vm2, %v9915_v56, 0 }
 0xd04   : > { %v10000_v63 = vand.u32 4294901760, %v9922_v58 }
 0xd06   : > { %v10001_v59 = vsub.f32 %v9922_v58, %v10000_v63  ;;  %14119 = vmatmul.mubr.f32.vlgmr.msra.gmra.mxu1 %v10000_v63 }
 0xd07   : > { %14128 = vmatprep.mubr.f32.mxu1 %v9992_v47  ;;  %14127 = vmatpush3.msra.mxu1 %v15300_v37 }
 0xd08   : > { %v10002_v60 = vand.u32 4294901760, %v10001_v59  ;;  %14136 = vmatprep.subr.mxu1 %v15300_v37 }
 0xd0a   : > { %v10003_v62 = vsub.f32 %v10001_v59, %v10002_v60  ;;  %14129 = vmatmul.mubr.f32.vlgmr.msra.gmra.mxu1 %v10002_v60 }
 0xd0b   : > { %14138 = vmatprep.mubr.f32.mxu1 %v9990_v36  ;;  %14137 = vmatpush3.msra.mxu1 %v15300_v37 }
 0xd0c   : > { %v10004_v0 = vand.u32 4294901760, %v10003_v62 }
 0xd0e   : > { %14114 = vmatmul.mubr.f32.vlgmr.msra.gmra.mxu0 %v10004_v0  ;;  %14139 = vmatmul.mubr.f32.vlgmr.msra.gmra.mxu1 %v10000_v63  ;;  %v13163_v0 = vld [vmem:[%s16072_s5] ss:$0 sm:$0xff] }
 0xd0f   : > { %14122 = vmatpush3.msra.mxu0 %v15303_v3  ;;  %14123 = vmatprep.mubr.f32.mxu0 %v9991_v42 }
 0xd10   : > { %14131 = vmatprep.subr.mxu0 %v15308_v43 }
 0xd12   : > { %14124 = vmatmul.mubr.f32.vlgmr.msra.gmra.mxu0 %v10001_v59 }
 0xd13   : > { %14132 = vmatpush3.msra.mxu0 %v15308_v43  ;;  %14133 = vmatprep.mubr.f32.mxu0 %v9990_v36 }
 0xd16   : > { %14134 = vmatmul.mubr.f32.vlgmr.msra.gmra.mxu0 %v10000_v63 }
 0xdc6   : > { %v14120_v1 = vpop.f32.mrf.mxu1 }
 0xdc8   : > { %v10082_v2 = vpop.f32.mrf.mxu1 }
 0xdca   : > { %v14130_v6 = vpop.f32.mrf.mxu1 }
 0xdcc   : > { %v10243_v11 = vpop.f32.mrf.mxu1 }
 0xdce   : > { %v14115_v7 = vpop.f32.mrf.mxu0  ;;  %v14140_v8 = vpop.f32.mrf.mxu1 }
 0xdcf   : > { %v10089_v10 = vadd.f32 %v14120_v1, %v14115_v7 }
 0xdd0   : > { %v9996_v9 = vpop.f32.mrf.mxu0  ;;  %v10403_v22 = vpop.f32.mrf.mxu1 }
 0xdd1   : > { %v10083_v12 = vadd.f32 %v10082_v2, %v9996_v9  ;;  %v13164_v9 = vld [vmem:[%s16073_s6] ss:$0 sm:$0xff] }
 0xdd2   : > { %v14125_v39 = vpop.f32.mrf.mxu0 }
 0xdd3   : > { %v10170_v13 = vadd.f32 %v14125_v39, %v10089_v10 }
 0xdd4   : > { %v10162_v14 = vpop.f32.mrf.mxu0 }
 0xdd5   : > { %v10163_v37 = vadd.f32 %v10162_v14, %v10083_v12  ;;  %v10252_v3 = vadd.f32 %v14130_v6, %v10170_v13 }
 0xdd6   : > { %v14135_v15 = vpop.f32.mrf.mxu0 }
 0xdd7   : > { %v10332_v4 = vadd.f32 %v14135_v15, %v10252_v3  ;;  %v10244_v19 = vadd.f32 %v10243_v11, %v10163_v37 }
 0xdd8   : > { %v10325_v43 = vpop.f32.mrf.mxu0 }
 0xdd9   : > { %v10410_v20 = vadd.f32 %v14140_v8, %v10332_v4  ;;  %v10326_v21 = vadd.f32 %v10325_v43, %v10244_v19 }
 0xddb   : > { %v10414_v54 = vadd.f32 %v10410_v20, %v15254_v52  ;;  %v10404_v23 = vadd.f32 %v10403_v22, %v10326_v21 }
 0xddd   : > { %v10413_v24 = vadd.f32 %v10404_v23, %v15257_v57  ;;  %v10423_v25 = vadd.f32 %v13162_v5, %v10414_v54 }
 0xddf   : > { %v10425_v27 = vadd.f32 %v14251_v26, %v10423_v25  ;;  %v10422_v28 = vadd.f32 %v13162_v5, %v10413_v24 }
 0xde1   : > { %v10431_v16 = vsel %vm525_vm0, %v10425_v27, 0.0  ;;  %v10424_v30 = vadd.f32 %v14252_v29, %v10422_v28 }
 0xde2   : > { %10432 = vadd.xlane.f32.xlu0 %v10431_v16 }
 0xde3   : > { %v10428_v52 = vsel %vm525_vm0, %v10424_v30, 0.0 }
 0xde4   : > { %10429 = vadd.xlane.f32.xlu1 %v10428_v52 }
 0xe6b   : > { %v10433_v31 = vpop.xlane.xlu0 %10432 }
 0xe6c   : > { %v10436_v57 = vmul.f32 0.03125, %v10433_v31 }
 0xe6d   : > { %v10430_v17 = vpop.xlane.xlu1 %10429 }
 0xe6e   : > { %v10438_v32 = vsub.f32 %v10425_v27, %v10436_v57  ;;  %v10435_v33 = vmul.f32 0.03125, %v10430_v17 }
 0xe70   : > { %v10437_v34 = vsub.f32 %v10424_v30, %v10435_v33  ;;  %v10440_v35 = vmul.f32 %v10438_v32, %v10438_v32 }
 0xe72   : > { %v10444_v61 = vsel %vm525_vm0, %v10440_v35, 0.0  ;;  %v10439_v18 = vmul.f32 %v10437_v34, %v10437_v34 }
 0xe73   : > { %10445 = vadd.xlane.f32.xlu0 %v10444_v61 }
 0xe74   : > { %v10441_v36 = vsel %vm525_vm0, %v10439_v18, 0.0 }
 0xe75   : > { %10442 = vadd.xlane.f32.xlu1 %v10441_v36 }
 0xefc   : > { %v10446_v38 = vpop.xlane.xlu0 %10445 }
 0xefd   : > { %v10448_v40 = vmul.f32 0.032258064, %v10446_v38 }
 0xefe   : > { %v10443_v41 = vpop.xlane.xlu1 %10442 }
 0xeff   : > { %14243 = vrsqrt.f32 %v10448_v40  ;;  %v10447_v42 = vmul.f32 0.032258064, %v10443_v41  ;;  %vm10458_vm3 = vcmp.eq.f32.partialorder %v10448_v40, inf  ;;  %v10461_v46 = vand.u32 2147483648, %v10448_v40 }
 0xf00   : > { %vm10460_vm4 = vcmp.eq.f32.partialorder %v10448_v40, 0.0 }
 0xf01   : > { %14245 = vrsqrt.f32 %v10447_v42  ;;  %vm10451_vm5 = vcmp.eq.f32.partialorder %v10447_v42, inf  ;;  %v10454_v53 = vand.u32 2147483648, %v10447_v42  ;;  %vm10453_vm6 = vcmp.eq.f32.partialorder %v10447_v42, 0.0 }
 0xf0c   : > { %v14244_v44 = vpop.eup %14243 }
 0xf0d   : > { %v10457_v45 = vmul.f32 %v14244_v44, %v10448_v40 }
 0xf0e   : > { %v14246_v47 = vpop.eup %14245 }
 0xf0f   : > { %v10459_v48 = vsel %vm10458_vm3, %v10448_v40, %v10457_v45  ;;  %v10450_v50 = vmul.f32 %v14246_v47, %v10447_v42 }
 0xf10   : > { %v10462_v49 = vsel %vm10460_vm4, %v10461_v46, %v10459_v48 }
 0xf11   : > { %v10464_v51 = vadd.f32 1e-06, %v10462_v49  ;;  %v10452_v55 = vsel %vm10451_vm5, %v10447_v42, %v10450_v50 }
 0xf12   : > { %v10455_v56 = vsel %vm10453_vm6, %v10454_v53, %v10452_v55 }
 0xf13   : > { %14247 = vrcp.f32 %v10464_v51  ;;  %v10463_v58 = vadd.f32 1e-06, %v10455_v56 }
 0xf15   : > { %14249 = vrcp.f32 %v10463_v58 }
 0xf20   : > { %v14248_v63 = vpop.eup %14247 }
 0xf21   : > { %v10468_v59 = vmul.f32 %v14248_v63, %v10464_v51 }
 0xf22   : > { %v14250_v60 = vpop.eup %14249 }
 0xf23   : > { %v10470_v62 = vsub.f32 2.0, %v10468_v59  ;;  %v10467_v1 = vmul.f32 %v14250_v60, %v10463_v58 }
 0xf25   : > { %v10472_v2 = vmul.f32 %v14248_v63, %v10470_v62  ;;  %v10469_v6 = vsub.f32 2.0, %v10467_v1 }
 0xf27   : > { %v10480_v7 = vmul.f32 %v13163_v0, %v10472_v2  ;;  %v10471_v10 = vmul.f32 %v14250_v60, %v10469_v6 }
 0xf29   : > { %v10482_v11 = vmul.f32 %v10480_v7, %v10438_v32  ;;  %v10479_v39 = vmul.f32 %v13163_v0, %v10471_v10 }
 0xf2b   : > { %v10490_v12 = vadd.f32 %v13164_v9, %v10482_v11  ;;  %v10481_v13 = vmul.f32 %v10479_v39, %v10437_v34 }
 0xf2d   : > { %10492 = vst.msk [vmem:[#allocation2 + $0x8] sm:$0xff] %vm525_vm0, %v10490_v12  ;;  %v10489_v14 = vadd.f32 %v13164_v9, %v10481_v13 }
 0xf2f   : > { %10491 = vst.msk [vmem:[#allocation2] sm:$0xff] %vm525_vm0, %v10489_v14 }
 0xf30 PF: > { %v10510_v37 = vld [vmem:[%s14613_s21 + $0x68] sm:$0xff]  ;;  %v10509_v3 = vld [vmem:[%s14613_s21 + $0x60] sm:$0xff]  ;;  %vm10535_vm7 = vcmask 261120   ;;  %v14403_v22 = vmov 0.0   ;;  %v10512_v14 = vld [vmem:[%s14613_s21 + $0x78] sm:$0xff]  ;;  %p13165_p1 = scmp.ne.s32.totalorder %s14496_s29, 3 }
 0xf31   : > { %v10506_v8 = vld [vmem:[%s14613_s21 + $0x48] sm:$0xff]  ;;  %v15348_v15 = vand.u32 4294901760, %v10510_v37  ;;  %v15350_v4 = vand.u32 4294901760, %v10509_v3  ;;  %v10505_v43 = vld [vmem:[%s14613_s21 + $0x40] sm:$0xff]  ;;  %10614 = vmatprep.mubr.f32.mxu0 %v14403_v22  ;;  %10741 = vmatprep.mubr.f32.mxu1 %v14403_v22  ;;  %s16101_s30 = sld [smem:[#allocation17_spill]] (!%p13165_p1) }
 0xf32   : > { %v15352_v19 = vand.u32 4294901760, %v10506_v8  ;;  %v10502_v20 = vld [vmem:[%s14613_s21 + $0x28] sm:$0xff]  ;;  %v10501_v21 = vld [vmem:[%s14613_s21 + $0x20] sm:$0xff]  ;;  %v15359_v5 = vand.u32 4294901760, %v10505_v43 }
 0xf33   : > { %v15361_v54 = vand.u32 4294901760, %v10502_v20  ;;  %v15363_v23 = vand.u32 4294901760, %v10501_v21  ;;  %v10498_v24 = vld [vmem:[%s14613_s21 + $0x8] sm:$0xff]  ;;  %v10497_v25 = vld [vmem:[%s14613_s21] sm:$0xff]  ;;  %10567 = vmatprep.subr.mxu0 %v15348_v15  ;;  %v15371_v28 = vsub.f32 %v10510_v37, %v15348_v15  ;;  %v15376_v29 = vsub.f32 %v10509_v3, %v15350_v4  ;;  %v10511_v37 = vld [vmem:[%s14613_s21 + $0x70] sm:$0xff] }
 0xf34   : > { %v15368_v27 = vand.u32 4294901760, %v10498_v24  ;;  %v15373_v16 = vand.u32 4294901760, %v10497_v25  ;;  %v10496_v30 = vld [vmem:[#allocation2 + $0x8] sm:$0xff]  ;;  %10569 = vmatpush1.msra.mxu0 %v15350_v4  ;;  %v15381_v31 = vsub.f32 %v10506_v8, %v15352_v19  ;;  %v15384_v57 = vsub.f32 %v10505_v43, %v15359_v5  ;;  %v10508_v3 = vld [vmem:[%s14613_s21 + $0x58] sm:$0xff]  ;;  %v10507_v43 = vld [vmem:[%s14613_s21 + $0x50] sm:$0xff] }
 0xf35   : > { %v15387_v17 = vsub.f32 %v10502_v20, %v15361_v54  ;;  %10571 = vmatprep.subr.mxu0 %v15352_v19  ;;  %v10663_v32 = vand.u32 4294901760, %v15371_v28  ;;  %v10669_v33 = vand.u32 4294901760, %v15376_v29  ;;  %v15395_v35 = vsub.f32 %v10501_v21, %v15363_v23  ;;  %v10504_v21 = vld [vmem:[%s14613_s21 + $0x38] sm:$0xff] }
 0xf36   : > { %v10495_v26 = vld [vmem:[#allocation2] sm:$0xff]  ;;  %10573 = vmatpush1.msra.mxu0 %v15359_v5  ;;  %v10675_v61 = vand.u32 4294901760, %v15381_v31  ;;  %v10681_v18 = vand.u32 4294901760, %v15384_v57  ;;  %v10540_v38 = vsel %vm10535_vm7, %v10496_v30, 0  ;;  %v15440_v60 = vsub.f32 %v10498_v24, %v15368_v27  ;;  %v10500_v30 = vld [vmem:[%s14613_s21 + $0x18] sm:$0xff] }
 0xf37   : > { %v10537_v52 = vsel %vm10535_vm7, %v10495_v26, 0  ;;  %v10687_v36 = vand.u32 4294901760, %v15387_v17  ;;  %10575 = vmatprep.subr.mxu0 %v15361_v54  ;;  %v10664_v40 = vsub.f32 %v15371_v28, %v10663_v32  ;;  %v10670_v41 = vsub.f32 %v15376_v29, %v10669_v33  ;;  %v10503_v26 = vld [vmem:[%s14613_s21 + $0x30] sm:$0xff] }
 0xf38   : > { %v15392_v34 = vand.u32 4294901760, %v10537_v52  ;;  %v10693_v44 = vand.u32 4294901760, %v15395_v35  ;;  %10577 = vmatpush1.msra.mxu0 %v15363_v23  ;;  %v10676_v45 = vsub.f32 %v15381_v31, %v10675_v61  ;;  %v10682_v46 = vsub.f32 %v15384_v57, %v10681_v18 }
 0xf39   : > { %v10688_v47 = vsub.f32 %v15387_v17, %v10687_v36  ;;  %v15423_v48 = vand.u32 4294901760, %v10540_v38  ;;  %10579 = vmatprep.subr.mxu0 %v15368_v27  ;;  %v10665_v49 = vand.u32 4294901760, %v10664_v40  ;;  %v10671_v50 = vand.u32 4294901760, %v10670_v41 }
 0xf3a   : > { %v15410_v42 = vsub.f32 %v10537_v52, %v15392_v34  ;;  %v10694_v53 = vsub.f32 %v15395_v35, %v10693_v44  ;;  %10581 = vmatpush1.msra.mxu0 %v15373_v16  ;;  %v10677_v55 = vand.u32 4294901760, %v10676_v45  ;;  %v10683_v56 = vand.u32 4294901760, %v10682_v46 }
 0xf3b   : > { %v15434_v58 = vsub.f32 %v10540_v38, %v15423_v48  ;;  %10666 = vmatprep.subr.mxu1 %v10665_v49  ;;  %10782 = vmatprep.subr.mxu0 %v15371_v28  ;;  %v10689_v59 = vand.u32 4294901760, %v10688_v47  ;;  %v15443_v62 = vsub.f32 %v10497_v25, %v15373_v16  ;;  %v10699_v6 = vand.u32 4294901760, %v15440_v60 }
 0xf3c   : > { %v15427_v51 = vand.u32 4294901760, %v15410_v42  ;;  %10672 = vmatpush1.msra.mxu1 %v10671_v50  ;;  %v10695_v2 = vand.u32 4294901760, %v10694_v53  ;;  %v15483_v8 = vand.u32 4294901760, %v10512_v14  ;;  %v15488_v20 = vand.u32 4294901760, %v10511_v37 }
 0xf3d   : > { %v15446_v0 = vand.u32 4294901760, %v15434_v58  ;;  %10678 = vmatprep.subr.mxu1 %v10677_v55  ;;  %v10705_v7 = vand.u32 4294901760, %v15443_v62  ;;  %v10700_v10 = vsub.f32 %v15440_v60, %v10699_v6  ;;  %v15494_v24 = vand.u32 4294901760, %v10508_v3 }
 0xf3e   : > { %v10618_v63 = vsub.f32 %v15410_v42, %v15427_v51  ;;  %10684 = vmatpush1.msra.mxu1 %v10683_v56  ;;  %v15499_v25 = vand.u32 4294901760, %v10507_v43  ;;  %v15505_v28 = vsub.f32 %v10512_v14, %v15483_v8  ;;  %v15514_v52 = vsub.f32 %v10511_v37, %v15488_v20  ;;  %v11741_v14 = vld [vmem:[%s14619_s22 + $0x28] sm:$0xff] }
 0xf3f   : > { %v10629_v9 = vsub.f32 %v15434_v58, %v15446_v0  ;;  %10690 = vmatprep.subr.mxu1 %v10689_v59  ;;  %v10706_v11 = vsub.f32 %v15443_v62, %v10705_v7  ;;  %v10701_v12 = vand.u32 4294901760, %v10700_v10 }
 0xf40   : > { %v15448_v1 = vand.u32 4294901760, %v10618_v63  ;;  %10696 = vmatpush1.msra.mxu1 %v10695_v2  ;;  %v11261_v38 = vand.u32 4294901760, %v15514_v52 }
 0xf41   : > { %v15463_v39 = vand.u32 4294901760, %v10629_v9  ;;  %v10707_v13 = vand.u32 4294901760, %v10706_v11  ;;  %10702 = vmatprep.subr.mxu1 %v10701_v12 }
 0xf42   : > { %10620 = vmatmul.mubr.f32.vlgmr.msra.gmra.mxu0 %v15448_v1 }
 0xf43   : > { %10785 = vmatpush1.msra.mxu0 %v15376_v29  ;;  %10625 = vmatprep.mubr.f32.mxu0 %v14403_v22  ;;  %v15507_v29 = vand.u32 4294901760, %v10504_v21 }
 0xf44   : > { %10788 = vmatprep.subr.mxu0 %v15381_v31  ;;  %10708 = vmatpush1.msra.mxu1 %v10707_v13  ;;  %v10499_v31 = vld [vmem:[%s14613_s21 + $0x10] sm:$0xff] }
 0xf45   : > { %10791 = vmatpush1.msra.mxu0 %v15384_v57  ;;  %10743 = vmatmul.mubr.f32.vlgmr.msra.gmra.mxu1 %v15392_v34  ;;  %v15528_v57 = vsub.f32 %v10507_v43, %v15499_v25  ;;  %v11740_v43 = vld [vmem:[%s14619_s22 + $0x20] sm:$0xff] }
 0xf46   : > { %10631 = vmatmul.mubr.f32.gmra.mxu0 %v15463_v39  ;;  %10794 = vmatprep.subr.mxu0 %v15387_v17  ;;  %v11255_v17 = vand.u32 4294901760, %v15505_v28 }
 0xf47   : > { %10797 = vmatpush1.msra.mxu0 %v15395_v35  ;;  %10878 = vmatprep.subr.mxu1 %v15348_v15  ;;  %v11273_v41 = vand.u32 4294901760, %v15528_v57 }
 0xf48   : > { %10800 = vmatprep.subr.mxu0 %v15440_v60  ;;  %10836 = vmatprep.mubr.f32.mxu0 %v14403_v22 }
 0xf49   : > { %10803 = vmatpush1.msra.mxu0 %v15443_v62  ;;  %10880 = vmatpush1.msra.mxu1 %v15350_v4 }
 0xf4a   : > { %10839 = vmatmul.mubr.f32.vlgmr.msra.gmra.mxu0 %v15410_v42  ;;  %10882 = vmatprep.subr.mxu1 %v15352_v19 }
 0xf4b   : > { %10971 = vmatprep.subr.mxu0 %v10663_v32  ;;  %10748 = vmatprep.mubr.f32.mxu1 %v14403_v22  ;;  %v15521_v32 = vsub.f32 %v10508_v3, %v15494_v24 }
 0xf4c   : > { %10884 = vmatpush1.msra.mxu1 %v15359_v5  ;;  %10975 = vmatpush1.msra.mxu0 %v10669_v33  ;;  %v15523_v33 = vand.u32 4294901760, %v10503_v26 }
 0xf4d   : > { %10750 = vmatmul.mubr.f32.gmra.mxu1 %v15423_v48  ;;  %10886 = vmatprep.subr.mxu1 %v15361_v54  ;;  %v11267_v35 = vand.u32 4294901760, %v15521_v32 }
 0xf4e   : > { %10979 = vmatprep.subr.mxu0 %v10675_v61  ;;  %10844 = vmatprep.mubr.f32.mxu0 %v14403_v22  ;;  %v15530_v61 = vand.u32 4294901760, %v10500_v30  ;;  %v15550_v40 = vsub.f32 %v10503_v26, %v15523_v33 }
 0xf4f   : > { %10888 = vmatpush1.msra.mxu1 %v15363_v23  ;;  %10983 = vmatpush1.msra.mxu0 %v10681_v18  ;;  %v15537_v18 = vsub.f32 %v10504_v21, %v15507_v29 }
 0xf50   : > { %10890 = vmatprep.subr.mxu1 %v15368_v27  ;;  %10847 = vmatmul.mubr.f32.gmra.mxu0 %v15434_v58  ;;  %v11285_v47 = vand.u32 4294901760, %v15550_v40 }
 0xf51   : > { %10987 = vmatprep.subr.mxu0 %v10687_v36  ;;  %10892 = vmatpush1.msra.mxu1 %v15373_v16  ;;  %v15539_v36 = vand.u32 4294901760, %v10499_v31  ;;  %v11279_v45 = vand.u32 4294901760, %v15537_v18 }
 0xf52   : > { %10925 = vmatprep.mubr.f32.mxu1 %v14403_v22  ;;  %10991 = vmatpush1.msra.mxu0 %v10693_v44  ;;  %v11256_v44 = vsub.f32 %v15505_v28, %v11255_v17 }
 0xf53   : > { %10929 = vmatmul.mubr.f32.vlgmr.msra.gmra.mxu1 %v15427_v51  ;;  %10995 = vmatprep.subr.mxu0 %v10699_v6  ;;  %v15565_v46 = vsub.f32 %v10499_v31, %v15539_v36  ;;  %v11280_v50 = vsub.f32 %v15537_v18, %v11279_v45  ;;  %v11745_v6 = vld [vmem:[%s14619_s22 + $0x48] sm:$0xff] }
 0xf54   : > { %11072 = vmatprep.subr.mxu1 %v15348_v15  ;;  %10999 = vmatpush1.msra.mxu0 %v10705_v7  ;;  %v15556_v15 = vsub.f32 %v10500_v30, %v15530_v61  ;;  %v11744_v7 = vld [vmem:[%s14619_s22 + $0x40] sm:$0xff]  ;;  %v11737_v30 = vld [vmem:[%s14619_s22 + $0x8] sm:$0xff] }
 0xf55   : > { %11032 = vmatprep.mubr.f32.mxu0 %v14403_v22  ;;  %11074 = vmatpush1.msra.mxu1 %v15350_v4  ;;  %v11262_v4 = vsub.f32 %v15514_v52, %v11261_v38  ;;  %v11297_v53 = vand.u32 4294901760, %v15565_v46  ;;  %v11281_v63 = vand.u32 4294901760, %v11280_v50  ;;  %v15695_v10 = vand.u32 4294901760, %v11744_v7 }
 0xf56   : > { %11034 = vmatmul.mubr.f32.vlgmr.msra.gmra.mxu0 %v15392_v34  ;;  %11076 = vmatprep.subr.mxu1 %v15352_v19  ;;  %v11268_v19 = vsub.f32 %v15521_v32, %v11267_v35  ;;  %v11291_v49 = vand.u32 4294901760, %v15556_v15 }
 0xf57   : > { %10934 = vmatprep.mubr.f32.mxu1 %v14403_v22  ;;  %11078 = vmatpush1.msra.mxu1 %v15359_v5  ;;  %v11274_v5 = vsub.f32 %v15528_v57, %v11273_v41  ;;  %v11298_v59 = vsub.f32 %v15565_v46, %v11297_v53  ;;  %v15708_v13 = vsub.f32 %v11744_v7, %v15695_v10 }
 0xf58   : > { %11039 = vmatprep.mubr.f32.mxu0 %v14403_v22  ;;  %10938 = vmatmul.mubr.f32.gmra.mxu1 %v15446_v0  ;;  %v11269_v55 = vand.u32 4294901760, %v11268_v19 }
 0xf59   : > { %11080 = vmatprep.subr.mxu1 %v15361_v54  ;;  %11119 = vmatprep.mubr.f32.mxu1 %v14403_v22  ;;  %v11257_v54 = vand.u32 4294901760, %v11256_v44  ;;  %v11275_v56 = vand.u32 4294901760, %v11274_v5  ;;  %v11299_v2 = vand.u32 4294901760, %v11298_v59  ;;  %v11899_v21 = vand.u32 4294901760, %v15708_v13 }
 0xf5a   : > { %11082 = vmatpush1.msra.mxu1 %v15363_v23  ;;  %11041 = vmatmul.mubr.f32.gmra.mxu0 %v15423_v48  ;;  %v11263_v23 = vand.u32 4294901760, %v11262_v4 }
 0xf5b   : > { %11084 = vmatprep.subr.mxu1 %v15368_v27  ;;  %11159 = vmatprep.subr.mxu0 %v15483_v8  ;;  %v11286_v27 = vsub.f32 %v15550_v40, %v11285_v47 }
 0xf5c   : > { %11086 = vmatpush1.msra.mxu1 %v15373_v16  ;;  %11161 = vmatpush1.msra.mxu0 %v15488_v20  ;;  %v11292_v16 = vsub.f32 %v15556_v15, %v11291_v49 }
 0xf5d   : > { %11121 = vmatmul.mubr.f32.vlgmr.msra.gmra.mxu1 %v15392_v34  ;;  %11163 = vmatprep.subr.mxu0 %v15494_v24  ;;  %v11287_v60 = vand.u32 4294901760, %v11286_v27 }
 0xf5e   : > { %11126 = vmatprep.mubr.f32.mxu1 %v14403_v22  ;;  %11258 = vmatprep.subr.mxu1 %v11257_v54  ;;  %v11293_v62 = vand.u32 4294901760, %v11292_v16 }
 0xf5f   : > { %11165 = vmatpush1.msra.mxu0 %v15499_v25  ;;  %11264 = vmatpush1.msra.mxu1 %v11263_v23  ;;  %v15773_v23 = vld [vmem:[%s505_s19] sm:$0xf] }
 0xf60   : > { %11167 = vmatprep.subr.mxu0 %v15507_v29  ;;  %11270 = vmatprep.subr.mxu1 %v11269_v55 }
 0xf61   : > { %11128 = vmatmul.mubr.f32.gmra.mxu1 %v15423_v48  ;;  %11169 = vmatpush1.msra.mxu0 %v15523_v33 }
 0xf62   : > { %11276 = vmatpush1.msra.mxu1 %v11275_v56  ;;  %11171 = vmatprep.subr.mxu0 %v15530_v61 }
 0xf63   : > { %11282 = vmatprep.subr.mxu1 %v11281_v63  ;;  %11173 = vmatpush1.msra.mxu0 %v15539_v36 }
 0xf64   : > { %11206 = vmatprep.mubr.f32.mxu0 %v14403_v22  ;;  %11288 = vmatpush1.msra.mxu1 %v11287_v60 }
 0xf65   : > { %11212 = vmatmul.mubr.f32.vlgmr.msra.gmra.mxu0 %v15448_v1  ;;  %11294 = vmatprep.subr.mxu1 %v11293_v62 }
 0xf66   : > { %11374 = vmatprep.subr.mxu0 %v15505_v28  ;;  %11300 = vmatpush1.msra.mxu1 %v11299_v2  ;;  %v11900_v28 = vsub.f32 %v15708_v13, %v11899_v21 }
 0xf67   : > { %11333 = vmatprep.mubr.f32.mxu1 %v14403_v22  ;;  %11377 = vmatpush1.msra.mxu0 %v15514_v52 }
 0xf68   : > { %11335 = vmatmul.mubr.f32.vlgmr.msra.gmra.mxu1 %v15392_v34  ;;  %11380 = vmatprep.subr.mxu0 %v15521_v32  ;;  %v15735_v32 = vand.u32 4294901760, %v11737_v30 }
 0xf69   : > { %11470 = vmatprep.subr.mxu1 %v15483_v8  ;;  %11217 = vmatprep.mubr.f32.mxu0 %v14403_v22 }
 0xf6a   : > { %11383 = vmatpush1.msra.mxu0 %v15528_v57  ;;  %11472 = vmatpush1.msra.mxu1 %v15488_v20  ;;  %v11901_v57 = vand.u32 4294901760, %v11900_v28 }
 0xf6b   : > { %11223 = vmatmul.mubr.f32.gmra.mxu0 %v15463_v39  ;;  %11386 = vmatprep.subr.mxu0 %v15537_v18 }
 0xf6c   : > { %11474 = vmatprep.subr.mxu1 %v15494_v24  ;;  %11340 = vmatprep.mubr.f32.mxu1 %v14403_v22 }
 0xf6d   : > { %11389 = vmatpush1.msra.mxu0 %v15550_v40  ;;  %11476 = vmatpush1.msra.mxu1 %v15499_v25 }
 0xf6e   : > { %11392 = vmatprep.subr.mxu0 %v15556_v15  ;;  %11342 = vmatmul.mubr.f32.gmra.mxu1 %v15423_v48 }
 0xf6f   : > { %11478 = vmatprep.subr.mxu1 %v15507_v29  ;;  %11395 = vmatpush1.msra.mxu0 %v15565_v46 }
 0xf70   : > { %11428 = vmatprep.mubr.f32.mxu0 %v14403_v22  ;;  %11480 = vmatpush1.msra.mxu1 %v15523_v33 }
 0xf71   : > { %11431 = vmatmul.mubr.f32.vlgmr.msra.gmra.mxu0 %v15410_v42  ;;  %11482 = vmatprep.subr.mxu1 %v15530_v61  ;;  %v11749_v42 = vld [vmem:[%s14619_s22 + $0x68] sm:$0xff] }
 0xf72   : > { %11563 = vmatprep.subr.mxu0 %v11255_v17  ;;  %11484 = vmatpush1.msra.mxu1 %v15539_v36 }
 0xf73   : > { %11517 = vmatprep.mubr.f32.mxu1 %v14403_v22  ;;  %11567 = vmatpush1.msra.mxu0 %v11261_v38 }
 0xf74   : > { %11521 = vmatmul.mubr.f32.vlgmr.msra.gmra.mxu1 %v15427_v51  ;;  %11571 = vmatprep.subr.mxu0 %v11267_v35  ;;  %v15676_v51 = vand.u32 4294901760, %v11749_v42 }
 0xf75   : > { %11664 = vmatprep.subr.mxu1 %v15483_v8  ;;  %11436 = vmatprep.mubr.f32.mxu0 %v14403_v22  ;;  %v15713_v8 = vand.u32 4294901760, %v11741_v14 }
 0xf76   : > { %11575 = vmatpush1.msra.mxu0 %v11273_v41  ;;  %11666 = vmatpush1.msra.mxu1 %v15488_v20  ;;  %v15682_v1 = vsub.f32 %v11749_v42, %v15676_v51 }
 0xf77   : > { %11439 = vmatmul.mubr.f32.gmra.mxu0 %v15434_v58  ;;  %11579 = vmatprep.subr.mxu0 %v11279_v45  ;;  %v11748_v58 = vld [vmem:[%s14619_s22 + $0x60] sm:$0xff]  ;;  %v15723_v26 = vsub.f32 %v11741_v14, %v15713_v8 }
 0xf78   : > { %11668 = vmatprep.subr.mxu1 %v15494_v24  ;;  %11526 = vmatprep.mubr.f32.mxu1 %v14403_v22  ;;  %v15717_v24 = vand.u32 4294901760, %v11740_v43 }
 0xf79   : > { %11583 = vmatpush1.msra.mxu0 %v11285_v47  ;;  %11670 = vmatpush1.msra.mxu1 %v15499_v25  ;;  %v11905_v31 = vand.u32 4294901760, %v15723_v26  ;;  %v10515_v47 = vlaneseq }
 0xf7a   : > { %11587 = vmatprep.subr.mxu0 %v11291_v49  ;;  %11530 = vmatmul.mubr.f32.gmra.mxu1 %v15446_v0  ;;  %v15679_v0 = vand.u32 4294901760, %v11748_v58 }
 0xf7b   : > { %11672 = vmatprep.subr.mxu1 %v15507_v29  ;;  %11591 = vmatpush1.msra.mxu0 %v11297_v53  ;;  %v15730_v29 = vsub.f32 %v11740_v43, %v15717_v24  ;;  %v11906_v18 = vsub.f32 %v15723_v26, %v11905_v31  ;;  %v15765_v49 = vshrl.u32 %v10515_v47, 7 }
 0xf7c   : > { %11624 = vmatprep.mubr.f32.mxu0 %v14403_v22  ;;  %11674 = vmatpush1.msra.mxu1 %v15523_v33  ;;  %v11736_v33 = vld [vmem:[%s14619_s22] sm:$0xff] }
 0xf7d   : > { %11626 = vmatmul.mubr.f32.vlgmr.msra.gmra.mxu0 %v15392_v34  ;;  %11676 = vmatprep.subr.mxu1 %v15530_v61  ;;  %v11911_v61 = vand.u32 4294901760, %v15730_v29  ;;  %v15739_v17 = vand.u32 4294901760, %v11736_v33  ;;  %v11907_v40 = vand.u32 4294901760, %v11906_v18  ;;  %v10517_v53 = vsub.s32 0, %v15765_v49 }
 0xf7e   : > { %11711 = vmatprep.mubr.f32.mxu1 %v14403_v22  ;;  %11678 = vmatpush1.msra.mxu1 %v15539_v36  ;;  %v15745_v36 = vsub.f32 %v11737_v30, %v15735_v32  ;;  %v10521_v63 = vsub.s32 1, %v15765_v49 }
 0xf7f   : > { %11631 = vmatprep.mubr.f32.mxu0 %v14403_v22  ;;  %11713 = vmatmul.mubr.f32.vlgmr.msra.gmra.mxu1 %v15392_v34  ;;  %v15686_v34 = vsub.f32 %v11748_v58, %v15679_v0  ;;  %v11912_v38 = vsub.f32 %v15730_v29, %v11911_v61  ;;  %v15752_v35 = vsub.f32 %v11736_v33, %v15739_v17 }
 0xf80   : > { %11718 = vmatprep.mubr.f32.mxu1 %v14403_v22  ;;  %11777 = vmatprep.subr.mxu0 %v15676_v51  ;;  %v11881_v22 = vand.u32 4294901760, %v15682_v1  ;;  %v11917_v41 = vand.u32 4294901760, %v15745_v36  ;;  %v10518_v16 = vrot.slane %v15773_v23, %v10517_v53  ;;  %v10522_v42 = vrot.slane %v15773_v23, %v10521_v63 }
 0xf81   : > { %11633 = vmatmul.mubr.f32.gmra.mxu0 %v15423_v48  ;;  %v11887_v9 = vand.u32 4294901760, %v15686_v34  ;;  %v11913_v15 = vand.u32 4294901760, %v11912_v38  ;;  %v11923_v44 = vand.u32 4294901760, %v15752_v35 }
 0xf82   : > { %11779 = vmatpush1.xpose.msra.mxu0 %v15679_v0  ;;  %v11882_v11 = vsub.f32 %v15682_v1, %v11881_v22  ;;  %v11918_v45 = vsub.f32 %v15745_v36, %v11917_v41 }
 0xf83   : > { %11720 = vmatmul.mubr.f32.gmra.mxu1 %v15423_v48  ;;  %v15691_v48 = vand.u32 4294901760, %v11745_v6  ;;  %v11888_v12 = vsub.f32 %v15686_v34, %v11887_v9  ;;  %v11924_v46 = vsub.f32 %v15752_v35, %v11923_v44 }
 0xf84   : > { %v11883_v37 = vand.u32 4294901760, %v11882_v11  ;;  %v11919_v4 = vand.u32 4294901760, %v11918_v45 }
 0xf85   : > { %v15701_v39 = vsub.f32 %v11745_v6, %v15691_v48  ;;  %11781 = vmatprep.subr.mxu0 %v15691_v48  ;;  %v11889_v20 = vand.u32 4294901760, %v11888_v12  ;;  %v11925_v19 = vand.u32 4294901760, %v11924_v46 }
 0xf86   : > { %11783 = vmatpush1.xpose.msra.mxu0 %v15695_v10  ;;  %11884 = vmatprep.subr.mxu1 %v11883_v37 }
 0xf87   : > { %v11893_v3 = vand.u32 4294901760, %v15701_v39  ;;  %11785 = vmatprep.subr.mxu0 %v15713_v8  ;;  %11890 = vmatpush1.xpose.msra.mxu1 %v11889_v20 }
 0xf89   : > { %v11894_v25 = vsub.f32 %v15701_v39, %v11893_v3 }
 0xf8a   : > { %11787 = vmatpush1.xpose.msra.mxu0 %v15717_v24 }
 0xf8b   : > { %v11895_v52 = vand.u32 4294901760, %v11894_v25  ;;  %11789 = vmatprep.subr.mxu0 %v15735_v32 }
 0xf8d   : > { %11896 = vmatprep.subr.mxu1 %v11895_v52 }
 0xf8e   : > { %11902 = vmatpush1.xpose.msra.mxu1 %v11901_v57  ;;  %11791 = vmatpush1.xpose.msra.mxu0 %v15739_v17 }
 0xf8f   : > { %12000 = vmatprep.subr.mxu0 %v15682_v1  ;;  %11908 = vmatprep.subr.mxu1 %v11907_v40 }
 0xf92   : > { %11914 = vmatpush1.xpose.msra.mxu1 %v11913_v15 }
 0xf93   : > { %11920 = vmatprep.subr.mxu1 %v11919_v4 }
 0xf96   : > { %11926 = vmatpush1.xpose.msra.mxu1 %v11925_v19 }
 0xf97   : > { %12098 = vmatprep.subr.mxu1 %v15676_v51 }
0x1002   : > { %v10621_v5 = vpop.f32.mrf.mxu0 }
0x1003   : > { %v10622_v2 = vadd.f32 %v10621_v5, %v10518_v16 }
0x1004   : > { %v10623_v54 = vpop.f32.mrf.mxu0 }
0x1005   : > { %v10744_v27 = vpop.f32.mrf.mxu1  ;;  %v10624_v7 = vadd.f32 %v10623_v54, %v10522_v42 }
0x1006   : > { %v10632_v50 = vpop.f32.mrf.mxu0  ;;  %v10745_v12 = vadd.f32 %v10744_v27, %v10622_v2 }
0x1007   : > { %v10746_v56 = vpop.f32.mrf.mxu1  ;;  %v10633_v11 = vadd.f32 %v10632_v50, %v10518_v16 }
0x1008   : > { %v10634_v55 = vpop.f32.mrf.mxu0  ;;  %v10747_v43 = vadd.f32 %v10746_v56, %v10624_v7 }
0x1009   : > { %v10635_v25 = vadd.f32 %v10634_v55, %v10522_v42 }
0x100a   : > { %v10840_v59 = vpop.f32.mrf.mxu0 }
0x100b   : > { %v10841_v28 = vadd.f32 %v10840_v59, %v10745_v12 }
0x100c   : > { %v10842_v62 = vpop.f32.mrf.mxu0 }
0x100d   : > { %v10751_v60 = vpop.f32.mrf.mxu1  ;;  %v10843_v33 = vadd.f32 %v10842_v62, %v10747_v43 }
0x100e   : > { %v10752_v30 = vadd.f32 %v10751_v60, %v10633_v11 }
0x100f   : > { %v10753_v58 = vpop.f32.mrf.mxu1 }
0x1010   : > { %v10848_v6 = vpop.f32.mrf.mxu0  ;;  %v10754_v57 = vadd.f32 %v10753_v58, %v10635_v25 }
0x1011   : > { %v10849_v15 = vadd.f32 %v10848_v6, %v10752_v30 }
0x1012   : > { %v10850_v14 = vpop.f32.mrf.mxu0 }
0x1013   : > { %v10930_v37 = vpop.f32.mrf.mxu1  ;;  %v10851_v19 = vadd.f32 %v10850_v14, %v10754_v57 }
0x1014   : > { %v10931_v18 = vadd.f32 %v10930_v37, %v10841_v28 }
0x1015   : > { %v10932_v20 = vpop.f32.mrf.mxu1 }
0x1016   : > { %v11035_v52 = vpop.f32.mrf.mxu0  ;;  %v10933_v45 = vadd.f32 %v10932_v20, %v10843_v33 }
0x1017   : > { %v11036_v47 = vadd.f32 %v11035_v52, %v10931_v18  ;;  %v10529_v18 = vsub.s32 3, %v15765_v49 }
0x1018   : > { %v11037_v38 = vpop.f32.mrf.mxu0  ;;  %v10939_v40 = vpop.f32.mrf.mxu1 }
0x1019   : > { %v10940_v5 = vadd.f32 %v10939_v40, %v10849_v15  ;;  %v11038_v50 = vadd.f32 %v11037_v38, %v10933_v45  ;;  %v10525_v15 = vsub.s32 2, %v15765_v49 }
0x101a   : > { %v10941_v46 = vpop.f32.mrf.mxu1  ;;  %v11042_v4 = vpop.f32.mrf.mxu0 }
0x101b   : > { %v10942_v53 = vadd.f32 %v10941_v46, %v10851_v19  ;;  %v11043_v16 = vadd.f32 %v11042_v4, %v10940_v5 }
0x101c   : > { %v11044_v55 = vpop.f32.mrf.mxu0 }
0x101d   : > { %v11122_v54 = vpop.f32.mrf.mxu1  ;;  %v11045_v62 = vadd.f32 %v11044_v55, %v10942_v53  ;;  %v10526_v53 = vrot.slane %v15773_v23, %v10525_v15 }
0x101e   : > { %v11123_v27 = vadd.f32 %v11122_v54, %v11036_v47  ;;  %v10530_v54 = vrot.slane %v15773_v23, %v10529_v18 }
0x101f   : > { %v11124_v56 = vpop.f32.mrf.mxu1 }
0x1020   : > { %v11726_v63 = vmax.f32 %v11123_v27, 0.0  ;;  %v11125_v59 = vadd.f32 %v11124_v56, %v11038_v50 }
0x1021   : > { %v11129_v60 = vpop.f32.mrf.mxu1 }
0x1022   : > { %v15778_v2 = vand.u32 4294901760, %v11726_v63  ;;  %v11727_v42 = vmax.f32 %v11125_v59, 0.0  ;;  %v11130_v58 = vadd.f32 %v11129_v60, %v11043_v16  ;;  %v11750_v60 = vld [vmem:[%s14619_s22 + $0x70] sm:$0xff] }
0x1023   : > { %v11131_v6 = vpop.f32.mrf.mxu1 }
0x1024   : > { %v15781_v7 = vsub.f32 %v11726_v63, %v15778_v2  ;;  %v15783_v11 = vand.u32 4294901760, %v11727_v42  ;;  %v11730_v12 = vmax.f32 %v11130_v58, 0.0  ;;  %v11132_v14 = vadd.f32 %v11131_v6, %v11045_v62  ;;  %v11751_v63 = vld [vmem:[%s14619_s22 + $0x78] sm:$0xff] }
0x1025   : > { %v11213_v37 = vpop.f32.mrf.mxu0 }
0x1026   : > { %v11832_v43 = vand.u32 4294901760, %v15781_v7  ;;  %v11825_v20 = vsub.f32 %v11727_v42, %v15783_v11  ;;  %v15787_v25 = vand.u32 4294901760, %v11730_v12  ;;  %v11731_v28 = vmax.f32 %v11132_v14, 0.0  ;;  %11960 = vmatprep.mubr.f32.mxu1 %v15783_v11 }
0x1027   : > { %11962 = vmatmul.mubr.f32.vlgmr.msra.gmra.mxu1 %v15778_v2  ;;  %v11215_v30 = vpop.f32.mrf.mxu0  ;;  %v11214_v62 = vadd.f32 %v11213_v37, %v10526_v53 }
0x1028   : > { %v15792_v52 = vsub.f32 %v11730_v12, %v15787_v25  ;;  %v15794_v33 = vand.u32 4294901760, %v11731_v28  ;;  %12100 = vmatpush1.xpose.msra.mxu1 %v15679_v0  ;;  %v11826_v57 = vand.u32 4294901760, %v11825_v20  ;;  %v11336_v38 = vpop.f32.mrf.mxu1  ;;  %v11833_v40 = vsub.f32 %v15781_v7, %v11832_v43 }
0x1029   : > { %12102 = vmatprep.subr.mxu1 %v15691_v48  ;;  %v11216_v59 = vadd.f32 %v11215_v30, %v10530_v54  ;;  %v15824_v12 = vand.u32 4294901760, %v11751_v63 }
0x102a   : > { %v15804_v45 = vsub.f32 %v11731_v28, %v15794_v33  ;;  %11967 = vmatprep.mubr.f32.mxu1 %v15794_v33  ;;  %v11827_v46 = vsub.f32 %v11825_v20, %v11826_v57  ;;  %v11847_v4 = vand.u32 4294901760, %v15792_v52  ;;  %v11338_v47 = vpop.f32.mrf.mxu1  ;;  %v11834_v50 = vand.u32 4294901760, %v11833_v40 }
0x102b   : > { %11969 = vmatmul.mubr.f32.gmra.mxu1 %v15787_v25  ;;  %v11224_v19 = vpop.f32.mrf.mxu0  ;;  %v15826_v28 = vand.u32 4294901760, %v11750_v60  ;;  %v11339_v30 = vadd.f32 %v11338_v47, %v11216_v59  ;;  %v11337_v40 = vadd.f32 %v11336_v38, %v11214_v62 }
0x102c   : > { %12104 = vmatpush1.xpose.msra.mxu1 %v15695_v10  ;;  %12148 = vmatprep.mubr.f32.mxu1 %v11826_v57  ;;  %v11828_v5 = vand.u32 4294901760, %v11827_v46  ;;  %v11841_v49 = vand.u32 4294901760, %v15804_v45  ;;  %v11848_v27 = vsub.f32 %v15792_v52, %v11847_v4  ;;  %v11747_v57 = vld [vmem:[%s14619_s22 + $0x58] sm:$0xff]  ;;  %v11225_v15 = vadd.f32 %v11224_v19, %v10526_v53  ;;  %v11746_v46 = vld [vmem:[%s14619_s22 + $0x50] sm:$0xff] }
0x102d   : > { %12106 = vmatprep.subr.mxu1 %v15713_v8  ;;  %v11226_v55 = vpop.f32.mrf.mxu0  ;;  %v15842_v38 = vsub.f32 %v11750_v60, %v15826_v28  ;;  %v15846_v53 = vand.u32 4294901760, %v11746_v46 }
0x102e   : > { %11829 = vmatprep.mubr.f32.mxu0 %v11828_v5  ;;  %v11842_v56 = vsub.f32 %v15804_v45, %v11841_v49  ;;  %v11343_v16 = vpop.f32.mrf.mxu1  ;;  %v11849_v42 = vand.u32 4294901760, %v11848_v27  ;;  %v11227_v37 = vadd.f32 %v11226_v55, %v10530_v54  ;;  %v15835_v5 = vsub.f32 %v11751_v63, %v15824_v12 }
0x102f   : > { %11835 = vmatmul.mubr.f32.vlgmr.msra.gmra.mxu0 %v11834_v50  ;;  %v15837_v50 = vand.u32 4294901760, %v11747_v57  ;;  %v11344_v27 = vadd.f32 %v11343_v16, %v11225_v15  ;;  %v15865_v62 = vsub.f32 %v11746_v46, %v15846_v53 }
0x1030   : > { %12003 = vmatpush1.xpose.msra.mxu0 %v15686_v34  ;;  %12108 = vmatpush1.xpose.msra.mxu1 %v15717_v24  ;;  %v11843_v23 = vand.u32 4294901760, %v11842_v56  ;;  %v11345_v58 = vpop.f32.mrf.mxu1  ;;  %v11742_v56 = vld [vmem:[%s14619_s22 + $0x30] sm:$0xff]  ;;  %v12487_v63 = vand.u32 4294901760, %v15835_v5 }
0x1031   : > { %12006 = vmatprep.subr.mxu0 %v15701_v39  ;;  %12110 = vmatprep.subr.mxu1 %v15735_v32  ;;  %v11432_v6 = vpop.f32.mrf.mxu0  ;;  %v11346_v19 = vadd.f32 %v11345_v58, %v11227_v37  ;;  %v15854_v59 = vsub.f32 %v11747_v57, %v15837_v50  ;;  %v12505_v46 = vand.u32 4294901760, %v15865_v62 }
0x1032   : > { %11844 = vmatprep.mubr.f32.mxu0 %v11843_v23  ;;  %v11433_v55 = vadd.f32 %v11432_v6, %v11337_v40  ;;  %v12493_v23 = vand.u32 4294901760, %v15842_v38  ;;  %v12488_v57 = vsub.f32 %v15835_v5, %v12487_v63  ;;  %v11738_v40 = vld [vmem:[%s14619_s22 + $0x10] sm:$0xff] }
0x1033   : > { %11850 = vmatmul.mubr.f32.gmra.mxu0 %v11849_v42  ;;  %v11434_v14 = vpop.f32.mrf.mxu0  ;;  %v15867_v42 = vand.u32 4294901760, %v11742_v56 }
0x1034   : > { %12009 = vmatpush1.xpose.msra.mxu0 %v15708_v13  ;;  %12112 = vmatpush1.xpose.msra.mxu1 %v15739_v17  ;;  %v11522_v18 = vpop.f32.mrf.mxu1  ;;  %v12494_v1 = vsub.f32 %v15842_v38, %v12493_v23  ;;  %v12489_v34 = vand.u32 4294901760, %v12488_v57 }
0x1035   : > { %12056 = vmatprep.mubr.f32.mxu0 %v11825_v20  ;;  %12012 = vmatprep.subr.mxu0 %v15723_v26  ;;  %v11743_v20 = vld [vmem:[%s14619_s22 + $0x38] sm:$0xff]  ;;  %v11523_v58 = vadd.f32 %v11522_v18, %v11433_v55 }
0x1036   : > { %12296 = vmatprep.subr.mxu1 %v15676_v51  ;;  %v11524_v54 = vpop.f32.mrf.mxu1  ;;  %v11435_v51 = vadd.f32 %v11434_v14, %v11339_v30  ;;  %v12499_v30 = vand.u32 4294901760, %v15854_v59  ;;  %v12495_v55 = vand.u32 4294901760, %v12494_v1 }
0x1037   : > { %12152 = vmatmul.mubr.f32.vlgmr.msra.gmra.mxu1 %v11832_v43  ;;  %v11440_v47 = vpop.f32.mrf.mxu0 }
0x1038   : > { %12015 = vmatpush1.xpose.msra.mxu0 %v15730_v29  ;;  %12159 = vmatprep.mubr.f32.mxu1 %v11841_v49  ;;  %v15856_v49 = vand.u32 4294901760, %v11743_v20  ;;  %v11525_v60 = vadd.f32 %v11524_v54, %v11435_v51  ;;  %v11441_v6 = vadd.f32 %v11440_v47, %v11344_v27  ;;  %v15892_v47 = vsub.f32 %v11742_v56, %v15867_v42 }
0x1039   : > { %12298 = vmatpush1.xpose.msra.mxu1 %v15679_v0  ;;  %12018 = vmatprep.subr.mxu0 %v15745_v36  ;;  %v11442_v43 = vpop.f32.mrf.mxu0  ;;  %v11739_v0 = vld [vmem:[%s14619_s22 + $0x18] sm:$0xff] }
0x103a   : > { %12300 = vmatprep.subr.mxu1 %v15691_v48  ;;  %v11531_v16 = vpop.f32.mrf.mxu1  ;;  %v11443_v48 = vadd.f32 %v11442_v43, %v11346_v19  ;;  %v15878_v37 = vsub.f32 %v11743_v20, %v15856_v49  ;;  %v15880_v18 = vand.u32 4294901760, %v11739_v0  ;;  %v15897_v19 = vand.u32 4294901760, %v11738_v40 }
0x103b   : > { %12163 = vmatmul.mubr.f32.gmra.mxu1 %v11847_v4  ;;  %v11532_v54 = vadd.f32 %v11531_v16, %v11441_v6  ;;  %v12506_v43 = vsub.f32 %v15865_v62, %v12505_v46  ;;  %v12517_v56 = vand.u32 4294901760, %v15892_v47 }
0x103c   : > { %12021 = vmatpush1.xpose.msra.mxu0 %v15752_v35  ;;  %12344 = vmatprep.mubr.f32.mxu1 %v15783_v11  ;;  %v11533_v4 = vpop.f32.mrf.mxu1  ;;  %v12511_v51 = vand.u32 4294901760, %v15878_v37  ;;  %v15905_v27 = vsub.f32 %v11739_v0, %v15880_v18  ;;  %v15919_v13 = vsub.f32 %v11738_v40, %v15897_v19 }
0x103d   : > { %12302 = vmatpush1.xpose.msra.mxu1 %v15695_v10  ;;  %v11627_v14 = vpop.f32.mrf.mxu0  ;;  %12195 = vmatprep.subr.mxu0 %v11881_v22  ;;  %v11534_v22 = vadd.f32 %v11533_v4, %v11443_v48  ;;  %v12507_v26 = vand.u32 4294901760, %v12506_v43 }
0x103e   : > { %12304 = vmatprep.subr.mxu1 %v15713_v8  ;;  %v12523_v48 = vand.u32 4294901760, %v15905_v27  ;;  %v12529_v57 = vand.u32 4294901760, %v15919_v13 }
0x103f   : > { %12059 = vmatmul.mubr.f32.vlgmr.msra.gmra.mxu0 %v15781_v7  ;;  %v11629_v10 = vpop.f32.mrf.mxu0  ;;  %v11714_v15 = vpop.f32.mrf.mxu1  ;;  %v11628_v7 = vadd.f32 %v11627_v14, %v11523_v58 }
0x1040   : > { %12065 = vmatprep.mubr.f32.mxu0 %v15804_v45  ;;  %12199 = vmatpush1.xpose.msra.mxu0 %v11887_v9  ;;  %v11630_v8 = vadd.f32 %v11629_v10, %v11525_v60  ;;  %v12500_v9 = vsub.f32 %v15854_v59, %v12499_v30 }
0x1041   : > { %12306 = vmatpush1.xpose.msra.mxu1 %v15717_v24  ;;  %v11634_v20 = vpop.f32.mrf.mxu0  ;;  %12203 = vmatprep.subr.mxu0 %v11893_v3  ;;  %v11716_v45 = vpop.f32.mrf.mxu1  ;;  %v11715_v16 = vadd.f32 %v11714_v15, %v11628_v7 }
0x1042   : > { %12308 = vmatprep.subr.mxu1 %v15735_v32  ;;  %v11717_v24 = vadd.f32 %v11716_v45, %v11630_v8  ;;  %v11635_v0 = vadd.f32 %v11634_v20, %v11532_v54 }
0x1043   : > { %12068 = vmatmul.mubr.f32.gmra.mxu0 %v15792_v52  ;;  %v11636_v39 = vpop.f32.mrf.mxu0  ;;  %v11721_v32 = vpop.f32.mrf.mxu1  ;;  %v12512_v52 = vsub.f32 %v15878_v37, %v12511_v51 }
0x1044   : > { %12207 = vmatpush1.xpose.msra.mxu0 %v11899_v21  ;;  %12257 = vmatprep.mubr.f32.mxu0 %v15783_v11  ;;  %v11637_v3 = vadd.f32 %v11636_v39, %v11534_v22  ;;  %v11729_v60 = vmax.f32 %v11717_v24, 0.0  ;;  %v12501_v11 = vand.u32 4294901760, %v12500_v9  ;;  %v11722_v14 = vadd.f32 %v11721_v32, %v11635_v0 }
0x1045   : > { %12310 = vmatpush1.xpose.msra.mxu1 %v15739_v17  ;;  %12211 = vmatprep.subr.mxu0 %v11905_v31  ;;  %v11723_v21 = vpop.f32.mrf.mxu1  ;;  %v12518_v31 = vsub.f32 %v15892_v47, %v12517_v56  ;;  %v11728_v17 = vmax.f32 %v11715_v16, 0.0  ;;  %v12513_v29 = vand.u32 4294901760, %v12512_v52 }
0x1046   : > { %12490 = vmatprep.subr.mxu1 %v12489_v34  ;;  %v15925_v58 = vand.u32 4294901760, %v11729_v60  ;;  %v11724_v6 = vadd.f32 %v11723_v21, %v11637_v3  ;;  %v11732_v22 = vmax.f32 %v11722_v14, 0.0 }
0x1047   : > { %v15947_v1 = vand.u32 4294901760, %v11728_v17  ;;  %v12519_v36 = vand.u32 4294901760, %v12518_v31 }
0x1048   : > { %12346 = vmatmul.mubr.f32.vlgmr.msra.gmra.mxu1 %v15778_v2  ;;  %12215 = vmatpush1.xpose.msra.mxu0 %v11911_v61  ;;  %v15934_v4 = vsub.f32 %v11729_v60, %v15925_v58  ;;  %v11733_v40 = vmax.f32 %v11724_v6, 0.0  ;;  %v12524_v61 = vsub.f32 %v15905_v27, %v12523_v48  ;;  %v15961_v54 = vand.u32 4294901760, %v11732_v22 }
0x1049   : > { %12351 = vmatprep.mubr.f32.mxu1 %v15794_v33  ;;  %12496 = vmatpush1.xpose.msra.mxu1 %v12495_v55 }
0x104a   : > { %12219 = vmatprep.subr.mxu0 %v11917_v41  ;;  %12502 = vmatprep.subr.mxu1 %v12501_v11  ;;  %v12432_v10 = vand.u32 4294901760, %v15934_v4  ;;  %v12530_v41 = vsub.f32 %v15919_v13, %v12529_v57  ;;  %v15953_v8 = vand.u32 4294901760, %v11733_v40  ;;  %v12525_v15 = vand.u32 4294901760, %v12524_v61 }
0x104c   : > { %12353 = vmatmul.mubr.f32.gmra.mxu1 %v15787_v25  ;;  %12223 = vmatpush1.xpose.msra.mxu0 %v11923_v44  ;;  %v12433_v35 = vsub.f32 %v15934_v4, %v12432_v10  ;;  %v12437_v44 = vsub.f32 %v11728_v17, %v15947_v1  ;;  %v12531_v7 = vand.u32 4294901760, %v12530_v41  ;;  %v12446_v20 = vsub.f32 %v11733_v40, %v15953_v8 }
0x104d   : > { %12508 = vmatpush1.xpose.msra.mxu1 %v12507_v26  ;;  %12566 = vmatprep.mubr.f32.mxu1 %v15925_v58 }
0x104e   : > { %12383 = vmatprep.subr.mxu0 %v15824_v12  ;;  %12514 = vmatprep.subr.mxu1 %v12513_v29  ;;  %v12434_v45 = vand.u32 4294901760, %v12433_v35  ;;  %v12447_v34 = vand.u32 4294901760, %v12446_v20 }
0x104f   : > { %12259 = vmatmul.mubr.f32.vlgmr.msra.gmra.mxu0 %v15778_v2  ;;  %v12438_v2 = vand.u32 4294901760, %v12437_v44 }
0x1050   : > { %12264 = vmatprep.mubr.f32.mxu0 %v15794_v33  ;;  %12385 = vmatpush1.xpose.msra.mxu0 %v15826_v28  ;;  %v12452_v33 = vsub.f32 %v11732_v22, %v15961_v54  ;;  %v12448_v24 = vsub.f32 %v12446_v20, %v12447_v34 }
0x1051   : > { %12520 = vmatpush1.xpose.msra.mxu1 %v12519_v36  ;;  %12387 = vmatprep.subr.mxu0 %v15837_v50  ;;  %v12439_v9 = vsub.f32 %v12437_v44, %v12438_v2 }
0x1052   : > { %12526 = vmatprep.subr.mxu1 %v12525_v15  ;;  %v12449_v32 = vand.u32 4294901760, %v12448_v24 }
0x1053   : > { %12266 = vmatmul.mubr.f32.gmra.mxu0 %v15787_v25  ;;  %v12453_v25 = vand.u32 4294901760, %v12452_v33  ;;  %v12440_v39 = vand.u32 4294901760, %v12439_v9 }
0x1054   : > { %12389 = vmatpush1.xpose.msra.mxu0 %v15846_v53  ;;  %12435 = vmatprep.mubr.f32.mxu0 %v12434_v45 }
0x1055   : > { %12532 = vmatpush1.xpose.msra.mxu1 %v12531_v7  ;;  %12391 = vmatprep.subr.mxu0 %v15856_v49  ;;  %v12454_v3 = vsub.f32 %v12452_v33, %v12453_v25 }
0x1056   : > { %12704 = vmatprep.subr.mxu1 %v15824_v12 }
0x1057   : > { %v12455_v55 = vand.u32 4294901760, %v12454_v3 }
0x1058   : > { %12568 = vmatmul.mubr.f32.vlgmr.msra.gmra.mxu1 %v15947_v1  ;;  %12393 = vmatpush1.xpose.msra.mxu0 %v15867_v42 }
0x1059   : > { %12573 = vmatprep.mubr.f32.mxu1 %v15953_v8  ;;  %12706 = vmatpush1.xpose.msra.mxu1 %v15826_v28 }
0x105a   : > { %12395 = vmatprep.subr.mxu0 %v15880_v18  ;;  %12708 = vmatprep.subr.mxu1 %v15837_v50 }
0x105c   : > { %12575 = vmatmul.mubr.f32.gmra.mxu1 %v15961_v54  ;;  %12397 = vmatpush1.xpose.msra.mxu0 %v15897_v19 }
0x105d   : > { %12710 = vmatpush1.xpose.msra.mxu1 %v15846_v53  ;;  %12754 = vmatprep.mubr.f32.mxu1 %v12432_v10 }
0x105e   : > { %12606 = vmatprep.subr.mxu0 %v15835_v5  ;;  %12712 = vmatprep.subr.mxu1 %v15856_v49 }
0x105f   : > { %12441 = vmatmul.mubr.f32.vlgmr.msra.gmra.mxu0 %v12440_v39 }
0x1060   : > { %12450 = vmatprep.mubr.f32.mxu0 %v12449_v32  ;;  %12609 = vmatpush1.xpose.msra.mxu0 %v15842_v38 }
0x1061   : > { %12714 = vmatpush1.xpose.msra.mxu1 %v15867_v42  ;;  %12612 = vmatprep.subr.mxu0 %v15854_v59 }
0x1062   : > { %12716 = vmatprep.subr.mxu1 %v15880_v18 }
0x1063   : > { %12456 = vmatmul.mubr.f32.gmra.mxu0 %v12455_v55  ;;  %v11734_v55 = vld [vmem:[#allocation3] sm:$0xff] }
0x1064   : > { %12615 = vmatpush1.xpose.msra.mxu0 %v15865_v62  ;;  %12662 = vmatprep.mubr.f32.mxu0 %v15934_v4 }
0x1065   : > { %12718 = vmatpush1.xpose.msra.mxu1 %v15897_v19  ;;  %12618 = vmatprep.subr.mxu0 %v15878_v37 }
0x1066   : > { %12902 = vmatprep.subr.mxu1 %v15824_v12 }
0x1068   : > { %12758 = vmatmul.mubr.f32.vlgmr.msra.gmra.mxu1 %v12438_v2  ;;  %12621 = vmatpush1.xpose.msra.mxu0 %v15892_v47 }
0x1069   : > { %12765 = vmatprep.mubr.f32.mxu1 %v12447_v34  ;;  %12904 = vmatpush1.xpose.msra.mxu1 %v15826_v28 }
0x106a   : > { %12624 = vmatprep.subr.mxu0 %v15905_v27  ;;  %12906 = vmatprep.subr.mxu1 %v15837_v50 }
0x106c   : > { %12769 = vmatmul.mubr.f32.gmra.mxu1 %v12453_v25  ;;  %12627 = vmatpush1.xpose.msra.mxu0 %v15919_v13 }
0x106d   : > { %12908 = vmatpush1.xpose.msra.mxu1 %v15846_v53  ;;  %12950 = vmatprep.mubr.f32.mxu1 %v15925_v58 }
0x106e   : > { %12801 = vmatprep.subr.mxu0 %v12487_v63  ;;  %12910 = vmatprep.subr.mxu1 %v15856_v49 }
0x106f   : > { %12665 = vmatmul.mubr.f32.vlgmr.msra.gmra.mxu0 %v12437_v44 }
0x1070   : > { %12671 = vmatprep.mubr.f32.mxu0 %v12446_v20  ;;  %12805 = vmatpush1.xpose.msra.mxu0 %v12493_v23 }
0x1071   : > { %12912 = vmatpush1.xpose.msra.mxu1 %v15867_v42  ;;  %12809 = vmatprep.subr.mxu0 %v12499_v30 }
0x1072   : > { %12914 = vmatprep.subr.mxu1 %v15880_v18 }
0x1073   : > { %12674 = vmatmul.mubr.f32.gmra.mxu0 %v12452_v33 }
0x1074   : > { %12813 = vmatpush1.xpose.msra.mxu0 %v12505_v46  ;;  %12863 = vmatprep.mubr.f32.mxu0 %v15925_v58 }
0x1075   : > { %12916 = vmatpush1.xpose.msra.mxu1 %v15897_v19  ;;  %12817 = vmatprep.subr.mxu0 %v12511_v51 }
0x1078   : > { %12952 = vmatmul.mubr.f32.vlgmr.msra.gmra.mxu1 %v15947_v1  ;;  %12821 = vmatpush1.xpose.msra.mxu0 %v12517_v56 }
0x1079   : > { %12957 = vmatprep.mubr.f32.mxu1 %v15953_v8  ;;  %12825 = vmatprep.subr.mxu0 %v12523_v48 }
0x107c   : > { %12959 = vmatmul.mubr.f32.gmra.mxu1 %v15961_v54  ;;  %12829 = vmatpush1.xpose.msra.mxu0 %v12529_v57 }
0x107f   : > { %12865 = vmatmul.mubr.f32.vlgmr.msra.gmra.mxu0 %v15947_v1 }
0x1080   : > { %12870 = vmatprep.mubr.f32.mxu0 %v15953_v8 }
0x1083   : > { %12872 = vmatmul.mubr.f32.gmra.mxu0 %v15961_v54 }
0x10e7   : > { %v11963_v12 = vpop.f32.mrf.mxu1 }
0x10e9   : > { %v11965_v28 = vpop.f32.mrf.mxu1 }
0x10eb   : > { %v11970_v5 = vpop.f32.mrf.mxu1 }
0x10ed   : > { %v11972_v50 = vpop.f32.mrf.mxu1 }
0x10ef   : > { %v11836_v38 = vpop.f32.mrf.mxu0 }
0x10f0   : > { %v11964_v26 = vadd.f32 %v11963_v12, %v11836_v38 }
0x10f1   : > { %v11838_v53 = vpop.f32.mrf.mxu0 }
0x10f3   : > { %v11851_v63 = vpop.f32.mrf.mxu0 }
0x10f4   : > { %v11971_v4 = vadd.f32 %v11970_v5, %v11851_v63  ;;  %v11735_v63 = vld [vmem:[#allocation3 + $0x8] sm:$0xff] }
0x10f5   : > { %v11853_v59 = vpop.f32.mrf.mxu0 }
0x10f7   : > { %v12153_v49 = vpop.f32.mrf.mxu1 }
0x10f9   : > { %v12155_v23 = vpop.f32.mrf.mxu1 }
0x10fb   : > { %v12164_v62 = vpop.f32.mrf.mxu1 }
0x10fd   : > { %v12166_v42 = vpop.f32.mrf.mxu1 }
0x10ff   : > { %v12060_v30 = vpop.f32.mrf.mxu0 }
0x1100   : > { %v12061_v31 = vadd.f32 %v12060_v30, %v11964_v26 }
0x1101   : > { %v12062_v37 = vpop.f32.mrf.mxu0 }
0x1102   : > { %v12154_v40 = vadd.f32 %v12153_v49, %v12061_v31 }
0x1103   : > { %v12069_v18 = vpop.f32.mrf.mxu0 }
0x1104   : > { %v12070_v57 = vadd.f32 %v12069_v18, %v11971_v4 }
0x1105   : > { %v12071_v46 = vpop.f32.mrf.mxu0 }
0x1106   : > { %v12165_v22 = vadd.f32 %v12164_v62, %v12070_v57 }
0x1108   : > { %v12347_v47 = vpop.f32.mrf.mxu1 }
0x110a   : > { %v12349_v19 = vpop.f32.mrf.mxu1 }
0x110c   : > { %v12354_v51 = vpop.f32.mrf.mxu1 }
0x110e   : > { %v12356_v27 = vpop.f32.mrf.mxu1 }
0x110f   : > { %v12260_v43 = vpop.f32.mrf.mxu0 }
0x1110   : > { %v12261_v61 = vadd.f32 %v12260_v43, %v12154_v40 }
0x1111   : > { %v12262_v56 = vpop.f32.mrf.mxu0 }
0x1112   : > { %v12348_v8 = vadd.f32 %v12347_v47, %v12261_v61 }
0x1113   : > { %v12267_v16 = vpop.f32.mrf.mxu0 }
0x1114   : > { %v12268_v41 = vadd.f32 %v12267_v16, %v12165_v22 }
0x1115   : > { %v12269_v0 = vpop.f32.mrf.mxu0 }
0x1116   : > { %v12355_v54 = vadd.f32 %v12354_v51, %v12268_v41 }
0x1118   : > { %v12569_v60 = vpop.f32.mrf.mxu1 }
0x111a   : > { %v12571_v13 = vpop.f32.mrf.mxu1 }
0x111c   : > { %v12576_v21 = vpop.f32.mrf.mxu1 }
0x111e   : > { %v12578_v11 = vpop.f32.mrf.mxu1 }
0x111f   : > { %v12442_v52 = vpop.f32.mrf.mxu0 }
0x1120   : > { %v12443_v35 = vadd.f32 %v12442_v52, %v12348_v8 }
0x1121   : > { %v12444_v48 = vpop.f32.mrf.mxu0 }
0x1122   : > { %v12570_v20 = vadd.f32 %v12569_v60, %v12443_v35 }
0x1123   : > { %v12457_v58 = vpop.f32.mrf.mxu0 }
0x1124   : > { %v12458_v7 = vadd.f32 %v12457_v58, %v12355_v54 }
0x1125   : > { %v12459_v6 = vpop.f32.mrf.mxu0 }
0x1126   : > { %v12577_v34 = vadd.f32 %v12576_v21, %v12458_v7 }
0x1128   : > { %v12759_v17 = vpop.f32.mrf.mxu1 }
0x112a   : > { %v12761_v14 = vpop.f32.mrf.mxu1 }
0x112c   : > { %v12770_v29 = vpop.f32.mrf.mxu1 }
0x112e   : > { %v12772_v10 = vpop.f32.mrf.mxu1 }
0x112f   : > { %v12666_v1 = vpop.f32.mrf.mxu0 }
0x1130   : > { %v12667_v2 = vadd.f32 %v12666_v1, %v12570_v20 }
0x1131   : > { %v12668_v36 = vpop.f32.mrf.mxu0 }
0x1132   : > { %v12760_v39 = vadd.f32 %v12759_v17, %v12667_v2 }
0x1133   : > { %v12675_v15 = vpop.f32.mrf.mxu0 }
0x1134   : > { %v12676_v25 = vadd.f32 %v12675_v15, %v12577_v34 }
0x1135   : > { %v12677_v44 = vpop.f32.mrf.mxu0 }
0x1136   : > { %v12771_v5 = vadd.f32 %v12770_v29, %v12676_v25 }
0x1138   : > { %v12953_v45 = vpop.f32.mrf.mxu1 }
0x113a   : > { %v12955_v33 = vpop.f32.mrf.mxu1 }
0x113c   : > { %v12960_v9 = vpop.f32.mrf.mxu1 }
0x113e   : > { %v12962_v24 = vpop.f32.mrf.mxu1 }
0x113f   : > { %v12866_v3 = vpop.f32.mrf.mxu0 }
0x1140   : > { %v12867_v32 = vadd.f32 %v12866_v3, %v12760_v39 }
0x1141   : > { %v12868_v12 = vpop.f32.mrf.mxu0 }
0x1142   : > { %v12954_v28 = vadd.f32 %v12953_v45, %v12867_v32 }
0x1143   : > { %v12873_v50 = vpop.f32.mrf.mxu0 }
0x1144   : > { %v12964_v38 = vadd.f32 %v12954_v28, %v11734_v55  ;;  %v12874_v53 = vadd.f32 %v12873_v50, %v12771_v5 }
0x1145   : > { %v12875_v59 = vpop.f32.mrf.mxu0 }
0x1146   : > { %12966 = vst.msk [vmem:[#allocation3] sm:$0xff] %vm10535_vm7, %v12964_v38  ;;  %v12961_v49 = vadd.f32 %v12960_v9, %v12874_v53  ;;  %12971 = sbr.rel (%p13165_p1) target bundleno = 4773 (0x12a5), region = 88 }
0x1148   : > { %v12965_v23 = vadd.f32 %v12961_v49, %v11735_v63 }
0x114a   : > { %12967 = vst.msk [vmem:[#allocation3 + $0x8] sm:$0xff] %vm10535_vm7, %v12965_v23 }
0x114b   : > { %v13166_v42 = vld [vmem:[%s16077_s10] ss:$0 sm:$0xff]  ;;  %v12986_v19 = vld [vmem:[#allocation2 + $0x8] sm:$0xff] }
0x114c   : > { %v12985_v18 = vld [vmem:[#allocation2] sm:$0xff] }
0x114d   : > { %v12972_v62 = vld [vmem:[#allocation3] sm:$0xff]  ;;  %v13167_v45 = vld [vmem:[%s16078_s11] ss:$0 sm:$0xff] }
0x114e   : > { %v12981_v30 = vadd.f32 %v13166_v42, %v12972_v62  ;;  %v13168_v25 = vld [vmem:[%s16101_s30] ss:$0 sm:$0xff] }
0x1150   : > { %v12983_v47 = vmax.f32 %v12981_v30, 0.0 }
0x1151   : > { %v12973_v37 = vld [vmem:[#allocation3 + $0x8] sm:$0xff] }
0x1152   : > { %v12982_v46 = vadd.f32 %v13166_v42, %v12973_v37  ;;  %v12987_v27 = vadd.f32 %v12985_v18, %v12983_v47 }
0x1154   : > { %v12984_v51 = vmax.f32 %v12982_v46, 0.0  ;;  %v12991_v56 = vsel %vm10535_vm7, %v12987_v27, 0.0 }
0x1155   : > { %12992 = vadd.xlane.f32.xlu0 %v12991_v56 }
0x1156   : > { %v12988_v43 = vadd.f32 %v12986_v19, %v12984_v51 }
0x1158   : > { %v12994_v16 = vsel %vm10535_vm7, %v12988_v43, 0.0 }
0x1159   : > { %12995 = vadd.xlane.f32.xlu0 %v12994_v16 }
0x11de   : > { %v12993_v0 = vpop.xlane.xlu0 %12992 }
0x11df   : > { %v12998_v60 = vmul.f32 0.03125, %v12993_v0 }
0x11e1   : > { %v13000_v13 = vsub.f32 %v12987_v27, %v12998_v60 }
0x11e2   : > { %v12996_v21 = vpop.xlane.xlu0 %12995 }
0x11e3   : > { %v12999_v11 = vmul.f32 0.03125, %v12996_v21  ;;  %v13002_v52 = vmul.f32 %v13000_v13, %v13000_v13 }
0x11e5   : > { %v13001_v48 = vsub.f32 %v12988_v43, %v12999_v11  ;;  %v13004_v58 = vsel %vm10535_vm7, %v13002_v52, 0.0 }
0x11e6   : > { %13005 = vadd.xlane.f32.xlu1 %v13004_v58 }
0x11e7   : > { %v13003_v6 = vmul.f32 %v13001_v48, %v13001_v48 }
0x11e9   : > { %v13007_v26 = vsel %vm10535_vm7, %v13003_v6, 0.0 }
0x11ea   : > { %13008 = vadd.xlane.f32.xlu1 %v13007_v26 }
0x126f   : > { %v13006_v31 = vpop.xlane.xlu1 %13005 }
0x1270   : > { %v13010_v17 = vmul.f32 0.032258064, %v13006_v31 }
0x1272   : > { %14253 = vrsqrt.f32 %v13010_v17  ;;  %vm13014_vm8 = vcmp.eq.f32.partialorder %v13010_v17, inf  ;;  %v13017_v29 = vand.u32 2147483648, %v13010_v17  ;;  %vm13016_vm9 = vcmp.eq.f32.partialorder %v13010_v17, 0.0 }
0x1273   : > { %v13009_v4 = vpop.xlane.xlu1 %13008 }
0x1274   : > { %v13011_v14 = vmul.f32 0.032258064, %v13009_v4 }
0x1276   : > { %14255 = vrsqrt.f32 %v13011_v14  ;;  %vm13021_vm10 = vcmp.eq.f32.partialorder %v13011_v14, inf  ;;  %v13024_v41 = vand.u32 2147483648, %v13011_v14  ;;  %vm13023_vm11 = vcmp.eq.f32.partialorder %v13011_v14, 0.0 }
0x127f   : > { %v14254_v57 = vpop.eup %14253 }
0x1280   : > { %v13013_v40 = vmul.f32 %v14254_v57, %v13010_v17 }
0x1282   : > { %v13015_v61 = vsel %vm13014_vm8, %v13010_v17, %v13013_v40 }
0x1283   : > { %v14256_v10 = vpop.eup %14255  ;;  %v13018_v1 = vsel %vm13016_vm9, %v13017_v29, %v13015_v61 }
0x1284   : > { %v13026_v22 = vadd.f32 1e-06, %v13018_v1  ;;  %v13020_v36 = vmul.f32 %v14256_v10, %v13011_v14 }
0x1286   : > { %14257 = vrcp.f32 %v13026_v22  ;;  %v13022_v8 = vsel %vm13021_vm10, %v13011_v14, %v13020_v36 }
0x1287   : > { %v13025_v15 = vsel %vm13023_vm11, %v13024_v41, %v13022_v8 }
0x1288   : > { %v13027_v35 = vadd.f32 1e-06, %v13025_v15 }
0x128a   : > { %14259 = vrcp.f32 %v13027_v35 }
0x1293   : > { %v14258_v44 = vpop.eup %14257 }
0x1294   : > { %v13030_v54 = vmul.f32 %v14258_v44, %v13026_v22 }
0x1296   : > { %v13032_v7 = vsub.f32 2.0, %v13030_v54 }
0x1297   : > { %v14260_v20 = vpop.eup %14259 }
0x1298   : > { %v13034_v2 = vmul.f32 %v14258_v44, %v13032_v7  ;;  %v13031_v33 = vmul.f32 %v14260_v20, %v13027_v35 }
0x129a   : > { %v13042_v34 = vmul.f32 %v13167_v45, %v13034_v2  ;;  %v13033_v9 = vsub.f32 2.0, %v13031_v33 }
0x129c   : > { %v13044_v24 = vmul.f32 %v13042_v34, %v13000_v13  ;;  %v13035_v39 = vmul.f32 %v14260_v20, %v13033_v9 }
0x129e   : > { %v13052_v3 = vadd.f32 %v13168_v25, %v13044_v24  ;;  %v13043_v32 = vmul.f32 %v13167_v45, %v13035_v39 }
0x12a0   : > { %13054 = vst.msk [vmem:[#allocation9] sm:$0xff] %vm10535_vm7, %v13052_v3  ;;  %v13045_v55 = vmul.f32 %v13043_v32, %v13001_v48 }
0x12a2   : > { %v13053_v12 = vadd.f32 %v13168_v25, %v13045_v55 }
0x12a4   : > { %13055 = vst.msk [vmem:[#allocation9 + $0x8] sm:$0xff] %vm10535_vm7, %v13053_v12 }
0x12a5 PF: > { %p14157_p4 = scmp.eq.s32.totalorder %s14496_s29, 3  ;;  %s14404_s18 = smov [#allocation9]  }
0x12a6   : > { %s13062_s28 = sshll.u32 %s14404_s18, 4  ;;  %s13063_s28 = int_to_ptr.vmem [resolvable:$true] %s13062_s28 }
0x12a7   : > { %s14317_s25 = scalar_lea.vmem %s13063_s28, 256  ;;  %p14324_p13 = scmp.lt.s32.totalorder %s13063_s28, %s13063_s28 }
0x12a8   : > { %p14318_p6 = scmp.ne.s32.totalorder %s13063_s28, %s14317_s25  ;;  %p14325_p12 = scmp.lt.s32.totalorder %s14317_s25, %s14317_s25 }
0x12aa   : > { %p14319_p9 = pnand %p14318_p6, %p14157_p4  ;;  %p14326_p0 = por %p14325_p12, %p14324_p13 }
0x12ac   : > { %p14320_p11 = pneg %p14319_p9 }
0x12ae   : > { %p14327_p2 = pnand %p14326_p0, %p14320_p11 }
0x12b0   : > { %14330 = shalt.err (!%p14327_p2)
}
0x12b1   : > { %s14405_s27 = smov 128   ;;  %s14406_s24 = smov 8  }
0x12b2   : > { %s16102_s16 = sld [smem:[#allocation18_spill]] }
0x12b8   : > { %14146 = dma.vmem_to_hbm [thread:$0]  (%p14157_p4), %s13063_s28, 256, %s16102_s16, [#allocation6], %s14405_s27, %s14405_s27, %s14406_s24  }
0x12b9   : > { %14366 = dma.done.wait (%p14157_p4), [#allocation6], 256  }
0x12ba   : > { %14368 = vsyncadd (%p14157_p4), [#allocation6], 4294967040 }
0x12bb PF: > { %s16103_s28 = sld [smem:[#allocation14_spill]]  ;;  %s16106_s25 = smov %s14375_s26 }
0x12bc   : > { %s16104_s20 = sld [smem:[#allocation13_spill]] }
0x12bd   : > { %s16105_s27 = sld [smem:[#allocation15_spill]] }
0x12c1   : > { %p27_p3 = scmp.ge.s32.totalorder %s16103_s28, 6  }
0x12c2   : > { %s16107_s26 = smov %s16104_s20 }
0x12c3   :  { %29 = sbr.rel (!%p27_p3) target bundleno = 10 (0xa), region = 133 }
0x12c8   :  { %13078 = vsyncpa [#allocation5], 1 }
0x12c9   :  { %13080 = vsyncpa [#allocation5 + $0x1], 1 }
0x12ca   :  { %13081 = vsyncpa [#allocation8], 1 }
0x12cb   :  { %13083 = vsyncpa [#allocation8 + $0x1], 1 }
0x12cc   :  { %13084 = vsyncpa [#allocation6], 1 }
0x12cd   :  { %13086 = vsyncpa [#allocation6 + $0x1], 1 }

</bundles_post_ra>
